<compile_context>
chip_gen: v6e
topology: v6e:2x2x1
jax: 0.10.0
libtpu: 0.0.40
codegen_flags: <defaults>
</compile_context>

<pallas_src>
import math
import functools

import jax
import jax.numpy as jnp
from jax.experimental import pallas as pl
from jax.experimental.pallas import tpu as pltpu


def _flash_fwd_kernel(q_ref, k_ref, v_ref, o_ref, q_sc, m_sc, l_sc, acc_sc, *,
                      scale, exp_in_bf16):
    kv = pl.program_id(2)

    @pl.when(kv == 0)
    def _():
        # Hoist the softmax scale + bf16 cast of the (resident) q tile out of
        # the kv loop: done once per q tile instead of once per kv step.
        q_sc[...] = (q_ref[0].astype(jnp.float32) * scale).astype(jnp.bfloat16)
        m_sc[...] = jnp.full_like(m_sc, -jnp.inf)
        l_sc[...] = jnp.zeros_like(l_sc)
        acc_sc[...] = jnp.zeros_like(acc_sc)

    q = q_sc[...]        # (tq, D) bf16, pre-scaled
    k = k_ref[0]         # (tk, D) bf16
    v = v_ref[0]         # (tk, D) bf16

    # scores = q @ k^T; contract over D directly (no explicit transpose of k).
    s = jax.lax.dot_general(
        q, k,
        dimension_numbers=(((1,), (1,)), ((), ())),
        preferred_element_type=jnp.float32,
    )  # (tq, tk) f32

    # online softmax update
    m_prev = m_sc[...]                                    # (tq, 1)
    m_new = jnp.maximum(m_prev, s.max(-1, keepdims=True))
    alpha = jnp.exp(m_prev - m_new)

    if exp_in_bf16:
        # v6e/v7x: bf16 EUP exp (2x throughput) and p is already bf16 for the
        # PV matmul; keep the running denominator accumulation in f32.
        p = jnp.exp((s - m_new).astype(jnp.bfloat16))     # (tq, tk) bf16
        l_sc[...] = alpha * l_sc[...] + jnp.sum(
            p, axis=-1, keepdims=True, dtype=jnp.float32)
        acc_sc[...] = alpha * acc_sc[...] + jnp.dot(
            p, v, preferred_element_type=jnp.float32)
    else:
        # v5e: no bf16 EUP/VPU, keep the f32 exp path.
        p = jnp.exp(s - m_new)                            # (tq, tk) f32
        l_sc[...] = alpha * l_sc[...] + p.sum(-1, keepdims=True)
        acc_sc[...] = alpha * acc_sc[...] + jnp.dot(
            p.astype(jnp.bfloat16), v, preferred_element_type=jnp.float32)

    m_sc[...] = m_new

    @pl.when(kv == pl.num_programs(2) - 1)
    def _():
        o_ref[0] = (acc_sc[...] * pl.reciprocal(l_sc[...], approx=True)).astype(
            o_ref.dtype
        )


def _pick_tile(s, target):
    """Largest tile <= target that divides s (prefer multiples of 128)."""
    if s <= target:
        return s
    step = 128 if target >= 128 else 8
    for cand in range(target, 0, -step):
        if s % cand == 0:
            return cand
    return s  # fallback: no tiling along this axis


def _device_kind():
    try:
        return jax.devices()[0].device_kind.lower()
    except Exception:
        return ""


def attend(q, k, v, *, tq=None, tk=None):
    """Equivalent of Attend.forward(q, k, v): softmax(q k^T / sqrt(D)) v."""
    B, H, S, D = q.shape
    assert k.shape == (B, H, S, D) and v.shape == (B, H, S, D)

    kind = _device_kind()
    is_v5 = "v5" in kind
    is_v7 = ("v7" in kind) or ("tpu7" in kind.replace(" ", ""))
    exp_in_bf16 = not is_v5

    # D-aware tile targets: K/V HBM traffic per (b,h) is 2*S*D*(S/tq), so for
    # small head dims grow tq aggressively (q/o/acc blocks stay tiny).
    if tq is None:
        tq_target = 2048 if D <= 64 else (1024 if D <= 128 else 512)
        tq = _pick_tile(S, tq_target)
    if tk is None:
        tk = _pick_tile(S, 512)
    assert S % tq == 0 and S % tk == 0

    BH = B * H

    # v7x has 2 TensorCores; keep the parallel grid extent even so both stay
    # busy (only matters when the extent would otherwise be odd).
    if is_v7 and (BH * (S // tq)) % 2 == 1 and tq % 2 == 0 and tq >= 16:
        tq //= 2

    # Cast the streamed operands to bf16 once: the kernel consumes bf16 on the
    # MXU anyway, and K/V are re-read S/tq times, so fp32 DMA wastes 2x HBM BW.
    qf = q.reshape(BH, S, D).astype(jnp.bfloat16)
    kf = k.reshape(BH, S, D).astype(jnp.bfloat16)
    vf = v.reshape(BH, S, D).astype(jnp.bfloat16)
    out_dtype = q.dtype

    scale = 1.0 / math.sqrt(D)
    kernel = functools.partial(_flash_fwd_kernel, scale=scale,
                               exp_in_bf16=exp_in_bf16)

    # VMEM budget: double-buffered q/k/v/o blocks + scratch + the compiler's
    # (tq, tk) f32 score / prob temporaries.
    out_bytes = jnp.dtype(out_dtype).itemsize
    block_bytes = 2 * (tq * D * 2 + 2 * (tk * D * 2) + tq * D * out_bytes)
    scratch_bytes = tq * D * 2 + 2 * (tq * 4) + tq * D * 4      # q_sc, m, l, acc
    temp_bytes = 3 * tq * tk * 4                                 # s / p temporaries
    vmem_needed = block_bytes + scratch_bytes + temp_bytes
    vmem_cap = (40 << 20) if is_v7 else (64 << 20)
    vmem_limit = int(min(vmem_cap, max(32 << 20, 2 * vmem_needed)))

    cost = pl.CostEstimate(
        flops=4 * BH * S * S * D,
        transcendentals=BH * S * S,
        bytes_accessed=int((3 * BH * S * D) * 2 + BH * S * D * out_bytes),
    )

    out = pl.pallas_call(
        kernel,
        out_shape=jax.ShapeDtypeStruct((BH, S, D), out_dtype),
        grid_spec=pltpu.PrefetchScalarGridSpec(
            num_scalar_prefetch=0,
            grid=(BH, S // tq, S // tk),
            in_specs=[
                pl.BlockSpec((1, tq, D), lambda b, qi, ki: (b, qi, 0)),
                pl.BlockSpec((1, tk, D), lambda b, qi, ki: (b, ki, 0)),
                pl.BlockSpec((1, tk, D), lambda b, qi, ki: (b, ki, 0)),
            ],
            out_specs=pl.BlockSpec((1, tq, D), lambda b, qi, ki: (b, qi, 0)),
            scratch_shapes=[
                pltpu.VMEM((tq, D), jnp.bfloat16),  # scaled q tile (hoisted)
                pltpu.VMEM((tq, 1), jnp.float32),   # running max
                pltpu.VMEM((tq, 1), jnp.float32),   # running denom
                pltpu.VMEM((tq, D), jnp.float32),   # running numerator
            ],
        ),
        compiler_params=pltpu.CompilerParams(
            dimension_semantics=("parallel", "parallel", "arbitrary"),
            vmem_limit_bytes=vmem_limit,
        ),
        cost_estimate=cost,
    )(qf, kf, vf)

    return out.reshape(B, H, S, D)


def _reference(q, k, v):
    scale = 1.0 / math.sqrt(q.shape[-1])
    s = jnp.einsum("bhqd,bhkd->bhqk", q, k) * scale
    p = jax.nn.softmax(s, axis=-1)
    return jnp.einsum("bhqk,bhkd->bhqd", p, v)


if __name__ == "__main__":
    # TODO(synk): for head dims D < 128 the lane dim is under-utilized (masked
    # output stores, ~25% MXU row fill on v6e/v7x); packing 2 heads into a
    # 128-wide last axis would fix it but changes the memory layout contract.
    B, H, S, D = 2, 4, 256, 64
    key = jax.random.PRNGKey(0)
    kq, kk, kv = jax.random.split(key, 3)
    q = jax.random.normal(kq, (B, H, S, D), dtype=jnp.float32)
    k = jax.random.normal(kk, (B, H, S, D), dtype=jnp.float32)
    v = jax.random.normal(kv, (B, H, S, D), dtype=jnp.float32)

    out = attend(q, k, v)
    jax.block_until_ready(out)

    ref = _reference(q, k, v)
    # bf16 streamed operands + bf16 exp on v6e/v7x with fp32 accumulation:
    # expect ~1e-2 level deviation from the pure fp32 reference.
    assert jnp.allclose(out, ref, atol=5e-2, rtol=5e-2), "mismatch vs reference"

    print("KERNEL_OK")
</pallas_src>

<mosaic_0001>
module attributes {stable_mosaic.version = 11 : i64} {
  func.func @_flash_fwd_kernel(%arg0: i32, %arg1: i32, %arg2: i32, %arg3: memref<1x256x64xbf16, #tpu.memory_space<vmem>>, %arg4: memref<1x256x64xbf16, #tpu.memory_space<vmem>>, %arg5: memref<1x256x64xbf16, #tpu.memory_space<vmem>>, %arg6: memref<1x256x64xf32, #tpu.memory_space<vmem>>, %arg7: memref<256x64xbf16, #tpu.memory_space<vmem>>, %arg8: memref<256x1xf32, #tpu.memory_space<vmem>>, %arg9: memref<256x1xf32, #tpu.memory_space<vmem>>, %arg10: memref<256x64xf32, #tpu.memory_space<vmem>>) attributes {dimension_semantics = [#tpu.dimension_semantics<parallel>, #tpu.dimension_semantics<parallel>, #tpu.dimension_semantics<arbitrary>], iteration_bounds = array<i64: 8, 1, 1>, scalar_prefetch = 0 : i64, scratch_operands = 4 : i64, tpu.core_type = #tpu.core_type<tc>, window_params = [{transform_indices = @transform_0, window_bounds = array<i64: 1, 256, 64>}, {transform_indices = @transform_1, window_bounds = array<i64: 1, 256, 64>}, {transform_indices = @transform_2, window_bounds = array<i64: 1, 256, 64>}, {transform_indices = @transform_3, window_bounds = array<i64: 1, 256, 64>}]} {
    %c0_i32 = arith.constant 0 : i32
    %0 = arith.cmpi eq, %arg2, %c0_i32 : i32
    %1 = arith.extui %0 : i1 to i32
    %c0_i32_0 = arith.constant 0 : i32
    %2 = arith.cmpi ne, %1, %c0_i32_0 : i32
    scf.if %2 {
      %c0_25 = arith.constant 0 : index
      %c0_26 = arith.constant 0 : index
      %c0_27 = arith.constant 0 : index
      %36 = vector.load %arg3[%c0_25, %c0_26, %c0_27] : memref<1x256x64xbf16, #tpu.memory_space<vmem>>, vector<1x256x64xbf16>
      %37 = vector.shape_cast %36 : vector<1x256x64xbf16> to vector<256x64xbf16>
      %38 = arith.extf %37 : vector<256x64xbf16> to vector<256x64xf32>
      %cst_28 = arith.constant 1.250000e-01 : f32
      %39 = vector.broadcast %cst_28 : f32 to vector<256x64xf32>
      %40 = arith.mulf %38, %39 : vector<256x64xf32>
      %41 = arith.truncf %40 : vector<256x64xf32> to vector<256x64xbf16>
      %c0_29 = arith.constant 0 : index
      %c0_30 = arith.constant 0 : index
      %42 = vector.load %arg7[%c0_29, %c0_30] : memref<256x64xbf16, #tpu.memory_space<vmem>>, vector<256x64xbf16>
      tpu.vector_store %arg7[%c0_29, %c0_30], %41 {strides = array<i32>} : memref<256x64xbf16, #tpu.memory_space<vmem>>, vector<256x64xbf16>,
      %cst_31 = arith.constant 0xFF800000 : f32
      %43 = vector.broadcast %cst_31 : f32 to vector<256x1xf32>
      %c0_32 = arith.constant 0 : index
      %c0_33 = arith.constant 0 : index
      %44 = vector.load %arg8[%c0_32, %c0_33] : memref<256x1xf32, #tpu.memory_space<vmem>>, vector<256x1xf32>
      tpu.vector_store %arg8[%c0_32, %c0_33], %43 {strides = array<i32>} : memref<256x1xf32, #tpu.memory_space<vmem>>, vector<256x1xf32>,
      %cst_34 = arith.constant 0.000000e+00 : f32
      %45 = vector.broadcast %cst_34 : f32 to vector<256x1xf32>
      %c0_35 = arith.constant 0 : index
      %c0_36 = arith.constant 0 : index
      %46 = vector.load %arg9[%c0_35, %c0_36] : memref<256x1xf32, #tpu.memory_space<vmem>>, vector<256x1xf32>
      tpu.vector_store %arg9[%c0_35, %c0_36], %45 {strides = array<i32>} : memref<256x1xf32, #tpu.memory_space<vmem>>, vector<256x1xf32>,
      %cst_37 = arith.constant 0.000000e+00 : f32
      %47 = vector.broadcast %cst_37 : f32 to vector<256x64xf32>
      %c0_38 = arith.constant 0 : index
      %c0_39 = arith.constant 0 : index
      %48 = vector.load %arg10[%c0_38, %c0_39] : memref<256x64xf32, #tpu.memory_space<vmem>>, vector<256x64xf32>
      tpu.vector_store %arg10[%c0_38, %c0_39], %47 {strides = array<i32>} : memref<256x64xf32, #tpu.memory_space<vmem>>, vector<256x64xf32>,
    } else {
    }
    %c0 = arith.constant 0 : index
    %c0_1 = arith.constant 0 : index
    %3 = vector.load %arg7[%c0, %c0_1] : memref<256x64xbf16, #tpu.memory_space<vmem>>, vector<256x64xbf16>
    %c0_2 = arith.constant 0 : index
    %c0_3 = arith.constant 0 : index
    %c0_4 = arith.constant 0 : index
    %4 = vector.load %arg4[%c0_2, %c0_3, %c0_4] : memref<1x256x64xbf16, #tpu.memory_space<vmem>>, vector<1x256x64xbf16>
    %5 = vector.shape_cast %4 : vector<1x256x64xbf16> to vector<256x64xbf16>
    %c0_5 = arith.constant 0 : index
    %c0_6 = arith.constant 0 : index
    %c0_7 = arith.constant 0 : index
    %6 = vector.load %arg5[%c0_5, %c0_6, %c0_7] : memref<1x256x64xbf16, #tpu.memory_space<vmem>>, vector<1x256x64xbf16>
    %7 = vector.shape_cast %6 : vector<1x256x64xbf16> to vector<256x64xbf16>
    %cst = arith.constant dense<0.000000e+00> : vector<256x256xf32>
    %8 = tpu.matmul %3, %5, %cst {dimension_numbers = #tpu.dot_dimension_numbers<[1], [1], [0], [0], [0, 0, 1, 0], [], []>} : vector<256x64xbf16>, vector<256x64xbf16>, vector<256x256xf32> -> vector<256x256xf32>
    %c0_8 = arith.constant 0 : index
    %c0_9 = arith.constant 0 : index
    %9 = vector.load %arg8[%c0_8, %c0_9] : memref<256x1xf32, #tpu.memory_space<vmem>>, vector<256x1xf32>
    %cst_10 = arith.constant dense<0xFF800000> : vector<256xf32>
    %10 = vector.multi_reduction <maximumf>, %8, %cst_10 [1] : vector<256x256xf32> to vector<256xf32>
    %11 = vector.shape_cast %10 : vector<256xf32> to vector<256x1xf32>
    %12 = arith.maximumf %9, %11 : vector<256x1xf32>
    %13 = arith.subf %9, %12 : vector<256x1xf32>
    %14 = math.exp %13 : vector<256x1xf32>
    %15 = vector.broadcast %12 : vector<256x1xf32> to vector<256x256xf32>
    %16 = arith.subf %8, %15 : vector<256x256xf32>
    %17 = arith.truncf %16 : vector<256x256xf32> to vector<256x256xbf16>
    %18 = math.exp %17 : vector<256x256xbf16>
    %c0_11 = arith.constant 0 : index
    %c0_12 = arith.constant 0 : index
    %19 = vector.load %arg9[%c0_11, %c0_12] : memref<256x1xf32, #tpu.memory_space<vmem>>, vector<256x1xf32>
    %20 = arith.mulf %14, %19 : vector<256x1xf32>
    %21 = arith.extf %18 : vector<256x256xbf16> to vector<256x256xf32>
    %cst_13 = arith.constant dense<0.000000e+00> : vector<256xf32>
    %22 = vector.multi_reduction <add>, %21, %cst_13 [1] : vector<256x256xf32> to vector<256xf32>
    %23 = vector.shape_cast %22 : vector<256xf32> to vector<256x1xf32>
    %24 = arith.addf %20, %23 : vector<256x1xf32>
    %c0_14 = arith.constant 0 : index
    %c0_15 = arith.constant 0 : index
    %25 = vector.load %arg9[%c0_14, %c0_15] : memref<256x1xf32, #tpu.memory_space<vmem>>, vector<256x1xf32>
    tpu.vector_store %arg9[%c0_14, %c0_15], %24 {strides = array<i32>} : memref<256x1xf32, #tpu.memory_space<vmem>>, vector<256x1xf32>,
    %c0_16 = arith.constant 0 : index
    %c0_17 = arith.constant 0 : index
    %26 = vector.load %arg10[%c0_16, %c0_17] : memref<256x64xf32, #tpu.memory_space<vmem>>, vector<256x64xf32>
    %27 = vector.broadcast %14 : vector<256x1xf32> to vector<256x64xf32>
    %28 = arith.mulf %27, %26 : vector<256x64xf32>
    %cst_18 = arith.constant dense<0.000000e+00> : vector<256x64xf32>
    %29 = tpu.matmul %18, %7, %cst_18 {dimension_numbers = #tpu.dot_dimension_numbers<[1], [0], [0], [1], [0, 0, 1, 1], [], []>} : vector<256x256xbf16>, vector<256x64xbf16>, vector<256x64xf32> -> vector<256x64xf32>
    %30 = arith.addf %28, %29 : vector<256x64xf32>
    %c0_19 = arith.constant 0 : index
    %c0_20 = arith.constant 0 : index
    %31 = vector.load %arg10[%c0_19, %c0_20] : memref<256x64xf32, #tpu.memory_space<vmem>>, vector<256x64xf32>
    tpu.vector_store %arg10[%c0_19, %c0_20], %30 {strides = array<i32>} : memref<256x64xf32, #tpu.memory_space<vmem>>, vector<256x64xf32>,
    %c0_21 = arith.constant 0 : index
    %c0_22 = arith.constant 0 : index
    %32 = vector.load %arg8[%c0_21, %c0_22] : memref<256x1xf32, #tpu.memory_space<vmem>>, vector<256x1xf32>
    tpu.vector_store %arg8[%c0_21, %c0_22], %12 {strides = array<i32>} : memref<256x1xf32, #tpu.memory_space<vmem>>, vector<256x1xf32>,
    %c0_i32_23 = arith.constant 0 : i32
    %33 = arith.cmpi eq, %arg2, %c0_i32_23 : i32
    %34 = arith.extui %33 : i1 to i32
    %c0_i32_24 = arith.constant 0 : i32
    %35 = arith.cmpi ne, %34, %c0_i32_24 : i32
    scf.if %35 {
      %c0_25 = arith.constant 0 : index
      %c0_26 = arith.constant 0 : index
      %36 = vector.load %arg10[%c0_25, %c0_26] : memref<256x64xf32, #tpu.memory_space<vmem>>, vector<256x64xf32>
      %c0_27 = arith.constant 0 : index
      %c0_28 = arith.constant 0 : index
      %37 = vector.load %arg9[%c0_27, %c0_28] : memref<256x1xf32, #tpu.memory_space<vmem>>, vector<256x1xf32>
      %38 = tpu.reciprocal %37 {approx = true} : vector<256x1xf32> -> vector<256x1xf32>
      %39 = vector.broadcast %38 : vector<256x1xf32> to vector<256x64xf32>
      %40 = arith.mulf %36, %39 : vector<256x64xf32>
      %c0_29 = arith.constant 0 : index
      %c0_30 = arith.constant 0 : index
      %c0_31 = arith.constant 0 : index
      %41 = vector.load %arg6[%c0_29, %c0_30, %c0_31] : memref<1x256x64xf32, #tpu.memory_space<vmem>>, vector<1x256x64xf32>
      %42 = vector.shape_cast %41 : vector<1x256x64xf32> to vector<256x64xf32>
      %43 = vector.shape_cast %40 : vector<256x64xf32> to vector<1x256x64xf32>
      tpu.vector_store %arg6[%c0_29, %c0_30, %c0_31], %43 {strides = array<i32>} : memref<1x256x64xf32, #tpu.memory_space<vmem>>, vector<1x256x64xf32>,
    } else {
    }
    return
  }
  func.func @transform_0(%arg0: i32, %arg1: i32, %arg2: i32) -> (i32, i32, i32) {
    %c0_i32 = arith.constant 0 : i32
    %c0_i32_0 = arith.constant 0 : i32
    return %arg0, %arg1, %c0_i32 : i32, i32, i32
  }
  func.func @transform_1(%arg0: i32, %arg1: i32, %arg2: i32) -> (i32, i32, i32) {
    %c0_i32 = arith.constant 0 : i32
    %c0_i32_0 = arith.constant 0 : i32
    return %arg0, %arg2, %c0_i32 : i32, i32, i32
  }
  func.func @transform_2(%arg0: i32, %arg1: i32, %arg2: i32) -> (i32, i32, i32) {
    %c0_i32 = arith.constant 0 : i32
    %c0_i32_0 = arith.constant 0 : i32
    return %arg0, %arg2, %c0_i32 : i32, i32, i32
  }
  func.func @transform_3(%arg0: i32, %arg1: i32, %arg2: i32) -> (i32, i32, i32) {
    %c0_i32 = arith.constant 0 : i32
    %c0_i32_0 = arith.constant 0 : i32
    return %arg0, %arg1, %c0_i32 : i32, i32, i32
  }
}

</mosaic_0001>

<bundles_post_ra>
// kernel: tpu_custom_call.1
= control target key start
LH: loop header
LB: loop body
LE: loop exit
PB: predicated region body
PF: predicated region fallthrough
CT: control target
= control target key end

     0   :  { %s3828_s12 = smov 0   ;;  %s3830_s13 = smov 0   ;;  %s5284_s0 = inlined_call_operand.vmem [shape: bf16[8,256,64], index: 0, kind: input, shape index: {}]   ;;  %s5285_s1 = inlined_call_operand.vmem [shape: bf16[8,256,64], index: 1, kind: input, shape index: {}]   ;;  %s5286_s2 = inlined_call_operand.vmem [shape: bf16[8,256,64], index: 2, kind: input, shape index: {}]   ;;  %s5287_s3 = inlined_call_operand.vmem [shape: f32[8,256,64], index: 3, kind: output, shape index: {}]  }
   0x1   :  { %s3832_s14 = smov 0  }
   0x2 LB: > { %s32_s15 = sadd.s32 1, %s3799_s13  ;;  %p3122_p0 = scmp.ge.s32.totalorder %s3803_s14, 1  ;;  %s3803_s14 = sphi %s3832_s14, %s13_s14   ;;  %s3799_s13 = sphi %s3830_s13, %s5528_s13   ;;  %s3795_s12 = sphi %s3828_s12, %s5527_s12  }
   0x3   : > { %p34_p1 = scmp.ge.s32.totalorder %s32_s15, 8  ;;  %p199_p2 = scmp.lt.s32.totalorder %s3803_s14, 9 }
   0x5   : > { %s5530_s15 = smov (%p34_p1, %s32_s15), 0  ;;  %p200_p3 = pnand %p3122_p0, %p199_p2 }
   0x7   : > { %203 = sbr.rel (%p200_p3) target bundleno = 986 (0x3da), region = 32 }
   0xc   : > { %p250_p4 = scmp.lt.s32.totalorder %s3795_s12, 7  ;;  %vm616_vm0 = vcmask 523264   ;;  %vm518_vm1 = vcmask 519168   ;;  %vm551_vm2 = vcmask 7168  }
   0xe   : > { %s5532_s12 = smov (!%p250_p4, %s3795_s12), 7 }
   0xf   : > { %s3849_s16 = sshll.u32 %s5532_s12, 7  ;;  %s3232_s26 = sshll.u32 %s5532_s12, 8 }
  0x10   : > { %s3855_s19 = scalar_lea.vmem %s5285_s1, %s3849_s16  ;;  %s3873_s22 = scalar_lea.vmem %s5284_s0, %s3849_s16 }
  0x11   : > { %v3541_v0 = vld [vmem:[%s3855_s19 + $0x78] sm:$0xff]   ;;  %v3543_v2 = vld [vmem:[%s3855_s19 + $0x70] sm:$0xff]   ;;  %v3545_v6 = vld [vmem:[%s3855_s19 + $0x68] sm:$0xff]   ;;  %s4335_s25 = scalar_lea.vmem %s5286_s2, %s3849_s16  ;;  %s5209_s29 = scalar_lea.vmem %s5287_s3, %s3232_s26 }
  0x12   : > { %v3542_v1 = vld [vmem:[%s3855_s19 + $0x38] sm:$0xff]   ;;  %3504 = vmatprep.subr.msk.bf16.mxu0 %vm616_vm0, %v3541_v0  ;;  %v3544_v4 = vld [vmem:[%s3855_s19 + $0x30] sm:$0xff]   ;;  %v3546_v7 = vld [vmem:[%s3855_s19 + $0x28] sm:$0xff]  }
  0x13   : > { %v976_v3 = vsel %vm616_vm0, %v3542_v1, 0  ;;  %v973_v5 = vsel %vm616_vm0, %v3544_v4, 0  ;;  %v3548_v8 = vld [vmem:[%s3855_s19 + $0x20] sm:$0xff]   ;;  %v970_v9 = vsel %vm616_vm0, %v3546_v7, 0  ;;  %v3329_v11 = vld [vmem:[%s3873_s22 + $0x8] sm:$0xff]   ;;  %v3330_v12 = vld [vmem:[%s3873_s22 + $0x10] sm:$0xff]  }
  0x14   : > { %3345 = vmatpush3.bf16.xpose.msra.mxu0 %v976_v3  ;;  %v3266_v10 = vld [vmem:[%s3873_s22] sm:$0xff]   ;;  %v967_v14 = vsel %vm616_vm0, %v3548_v8, 0  ;;  %v3271_v17 = vunpack.c.l.bf16 %v3329_v11  ;;  %v3331_v18 = vld [vmem:[%s3873_s22 + $0x18] sm:$0xff]   ;;  %v3272_v19 = vunpack.c.h.bf16 %v3329_v11  ;;  %v3275_v20 = vunpack.c.l.bf16 %v3330_v12  ;;  %v3333_v32 = vld [vmem:[%s3873_s22 + $0x28] sm:$0xff]  }
  0x15   : > { %3505 = vmatprep.subr.msk.bf16.mxu0 %vm616_vm0, %v3543_v2  ;;  %v3547_v13 = vld [vmem:[%s3855_s19 + $0x60] sm:$0xff]   ;;  %v3267_v15 = vunpack.c.l.bf16 %v3266_v10  ;;  %v3268_v16 = vunpack.c.h.bf16 %v3266_v10  ;;  %v3276_v21 = vunpack.c.h.bf16 %v3330_v12  ;;  %v3279_v22 = vunpack.c.l.bf16 %v3331_v18  ;;  %v3334_v37 = vld [vmem:[%s3873_s22 + $0x30] sm:$0xff]   ;;  %v3335_v38 = vld [vmem:[%s3873_s22 + $0x38] sm:$0xff]  }
  0x16   : > { %v360_v25 = vmul.f32 0.125, %v3271_v17  ;;  %v3280_v26 = vunpack.c.h.bf16 %v3331_v18  ;;  %v361_v27 = vmul.f32 0.125, %v3272_v19  ;;  %v362_v28 = vmul.f32 0.125, %v3275_v20  ;;  %v3332_v31 = vld [vmem:[%s3873_s22 + $0x20] sm:$0xff]   ;;  %v3549_v51 = vld [vmem:[%s3855_s19 + $0x58] sm:$0xff]   ;;  %v3337_v61 = vld [vmem:[%s3873_s22 + $0x48] sm:$0xff]  }
  0x17   : > { %v358_v23 = vmul.f32 0.125, %v3267_v15  ;;  %v359_v24 = vmul.f32 0.125, %v3268_v16  ;;  %v363_v29 = vmul.f32 0.125, %v3276_v21  ;;  %v364_v30 = vmul.f32 0.125, %v3279_v22  ;;  %v3336_v60 = vld [vmem:[%s3873_s22 + $0x40] sm:$0xff]   ;;  %v3338_v2 = vld [vmem:[%s3873_s22 + $0x50] sm:$0xff]  }
  0x18   : > { %v3235_v35 = vpack.c.bf16 %v360_v25, %v360_v25  ;;  %v365_v36 = vmul.f32 0.125, %v3280_v26  ;;  %v3236_v39 = vpack.c.bf16 %v361_v27, %v361_v27  ;;  %v3237_v40 = vpack.c.bf16 %v362_v28, %v362_v28  ;;  %v3550_v3 = vld [vmem:[%s3855_s19 + $0x18] sm:$0xff]   ;;  %v3551_v26 = vld [vmem:[%s3855_s19 + $0x50] sm:$0xff]  }
  0x19   : > { %v3233_v33 = vpack.c.bf16 %v358_v23, %v358_v23  ;;  %v3234_v34 = vpack.c.bf16 %v359_v24, %v359_v24  ;;  %v3238_v41 = vpack.c.bf16 %v363_v29, %v363_v29  ;;  %v3239_v42 = vpack.c.bf16 %v364_v30, %v364_v30  ;;  %v3339_v8 = vld [vmem:[%s3873_s22 + $0x58] sm:$0xff]  }
  0x1a   : > { %521 = vst.msk [vmem:[#allocation2 + $0x8] sm:$0xf] %vm518_vm1, %v3235_v35  ;;  %v3240_v43 = vpack.c.bf16 %v365_v36, %v365_v36  ;;  %v3283_v44 = vunpack.c.l.bf16 %v3332_v31  ;;  %v3284_v45 = vunpack.c.h.bf16 %v3332_v31  ;;  %v3287_v46 = vunpack.c.l.bf16 %v3333_v32  ;;  %522 = vst.msk [vmem:[#allocation2 + $0xc] sm:$0xf] %vm518_vm1, %v3236_v39  ;;  %v3342_v39 = vld [vmem:[%s3873_s22 + $0x70] sm:$0xff]  }
  0x1b   : > { %519 = vst.msk [vmem:[#allocation2] sm:$0xf] %vm518_vm1, %v3233_v33  ;;  %520 = vst.msk [vmem:[#allocation2 + $0x4] sm:$0xf] %vm518_vm1, %v3234_v34  ;;  %v3288_v47 = vunpack.c.h.bf16 %v3333_v32  ;;  %v3291_v48 = vunpack.c.l.bf16 %v3334_v37  ;;  %v3292_v49 = vunpack.c.h.bf16 %v3334_v37  ;;  %v3295_v50 = vunpack.c.l.bf16 %v3335_v38 }
  0x1c   : > { %3347 = vmatpush3.bf16.xpose.msra.mxu0 %v973_v5  ;;  %523 = vst.msk [vmem:[#allocation2 + $0x10] sm:$0xf] %vm518_vm1, %v3237_v40  ;;  %524 = vst.msk [vmem:[#allocation2 + $0x14] sm:$0xf] %vm518_vm1, %v3238_v41  ;;  %v366_v52 = vmul.f32 0.125, %v3283_v44  ;;  %v367_v53 = vmul.f32 0.125, %v3284_v45  ;;  %v3296_v55 = vunpack.c.h.bf16 %v3335_v38  ;;  %v3299_v11 = vunpack.c.l.bf16 %v3336_v60 }
  0x1d   : > { %3506 = vmatprep.subr.msk.bf16.mxu0 %vm616_vm0, %v3545_v6  ;;  %525 = vst.msk [vmem:[#allocation2 + $0x18] sm:$0xf] %vm518_vm1, %v3239_v42  ;;  %526 = vst.msk [vmem:[#allocation2 + $0x1c] sm:$0xf] %vm518_vm1, %v3240_v43  ;;  %v368_v54 = vmul.f32 0.125, %v3287_v46  ;;  %v369_v56 = vmul.f32 0.125, %v3288_v47  ;;  %v3300_v12 = vunpack.c.h.bf16 %v3336_v60  ;;  %v3304_v16 = vunpack.c.h.bf16 %v3337_v61 }
  0x1e   : > { %v370_v57 = vmul.f32 0.125, %v3291_v48  ;;  %v371_v58 = vmul.f32 0.125, %v3292_v49  ;;  %v372_v59 = vmul.f32 0.125, %v3295_v50  ;;  %v3241_v62 = vpack.c.bf16 %v366_v52, %v366_v52  ;;  %v3552_v44 = vld [vmem:[%s3855_s19 + $0x10] sm:$0xff]  }
  0x1f   : > { %v3242_v63 = vpack.c.bf16 %v367_v53, %v367_v53  ;;  %v3243_v0 = vpack.c.bf16 %v368_v54, %v368_v54  ;;  %v373_v1 = vmul.f32 0.125, %v3296_v55  ;;  %v3244_v4 = vpack.c.bf16 %v369_v56, %v369_v56 }
  0x20   : > { %v3245_v5 = vpack.c.bf16 %v370_v57, %v370_v57  ;;  %v3246_v6 = vpack.c.bf16 %v371_v58, %v371_v58  ;;  %v3247_v7 = vpack.c.bf16 %v372_v59, %v372_v59  ;;  %527 = vst.msk [vmem:[#allocation2 + $0x20] sm:$0xf] %vm518_vm1, %v3241_v62  ;;  %v3307_v17 = vunpack.c.l.bf16 %v3338_v2  ;;  %v3553_v58 = vld [vmem:[%s3855_s19 + $0x48] sm:$0xff]  }
  0x21   : > { %528 = vst.msk [vmem:[#allocation2 + $0x24] sm:$0xf] %vm518_vm1, %v3242_v63  ;;  %529 = vst.msk [vmem:[#allocation2 + $0x28] sm:$0xf] %vm518_vm1, %v3243_v0  ;;  %v3248_v10 = vpack.c.bf16 %v373_v1, %v373_v1  ;;  %v3308_v18 = vunpack.c.h.bf16 %v3338_v2  ;;  %v374_v19 = vmul.f32 0.125, %v3299_v11  ;;  %v3311_v20 = vunpack.c.l.bf16 %v3339_v8  ;;  %v3554_v0 = vld [vmem:[%s3855_s19 + $0x8] sm:$0xff]  }
  0x22   : > { %v3907_v15 = vld [vmem:[#allocation2] sm:$0xff]   ;;  %530 = vst.msk [vmem:[#allocation2 + $0x2c] sm:$0xf] %vm518_vm1, %v3244_v4  ;;  %531 = vst.msk [vmem:[#allocation2 + $0x30] sm:$0xf] %vm518_vm1, %v3245_v5  ;;  %v3312_v21 = vunpack.c.h.bf16 %v3339_v8  ;;  %v964_v23 = vsel %vm616_vm0, %v3550_v3, 0  ;;  %v3324_v52 = vunpack.c.h.bf16 %v3342_v39 }
  0x23   : > { %532 = vst.msk [vmem:[#allocation2 + $0x34] sm:$0xf] %vm518_vm1, %v3246_v6  ;;  %533 = vst.msk [vmem:[#allocation2 + $0x38] sm:$0xf] %vm518_vm1, %v3247_v7  ;;  %3360 = vmatprep.mubr.msk.bf16.mxu0 %vm616_vm0, %v3907_v15  ;;  %v375_v24 = vmul.f32 0.125, %v3300_v12  ;;  %v3249_v27 = vpack.c.bf16 %v374_v19, %v374_v19  ;;  %v377_v32 = vmul.f32 0.125, %v3304_v16 }
  0x24   : > { %3349 = vmatpush3.bf16.xpose.msra.mxu0 %v970_v9  ;;  %v3340_v9 = vld [vmem:[%s3873_s22 + $0x60] sm:$0xff]   ;;  %534 = vst.msk [vmem:[#allocation2 + $0x3c] sm:$0xf] %vm518_vm1, %v3248_v10  ;;  %v378_v33 = vmul.f32 0.125, %v3307_v17  ;;  %v379_v34 = vmul.f32 0.125, %v3308_v18  ;;  %v380_v36 = vmul.f32 0.125, %v3311_v20 }
  0x25   : > { %3507 = vmatprep.subr.msk.bf16.mxu0 %vm616_vm0, %v3547_v13  ;;  %v3303_v13 = vunpack.c.l.bf16 %v3337_v61  ;;  %v3315_v22 = vunpack.c.l.bf16 %v3340_v9  ;;  %v3316_v25 = vunpack.c.h.bf16 %v3340_v9  ;;  %v3250_v31 = vpack.c.bf16 %v375_v24, %v375_v24  ;;  %535 = vst.msk [vmem:[#allocation2 + $0x40] sm:$0xf] %vm518_vm1, %v3249_v27  ;;  %v3343_v61 = vld [vmem:[%s3873_s22 + $0x78] sm:$0xff]   ;;  %v3555_v6 = vld [vmem:[%s3855_s19 + $0x40] sm:$0xff]   ;;  %v3558_v9 = vld [vmem:[#allocation2 + $0x8] sm:$0xff]  }
  0x26   : > { %v381_v37 = vmul.f32 0.125, %v3312_v21  ;;  %v3252_v40 = vpack.c.bf16 %v377_v32, %v377_v32  ;;  %v3253_v41 = vpack.c.bf16 %v378_v33, %v378_v33  ;;  %v3254_v42 = vpack.c.bf16 %v379_v34, %v379_v34  ;;  %v3556_v7 = vld [vmem:[%s3855_s19] sm:$0xff]   ;;  %v3559_v10 = vld [vmem:[#allocation2 + $0x10] sm:$0xff]   ;;  %v3560_v11 = vld [vmem:[#allocation2 + $0x18] sm:$0xff]  }
  0x27   : > { %v376_v28 = vmul.f32 0.125, %v3303_v13  ;;  %v382_v38 = vmul.f32 0.125, %v3315_v22  ;;  %536 = vst.msk [vmem:[#allocation2 + $0x44] sm:$0xf] %vm518_vm1, %v3250_v31  ;;  %v383_v43 = vmul.f32 0.125, %v3316_v25  ;;  %v3255_v45 = vpack.c.bf16 %v380_v36, %v380_v36 }
  0x28   : > { %v3256_v46 = vpack.c.bf16 %v381_v37, %v381_v37  ;;  %538 = vst.msk [vmem:[#allocation2 + $0x4c] sm:$0xf] %vm518_vm1, %v3252_v40  ;;  %539 = vst.msk [vmem:[#allocation2 + $0x50] sm:$0xf] %vm518_vm1, %v3253_v41  ;;  %v387_v56 = vmul.f32 0.125, %v3324_v52  ;;  %v961_v57 = vsel %vm616_vm0, %v3552_v44, 0  ;;  %v3327_v62 = vunpack.c.l.bf16 %v3343_v61 }
  0x29   : > { %v3251_v35 = vpack.c.bf16 %v376_v28, %v376_v28  ;;  %v3257_v47 = vpack.c.bf16 %v382_v38, %v382_v38  ;;  %540 = vst.msk [vmem:[#allocation2 + $0x54] sm:$0xf] %vm518_vm1, %v3254_v42  ;;  %v3258_v49 = vpack.c.bf16 %v383_v43, %v383_v43  ;;  %541 = vst.msk [vmem:[#allocation2 + $0x58] sm:$0xf] %vm518_vm1, %v3255_v45  ;;  %v3328_v63 = vunpack.c.h.bf16 %v3343_v61  ;;  %v3561_v12 = vld [vmem:[#allocation2 + $0x20] sm:$0xff]   ;;  %v3562_v13 = vld [vmem:[#allocation2 + $0x28] sm:$0xff]  }
  0x2a   : > { %542 = vst.msk [vmem:[#allocation2 + $0x5c] sm:$0xf] %vm518_vm1, %v3256_v46  ;;  %v3262_v60 = vpack.c.bf16 %v387_v56, %v387_v56  ;;  %v388_v1 = vmul.f32 0.125, %v3327_v62  ;;  %v958_v5 = vsel %vm616_vm0, %v3554_v0, 0  ;;  %v955_v8 = vsel %vm616_vm0, %v3556_v7, 0 }
  0x2b   : > { %537 = vst.msk [vmem:[#allocation2 + $0x48] sm:$0xf] %vm518_vm1, %v3251_v35  ;;  %543 = vst.msk [vmem:[#allocation2 + $0x60] sm:$0xf] %vm518_vm1, %v3257_v47  ;;  %v389_v2 = vmul.f32 0.125, %v3328_v63 }
  0x2c   : > { %3351 = vmatpush3.bf16.xpose.msra.mxu0 %v967_v14  ;;  %v3341_v14 = vld [vmem:[%s3873_s22 + $0x68] sm:$0xff]   ;;  %544 = vst.msk [vmem:[#allocation2 + $0x64] sm:$0xf] %vm518_vm1, %v3258_v49  ;;  %548 = vst.msk [vmem:[#allocation2 + $0x74] sm:$0xf] %vm518_vm1, %v3262_v60  ;;  %v3263_v3 = vpack.c.bf16 %v388_v1, %v388_v1 }
  0x2d   : > { %3508 = vmatprep.subr.msk.bf16.mxu0 %vm616_vm0, %v3549_v51  ;;  %v3319_v29 = vunpack.c.l.bf16 %v3341_v14  ;;  %v3320_v30 = vunpack.c.h.bf16 %v3341_v14  ;;  %v3323_v51 = vunpack.c.l.bf16 %v3342_v39  ;;  %v3264_v4 = vpack.c.bf16 %v389_v2, %v389_v2  ;;  %v3563_v14 = vld [vmem:[#allocation2 + $0x30] sm:$0xff]  }
  0x2e   : > { %549 = vst.msk [vmem:[#allocation2 + $0x78] sm:$0xf] %vm518_vm1, %v3263_v3  ;;  %v3565_v16 = vld [vmem:[#allocation2 + $0x40] sm:$0xff]   ;;  %v3806_v39 = vmov 0  }
  0x2f   : > { %v384_v48 = vmul.f32 0.125, %v3319_v29  ;;  %v385_v50 = vmul.f32 0.125, %v3320_v30  ;;  %v386_v55 = vmul.f32 0.125, %v3323_v51  ;;  %550 = vst.msk [vmem:[#allocation2 + $0x7c] sm:$0xf] %vm518_vm1, %v3264_v4  ;;  %3539 = vset.pattern.permute.xlu0 %v3806_v39  ;;  %3540 = vset.pattern.permute.xlu1 %v3806_v39 }
  0x30   : > { %v3567_v18 = vld [vmem:[#allocation2 + $0x50] sm:$0xff]  }
  0x31   : > { %v3259_v53 = vpack.c.bf16 %v384_v48, %v384_v48  ;;  %v3260_v54 = vpack.c.bf16 %v385_v50, %v385_v50  ;;  %v3261_v59 = vpack.c.bf16 %v386_v55, %v386_v55  ;;  %v3568_v19 = vld [vmem:[#allocation2 + $0x58] sm:$0xff]   ;;  %v3807_v48 = vmov 0.0  }
  0x32   : > { %v3566_v17 = vld [vmem:[#allocation2 + $0x48] sm:$0xff]   ;;  %618 = vst.msk [vmem:[#allocation5 + $0x8] sm:$0xff] %vm616_vm0, %v3807_v48  ;;  %617 = vst.msk [vmem:[#allocation5] sm:$0xff] %vm616_vm0, %v3807_v48 }
  0x33   : > { %545 = vst.msk [vmem:[#allocation2 + $0x68] sm:$0xf] %vm518_vm1, %v3259_v53  ;;  %546 = vst.msk [vmem:[#allocation2 + $0x6c] sm:$0xf] %vm518_vm1, %v3260_v54  ;;  %v3569_v20 = vld [vmem:[#allocation2 + $0x60] sm:$0xff]  }
  0x34   : > { %3353 = vmatpush3.bf16.xpose.msra.mxu0 %v964_v23  ;;  %547 = vst.msk [vmem:[#allocation2 + $0x70] sm:$0xf] %vm518_vm1, %v3261_v59 }
  0x35   : > { %3509 = vmatprep.subr.msk.bf16.mxu0 %vm616_vm0, %v3551_v26  ;;  %v3805_v26 = vmov -inf   ;;  %584 = vst.msk [vmem:[#allocation4] sm:$0xff] %vm551_vm2, %v3807_v48  ;;  %585 = vst.msk [vmem:[#allocation4 + $0x8] sm:$0xff] %vm551_vm2, %v3807_v48 }
  0x36   : > { %v3572_v23 = vld [vmem:[#allocation2 + $0x78] sm:$0xff]   ;;  %552 = vst.msk [vmem:[#allocation3] sm:$0xff] %vm551_vm2, %v3805_v26  ;;  %553 = vst.msk [vmem:[#allocation3 + $0x8] sm:$0xff] %vm551_vm2, %v3805_v26 }
  0x37   : > { %554 = vst.msk [vmem:[#allocation3 + $0x10] sm:$0xff] %vm551_vm2, %v3805_v26  ;;  %555 = vst.msk [vmem:[#allocation3 + $0x18] sm:$0xff] %vm551_vm2, %v3805_v26 }
  0x38   : > { %556 = vst.msk [vmem:[#allocation3 + $0x20] sm:$0xff] %vm551_vm2, %v3805_v26  ;;  %557 = vst.msk [vmem:[#allocation3 + $0x28] sm:$0xff] %vm551_vm2, %v3805_v26 }
  0x39   : > { %558 = vst.msk [vmem:[#allocation3 + $0x30] sm:$0xff] %vm551_vm2, %v3805_v26  ;;  %559 = vst.msk [vmem:[#allocation3 + $0x38] sm:$0xff] %vm551_vm2, %v3805_v26 }
  0x3a   : > { %v3570_v21 = vld [vmem:[#allocation2 + $0x68] sm:$0xff]   ;;  %560 = vst.msk [vmem:[#allocation3 + $0x40] sm:$0xff] %vm551_vm2, %v3805_v26  ;;  %561 = vst.msk [vmem:[#allocation3 + $0x48] sm:$0xff] %vm551_vm2, %v3805_v26 }
  0x3b   : > { %v3571_v22 = vld [vmem:[#allocation2 + $0x70] sm:$0xff]   ;;  %562 = vst.msk [vmem:[#allocation3 + $0x50] sm:$0xff] %vm551_vm2, %v3805_v26  ;;  %563 = vst.msk [vmem:[#allocation3 + $0x58] sm:$0xff] %vm551_vm2, %v3805_v26 }
  0x3c   : > { %3355 = vmatpush3.bf16.xpose.msra.mxu0 %v961_v57  ;;  %564 = vst.msk [vmem:[#allocation3 + $0x60] sm:$0xff] %vm551_vm2, %v3805_v26  ;;  %565 = vst.msk [vmem:[#allocation3 + $0x68] sm:$0xff] %vm551_vm2, %v3805_v26 }
  0x3d   : > { %3510 = vmatprep.subr.msk.bf16.mxu0 %vm616_vm0, %v3553_v58  ;;  %566 = vst.msk [vmem:[#allocation3 + $0x70] sm:$0xff] %vm551_vm2, %v3805_v26  ;;  %567 = vst.msk [vmem:[#allocation3 + $0x78] sm:$0xff] %vm551_vm2, %v3805_v26 }
  0x3e   : > { %568 = vst.msk [vmem:[#allocation3 + $0x80] sm:$0xff] %vm551_vm2, %v3805_v26  ;;  %569 = vst.msk [vmem:[#allocation3 + $0x88] sm:$0xff] %vm551_vm2, %v3805_v26 }
  0x3f   : > { %570 = vst.msk [vmem:[#allocation3 + $0x90] sm:$0xff] %vm551_vm2, %v3805_v26  ;;  %571 = vst.msk [vmem:[#allocation3 + $0x98] sm:$0xff] %vm551_vm2, %v3805_v26 }
  0x40   : > { %572 = vst.msk [vmem:[#allocation3 + $0xa0] sm:$0xff] %vm551_vm2, %v3805_v26  ;;  %573 = vst.msk [vmem:[#allocation3 + $0xa8] sm:$0xff] %vm551_vm2, %v3805_v26 }
  0x41   : > { %574 = vst.msk [vmem:[#allocation3 + $0xb0] sm:$0xff] %vm551_vm2, %v3805_v26  ;;  %575 = vst.msk [vmem:[#allocation3 + $0xb8] sm:$0xff] %vm551_vm2, %v3805_v26 }
  0x42   : > { %576 = vst.msk [vmem:[#allocation3 + $0xc0] sm:$0xff] %vm551_vm2, %v3805_v26  ;;  %577 = vst.msk [vmem:[#allocation3 + $0xc8] sm:$0xff] %vm551_vm2, %v3805_v26 }
  0x43   : > { %578 = vst.msk [vmem:[#allocation3 + $0xd0] sm:$0xff] %vm551_vm2, %v3805_v26  ;;  %579 = vst.msk [vmem:[#allocation3 + $0xd8] sm:$0xff] %vm551_vm2, %v3805_v26 }
  0x44   : > { %3357 = vmatpush3.bf16.xpose.msra.mxu0 %v958_v5  ;;  %580 = vst.msk [vmem:[#allocation3 + $0xe0] sm:$0xff] %vm551_vm2, %v3805_v26  ;;  %581 = vst.msk [vmem:[#allocation3 + $0xe8] sm:$0xff] %vm551_vm2, %v3805_v26 }
  0x45   : > { %3511 = vmatprep.subr.msk.bf16.mxu0 %vm616_vm0, %v3555_v6  ;;  %582 = vst.msk [vmem:[#allocation3 + $0xf0] sm:$0xff] %vm551_vm2, %v3805_v26  ;;  %583 = vst.msk [vmem:[#allocation3 + $0xf8] sm:$0xff] %vm551_vm2, %v3805_v26 }
  0x46   : > { %586 = vst.msk [vmem:[#allocation4 + $0x10] sm:$0xff] %vm551_vm2, %v3807_v48  ;;  %587 = vst.msk [vmem:[#allocation4 + $0x18] sm:$0xff] %vm551_vm2, %v3807_v48 }
  0x47   : > { %588 = vst.msk [vmem:[#allocation4 + $0x20] sm:$0xff] %vm551_vm2, %v3807_v48  ;;  %589 = vst.msk [vmem:[#allocation4 + $0x28] sm:$0xff] %vm551_vm2, %v3807_v48 }
  0x48   : > { %590 = vst.msk [vmem:[#allocation4 + $0x30] sm:$0xff] %vm551_vm2, %v3807_v48  ;;  %591 = vst.msk [vmem:[#allocation4 + $0x38] sm:$0xff] %vm551_vm2, %v3807_v48 }
  0x49   : > { %592 = vst.msk [vmem:[#allocation4 + $0x40] sm:$0xff] %vm551_vm2, %v3807_v48  ;;  %593 = vst.msk [vmem:[#allocation4 + $0x48] sm:$0xff] %vm551_vm2, %v3807_v48 }
  0x4a   : > { %594 = vst.msk [vmem:[#allocation4 + $0x50] sm:$0xff] %vm551_vm2, %v3807_v48  ;;  %595 = vst.msk [vmem:[#allocation4 + $0x58] sm:$0xff] %vm551_vm2, %v3807_v48 }
  0x4b   : > { %596 = vst.msk [vmem:[#allocation4 + $0x60] sm:$0xff] %vm551_vm2, %v3807_v48  ;;  %597 = vst.msk [vmem:[#allocation4 + $0x68] sm:$0xff] %vm551_vm2, %v3807_v48 }
  0x4c   : > { %3359 = vmatpush3.bf16.xpose.msra.mxu0 %v955_v8  ;;  %598 = vst.msk [vmem:[#allocation4 + $0x70] sm:$0xff] %vm551_vm2, %v3807_v48  ;;  %599 = vst.msk [vmem:[#allocation4 + $0x78] sm:$0xff] %vm551_vm2, %v3807_v48 }
  0x4d   : > { %600 = vst.msk [vmem:[#allocation4 + $0x80] sm:$0xff] %vm551_vm2, %v3807_v48  ;;  %601 = vst.msk [vmem:[#allocation4 + $0x88] sm:$0xff] %vm551_vm2, %v3807_v48 }
  0x4e   : > { %602 = vst.msk [vmem:[#allocation4 + $0x90] sm:$0xff] %vm551_vm2, %v3807_v48  ;;  %603 = vst.msk [vmem:[#allocation4 + $0x98] sm:$0xff] %vm551_vm2, %v3807_v48 }
  0x4f   : > { %604 = vst.msk [vmem:[#allocation4 + $0xa0] sm:$0xff] %vm551_vm2, %v3807_v48  ;;  %605 = vst.msk [vmem:[#allocation4 + $0xa8] sm:$0xff] %vm551_vm2, %v3807_v48 }
  0x50   : > { %606 = vst.msk [vmem:[#allocation4 + $0xb0] sm:$0xff] %vm551_vm2, %v3807_v48  ;;  %607 = vst.msk [vmem:[#allocation4 + $0xb8] sm:$0xff] %vm551_vm2, %v3807_v48 }
  0x51   : > { %608 = vst.msk [vmem:[#allocation4 + $0xc0] sm:$0xff] %vm551_vm2, %v3807_v48  ;;  %609 = vst.msk [vmem:[#allocation4 + $0xc8] sm:$0xff] %vm551_vm2, %v3807_v48 }
  0x52   : > { %610 = vst.msk [vmem:[#allocation4 + $0xd0] sm:$0xff] %vm551_vm2, %v3807_v48  ;;  %611 = vst.msk [vmem:[#allocation4 + $0xd8] sm:$0xff] %vm551_vm2, %v3807_v48 }
  0x53   : > { %3361 = vmatmul.mubr.msk.bf16.vlgmr.msra.gmra.mxu0 %vm616_vm0, %v3907_v15  ;;  %v3564_v15 = vld [vmem:[#allocation2 + $0x38] sm:$0xff]   ;;  %612 = vst.msk [vmem:[#allocation4 + $0xe0] sm:$0xff] %vm551_vm2, %v3807_v48  ;;  %613 = vst.msk [vmem:[#allocation4 + $0xe8] sm:$0xff] %vm551_vm2, %v3807_v48 }
  0x54   : > { %3362 = vmatprep.mubr.msk.bf16.mxu0 %vm616_vm0, %v3558_v9  ;;  %614 = vst.msk [vmem:[#allocation4 + $0xf0] sm:$0xff] %vm551_vm2, %v3807_v48  ;;  %615 = vst.msk [vmem:[#allocation4 + $0xf8] sm:$0xff] %vm551_vm2, %v3807_v48 }
  0x55   : > { %619 = vst.msk [vmem:[#allocation5 + $0x10] sm:$0xff] %vm616_vm0, %v3807_v48  ;;  %620 = vst.msk [vmem:[#allocation5 + $0x18] sm:$0xff] %vm616_vm0, %v3807_v48 }
  0x56   : > { %621 = vst.msk [vmem:[#allocation5 + $0x20] sm:$0xff] %vm616_vm0, %v3807_v48  ;;  %622 = vst.msk [vmem:[#allocation5 + $0x28] sm:$0xff] %vm616_vm0, %v3807_v48 }
  0x57   : > { %623 = vst.msk [vmem:[#allocation5 + $0x30] sm:$0xff] %vm616_vm0, %v3807_v48  ;;  %624 = vst.msk [vmem:[#allocation5 + $0x38] sm:$0xff] %vm616_vm0, %v3807_v48 }
  0x58   : > { %625 = vst.msk [vmem:[#allocation5 + $0x40] sm:$0xff] %vm616_vm0, %v3807_v48  ;;  %626 = vst.msk [vmem:[#allocation5 + $0x48] sm:$0xff] %vm616_vm0, %v3807_v48 }
  0x59   : > { %627 = vst.msk [vmem:[#allocation5 + $0x50] sm:$0xff] %vm616_vm0, %v3807_v48  ;;  %628 = vst.msk [vmem:[#allocation5 + $0x58] sm:$0xff] %vm616_vm0, %v3807_v48 }
  0x5a   : > { %629 = vst.msk [vmem:[#allocation5 + $0x60] sm:$0xff] %vm616_vm0, %v3807_v48  ;;  %630 = vst.msk [vmem:[#allocation5 + $0x68] sm:$0xff] %vm616_vm0, %v3807_v48 }
  0x5b   : > { %3363 = vmatmul.mubr.msk.bf16.gmra.mxu0 %vm616_vm0, %v3558_v9  ;;  %631 = vst.msk [vmem:[#allocation5 + $0x70] sm:$0xff] %vm616_vm0, %v3807_v48  ;;  %632 = vst.msk [vmem:[#allocation5 + $0x78] sm:$0xff] %vm616_vm0, %v3807_v48 }
  0x5c   : > { %3364 = vmatprep.mubr.msk.bf16.mxu0 %vm616_vm0, %v3559_v10  ;;  %633 = vst.msk [vmem:[#allocation5 + $0x80] sm:$0xff] %vm616_vm0, %v3807_v48  ;;  %634 = vst.msk [vmem:[#allocation5 + $0x88] sm:$0xff] %vm616_vm0, %v3807_v48 }
  0x5d   : > { %635 = vst.msk [vmem:[#allocation5 + $0x90] sm:$0xff] %vm616_vm0, %v3807_v48  ;;  %636 = vst.msk [vmem:[#allocation5 + $0x98] sm:$0xff] %vm616_vm0, %v3807_v48 }
  0x5e   : > { %637 = vst.msk [vmem:[#allocation5 + $0xa0] sm:$0xff] %vm616_vm0, %v3807_v48  ;;  %638 = vst.msk [vmem:[#allocation5 + $0xa8] sm:$0xff] %vm616_vm0, %v3807_v48 }
  0x5f   : > { %639 = vst.msk [vmem:[#allocation5 + $0xb0] sm:$0xff] %vm616_vm0, %v3807_v48  ;;  %640 = vst.msk [vmem:[#allocation5 + $0xb8] sm:$0xff] %vm616_vm0, %v3807_v48 }
  0x60   : > { %641 = vst.msk [vmem:[#allocation5 + $0xc0] sm:$0xff] %vm616_vm0, %v3807_v48  ;;  %642 = vst.msk [vmem:[#allocation5 + $0xc8] sm:$0xff] %vm616_vm0, %v3807_v48 }
  0x61   : > { %643 = vst.msk [vmem:[#allocation5 + $0xd0] sm:$0xff] %vm616_vm0, %v3807_v48  ;;  %644 = vst.msk [vmem:[#allocation5 + $0xd8] sm:$0xff] %vm616_vm0, %v3807_v48 }
  0x62   : > { %645 = vst.msk [vmem:[#allocation5 + $0xe0] sm:$0xff] %vm616_vm0, %v3807_v48  ;;  %646 = vst.msk [vmem:[#allocation5 + $0xe8] sm:$0xff] %vm616_vm0, %v3807_v48 }
  0x63   : > { %3365 = vmatmul.mubr.msk.bf16.gmra.mxu0 %vm616_vm0, %v3559_v10  ;;  %647 = vst.msk [vmem:[#allocation5 + $0xf0] sm:$0xff] %vm616_vm0, %v3807_v48  ;;  %648 = vst.msk [vmem:[#allocation5 + $0xf8] sm:$0xff] %vm616_vm0, %v3807_v48 }
  0x64   : > { %3366 = vmatprep.mubr.msk.bf16.mxu0 %vm616_vm0, %v3560_v11 }
  0x6b   : > { %3367 = vmatmul.mubr.msk.bf16.gmra.mxu0 %vm616_vm0, %v3560_v11 }
  0x6c   : > { %3368 = vmatprep.mubr.msk.bf16.mxu0 %vm616_vm0, %v3561_v12 }
  0x73   : > { %3369 = vmatmul.mubr.msk.bf16.gmra.mxu0 %vm616_vm0, %v3561_v12 }
  0x74   : > { %3370 = vmatprep.mubr.msk.bf16.mxu0 %vm616_vm0, %v3562_v13 }
  0x7b   : > { %3371 = vmatmul.mubr.msk.bf16.gmra.mxu0 %vm616_vm0, %v3562_v13 }
  0x7c   : > { %3372 = vmatprep.mubr.msk.bf16.mxu0 %vm616_vm0, %v3563_v14 }
  0x83   : > { %3373 = vmatmul.mubr.msk.bf16.gmra.mxu0 %vm616_vm0, %v3563_v14 }
  0x84   : > { %3374 = vmatprep.mubr.msk.bf16.mxu0 %vm616_vm0, %v3564_v15 }
  0x8b   : > { %3375 = vmatmul.mubr.msk.bf16.gmra.mxu0 %vm616_vm0, %v3564_v15 }
  0x8c   : > { %3376 = vmatprep.mubr.msk.bf16.mxu0 %vm616_vm0, %v3565_v16 }
  0x93   : > { %3377 = vmatmul.mubr.msk.bf16.gmra.mxu0 %vm616_vm0, %v3565_v16 }
  0x94   : > { %3378 = vmatprep.mubr.msk.bf16.mxu0 %vm616_vm0, %v3566_v17 }
  0x9b   : > { %3379 = vmatmul.mubr.msk.bf16.gmra.mxu0 %vm616_vm0, %v3566_v17 }
  0x9c   : > { %3380 = vmatprep.mubr.msk.bf16.mxu0 %vm616_vm0, %v3567_v18 }
  0xa3   : > { %3381 = vmatmul.mubr.msk.bf16.gmra.mxu0 %vm616_vm0, %v3567_v18 }
  0xa4   : > { %3382 = vmatprep.mubr.msk.bf16.mxu0 %vm616_vm0, %v3568_v19 }
  0xab   : > { %3383 = vmatmul.mubr.msk.bf16.gmra.mxu0 %vm616_vm0, %v3568_v19 }
  0xac   : > { %3384 = vmatprep.mubr.msk.bf16.mxu0 %vm616_vm0, %v3569_v20 }
  0xb3   : > { %3385 = vmatmul.mubr.msk.bf16.gmra.mxu0 %vm616_vm0, %v3569_v20 }
  0xb4   : > { %3386 = vmatprep.mubr.msk.bf16.mxu0 %vm616_vm0, %v3570_v21 }
  0xbb   : > { %3387 = vmatmul.mubr.msk.bf16.gmra.mxu0 %vm616_vm0, %v3570_v21 }
  0xbc   : > { %3388 = vmatprep.mubr.msk.bf16.mxu0 %vm616_vm0, %v3571_v22 }
  0xc3   : > { %3389 = vmatmul.mubr.msk.bf16.gmra.mxu0 %vm616_vm0, %v3571_v22 }
  0xc4   : > { %3390 = vmatprep.mubr.msk.bf16.mxu0 %vm616_vm0, %v3572_v23 }
  0xcb   : > { %3391 = vmatmul.mubr.msk.bf16.gmra.mxu0 %vm616_vm0, %v3572_v23 }
 0x113   : > { %v3979_v24 = vpop.f32.mrf.mxu0 }
 0x115   : > { %v3981_v25 = vpop.f32.mrf.mxu0 }
 0x116   : > { %v1227_v27 = vmax.f32 %v3979_v24, %v3981_v25 }
 0x117   : > { %v4017_v28 = vpop.f32.mrf.mxu0 }
 0x118   : > { %1228 = vmax.xlane.f32.xlu0 %v1227_v27 }
 0x119   : > { %v4019_v29 = vpop.f32.mrf.mxu0 }
 0x11a   : > { %v1230_v30 = vmax.f32 %v4017_v28, %v4019_v29 }
 0x11b   : > { %v4023_v31 = vpop.f32.mrf.mxu0 }
 0x11c   : > { %1231 = vmax.xlane.f32.xlu0 %v1230_v30 }
 0x11d   : > { %v4025_v32 = vpop.f32.mrf.mxu0 }
 0x11e   : > { %v1233_v33 = vmax.f32 %v4023_v31, %v4025_v32 }
 0x11f   : > { %v4029_v34 = vpop.f32.mrf.mxu0 }
 0x120   : > { %1234 = vmax.xlane.f32.xlu1 %v1233_v33 }
 0x121   : > { %v4031_v35 = vpop.f32.mrf.mxu0 }
 0x122   : > { %v1236_v36 = vmax.f32 %v4029_v34, %v4031_v35 }
 0x123   : > { %v4035_v37 = vpop.f32.mrf.mxu0 }
 0x124   : > { %5352 = vst [vmem:[#allocation6_spill] sm:$0xff] %v4035_v37  ;;  %1237 = vmax.xlane.f32.xlu1 %v1236_v36 }
 0x125   : > { %v4037_v38 = vpop.f32.mrf.mxu0 }
 0x126   : > { %5353 = vst [vmem:[#allocation7_spill] sm:$0xff] %v4037_v38  ;;  %v1239_v40 = vmax.f32 %v4035_v37, %v4037_v38 }
 0x127   : > { %v4041_v41 = vpop.f32.mrf.mxu0 }
 0x128   : > { %5354 = vst [vmem:[#allocation8_spill] sm:$0xff] %v4041_v41  ;;  %1240 = vmax.xlane.f32.xlu0 %v1239_v40 }
 0x129   : > { %v4043_v42 = vpop.f32.mrf.mxu0 }
 0x12a   : > { %5355 = vst [vmem:[#allocation9_spill] sm:$0xff] %v4043_v42  ;;  %v1242_v43 = vmax.f32 %v4041_v41, %v4043_v42  ;;  %v4590_v42 = vld [vmem:[#allocation3 + $0xc8] sm:$0xff] }
 0x12b   : > { %v4047_v44 = vpop.f32.mrf.mxu0 }
 0x12c   : > { %5356 = vst [vmem:[#allocation10_spill] sm:$0xff] %v4047_v44  ;;  %1243 = vmax.xlane.f32.xlu1 %v1242_v43 }
 0x12d   : > { %v4049_v45 = vpop.f32.mrf.mxu0 }
 0x12e   : > { %5357 = vst [vmem:[#allocation11_spill] sm:$0xff] %v4049_v45  ;;  %v1245_v46 = vmax.f32 %v4047_v44, %v4049_v45  ;;  %v4582_v45 = vld [vmem:[#allocation3 + $0xc0] sm:$0xff] }
 0x12f   : > { %v4053_v47 = vpop.f32.mrf.mxu0  ;;  %5410 = vst [vmem:[#allocation64_spill] sm:$0xff] %v4582_v45 }
 0x130   : > { %5358 = vst [vmem:[#allocation12_spill] sm:$0xff] %v4053_v47  ;;  %1246 = vmax.xlane.f32.xlu0 %v1245_v46 }
 0x131   : > { %v4183_v49 = vpop.f32.mrf.mxu0 }
 0x132   : > { %5359 = vst [vmem:[#allocation13_spill] sm:$0xff] %v4183_v49  ;;  %v1248_v50 = vmax.f32 %v4053_v47, %v4183_v49  ;;  %v4574_v49 = vld [vmem:[#allocation3 + $0xb8] sm:$0xff] }
 0x133   : > { %v4187_v51 = vpop.f32.mrf.mxu0  ;;  %5408 = vst [vmem:[#allocation62_spill] sm:$0xff] %v4574_v49 }
 0x134   : > { %5360 = vst [vmem:[#allocation14_spill] sm:$0xff] %v4187_v51  ;;  %1249 = vmax.xlane.f32.xlu1 %v1248_v50 }
 0x135   : > { %v4189_v52 = vpop.f32.mrf.mxu0 }
 0x136   : > { %5361 = vst [vmem:[#allocation15_spill] sm:$0xff] %v4189_v52  ;;  %v1251_v53 = vmax.f32 %v4187_v51, %v4189_v52 }
 0x137   : > { %v4193_v54 = vpop.f32.mrf.mxu0 }
 0x138   : > { %5362 = vst [vmem:[#allocation16_spill] sm:$0xff] %v4193_v54  ;;  %1252 = vmax.xlane.f32.xlu0 %v1251_v53 }
 0x139   : > { %v4195_v55 = vpop.f32.mrf.mxu0 }
 0x13a   : > { %5363 = vst [vmem:[#allocation17_spill] sm:$0xff] %v4195_v55  ;;  %v1254_v56 = vmax.f32 %v4193_v54, %v4195_v55  ;;  %v4558_v54 = vld [vmem:[#allocation3 + $0xa8] sm:$0xff] }
 0x13b   : > { %v4199_v57 = vpop.f32.mrf.mxu0 }
 0x13c   : > { %5364 = vst [vmem:[#allocation18_spill] sm:$0xff] %v4199_v57  ;;  %1255 = vmax.xlane.f32.xlu1 %v1254_v56 }
 0x13d   : > { %v4201_v58 = vpop.f32.mrf.mxu0 }
 0x13e   : > { %5365 = vst [vmem:[#allocation19_spill] sm:$0xff] %v4201_v58  ;;  %v1257_v59 = vmax.f32 %v4199_v57, %v4201_v58  ;;  %v4548_v57 = vld [vmem:[#allocation3 + $0xa0] sm:$0xff] }
 0x13f   : > { %v4205_v60 = vpop.f32.mrf.mxu0 }
 0x140   : > { %5366 = vst [vmem:[#allocation20_spill] sm:$0xff] %v4205_v60  ;;  %1258 = vmax.xlane.f32.xlu0 %v1257_v59 }
 0x141   : > { %v4207_v61 = vpop.f32.mrf.mxu0 }
 0x142   : > { %5367 = vst [vmem:[#allocation21_spill] sm:$0xff] %v4207_v61  ;;  %v1260_v62 = vmax.f32 %v4205_v60, %v4207_v61  ;;  %v4538_v60 = vld [vmem:[#allocation3 + $0x98] sm:$0xff] }
 0x143   : > { %v4211_v63 = vpop.f32.mrf.mxu0 }
 0x144   : > { %5368 = vst [vmem:[#allocation22_spill] sm:$0xff] %v4211_v63  ;;  %1261 = vmax.xlane.f32.xlu1 %v1260_v62 }
 0x145   : > { %v4213_v0 = vpop.f32.mrf.mxu0 }
 0x146   : > { %5369 = vst [vmem:[#allocation23_spill] sm:$0xff] %v4213_v0  ;;  %v1263_v1 = vmax.f32 %v4211_v63, %v4213_v0  ;;  %v4528_v63 = vld [vmem:[#allocation3 + $0x90] sm:$0xff] }
 0x147   : > { %v4217_v2 = vpop.f32.mrf.mxu0 }
 0x148   : > { %5370 = vst [vmem:[#allocation24_spill] sm:$0xff] %v4217_v2  ;;  %1264 = vmax.xlane.f32.xlu0 %v1263_v1 }
 0x149   : > { %v4219_v3 = vpop.f32.mrf.mxu0 }
 0x14a   : > { %5371 = vst [vmem:[#allocation25_spill] sm:$0xff] %v4219_v3  ;;  %v1266_v4 = vmax.f32 %v4217_v2, %v4219_v3  ;;  %v4518_v2 = vld [vmem:[#allocation3 + $0x88] sm:$0xff] }
 0x14b   : > { %v4223_v5 = vpop.f32.mrf.mxu0 }
 0x14c   : > { %5372 = vst [vmem:[#allocation26_spill] sm:$0xff] %v4223_v5  ;;  %1267 = vmax.xlane.f32.xlu1 %v1266_v4 }
 0x14d   : > { %v4225_v6 = vpop.f32.mrf.mxu0 }
 0x14e   : > { %5373 = vst [vmem:[#allocation27_spill] sm:$0xff] %v4225_v6  ;;  %v1269_v7 = vmax.f32 %v4223_v5, %v4225_v6  ;;  %v4508_v5 = vld [vmem:[#allocation3 + $0x80] sm:$0xff] }
 0x14f   : > { %v4229_v8 = vpop.f32.mrf.mxu0 }
 0x150   : > { %5374 = vst [vmem:[#allocation28_spill] sm:$0xff] %v4229_v8  ;;  %1270 = vmax.xlane.f32.xlu0 %v1269_v7 }
 0x151   : > { %v4231_v9 = vpop.f32.mrf.mxu0 }
 0x152   : > { %5375 = vst [vmem:[#allocation29_spill] sm:$0xff] %v4231_v9  ;;  %v1272_v10 = vmax.f32 %v4229_v8, %v4231_v9  ;;  %v4498_v8 = vld [vmem:[#allocation3 + $0x78] sm:$0xff] }
 0x153   : > { %v4235_v11 = vpop.f32.mrf.mxu0 }
 0x154   : > { %5376 = vst [vmem:[#allocation30_spill] sm:$0xff] %v4235_v11  ;;  %1273 = vmax.xlane.f32.xlu1 %v1272_v10 }
 0x155   : > { %v4237_v12 = vpop.f32.mrf.mxu0 }
 0x156   : > { %5377 = vst [vmem:[#allocation31_spill] sm:$0xff] %v4237_v12  ;;  %v1275_v13 = vmax.f32 %v4235_v11, %v4237_v12  ;;  %v4488_v11 = vld [vmem:[#allocation3 + $0x70] sm:$0xff] }
 0x157   : > { %v4241_v14 = vpop.f32.mrf.mxu0 }
 0x158   : > { %5378 = vst [vmem:[#allocation32_spill] sm:$0xff] %v4241_v14  ;;  %1276 = vmax.xlane.f32.xlu0 %v1275_v13 }
 0x159   : > { %v4243_v15 = vpop.f32.mrf.mxu0 }
 0x15a   : > { %5379 = vst [vmem:[#allocation33_spill] sm:$0xff] %v4243_v15  ;;  %v1278_v16 = vmax.f32 %v4241_v14, %v4243_v15  ;;  %v4478_v14 = vld [vmem:[#allocation3 + $0x68] sm:$0xff] }
 0x15b   : > { %v4247_v17 = vpop.f32.mrf.mxu0 }
 0x15c   : > { %5380 = vst [vmem:[#allocation34_spill] sm:$0xff] %v4247_v17  ;;  %1279 = vmax.xlane.f32.xlu1 %v1278_v16 }
 0x15d   : > { %v4249_v18 = vpop.f32.mrf.mxu0 }
 0x15e   : > { %5381 = vst [vmem:[#allocation35_spill] sm:$0xff] %v4249_v18  ;;  %v1281_v19 = vmax.f32 %v4247_v17, %v4249_v18  ;;  %v4468_v17 = vld [vmem:[#allocation3 + $0x60] sm:$0xff] }
 0x15f   : > { %v4253_v20 = vpop.f32.mrf.mxu0 }
 0x160   : > { %5382 = vst [vmem:[#allocation36_spill] sm:$0xff] %v4253_v20  ;;  %1282 = vmax.xlane.f32.xlu0 %v1281_v19 }
 0x161   : > { %v4255_v21 = vpop.f32.mrf.mxu0 }
 0x162   : > { %5383 = vst [vmem:[#allocation37_spill] sm:$0xff] %v4255_v21  ;;  %v1284_v22 = vmax.f32 %v4253_v20, %v4255_v21  ;;  %v4458_v20 = vld [vmem:[#allocation3 + $0x58] sm:$0xff] }
 0x163   : > { %v4259_v23 = vpop.f32.mrf.mxu0 }
 0x164   : > { %5384 = vst [vmem:[#allocation38_spill] sm:$0xff] %v4259_v23  ;;  %1285 = vmax.xlane.f32.xlu1 %v1284_v22 }
 0x165   : > { %v4261_v26 = vpop.f32.mrf.mxu0 }
 0x166   : > { %5385 = vst [vmem:[#allocation39_spill] sm:$0xff] %v4261_v26  ;;  %v1287_v27 = vmax.f32 %v4259_v23, %v4261_v26  ;;  %v4448_v23 = vld [vmem:[#allocation3 + $0x50] sm:$0xff] }
 0x167   : > { %v4265_v30 = vpop.f32.mrf.mxu0 }
 0x168   : > { %5386 = vst [vmem:[#allocation40_spill] sm:$0xff] %v4265_v30  ;;  %1288 = vmax.xlane.f32.xlu0 %v1287_v27 }
 0x169   : > { %v4267_v33 = vpop.f32.mrf.mxu0 }
 0x16a   : > { %5387 = vst [vmem:[#allocation41_spill] sm:$0xff] %v4267_v33  ;;  %v1290_v36 = vmax.f32 %v4265_v30, %v4267_v33  ;;  %v4428_v33 = vld [vmem:[#allocation3 + $0x40] sm:$0xff]  ;;  %v4438_v30 = vld [vmem:[#allocation3 + $0x48] sm:$0xff] }
 0x16b   : > { %v4271_v39 = vpop.f32.mrf.mxu0 }
 0x16c   : > { %5388 = vst [vmem:[#allocation42_spill] sm:$0xff] %v4271_v39  ;;  %1291 = vmax.xlane.f32.xlu1 %v1290_v36 }
 0x16d   : > { %v4273_v40 = vpop.f32.mrf.mxu0 }
 0x16e   : > { %5389 = vst [vmem:[#allocation43_spill] sm:$0xff] %v4273_v40  ;;  %v1293_v43 = vmax.f32 %v4271_v39, %v4273_v40  ;;  %v4408_v40 = vld [vmem:[#allocation3 + $0x30] sm:$0xff]  ;;  %v4418_v39 = vld [vmem:[#allocation3 + $0x38] sm:$0xff] }
 0x16f   : > { %v4277_v46 = vpop.f32.mrf.mxu0 }
 0x170   : > { %5390 = vst [vmem:[#allocation44_spill] sm:$0xff] %v4277_v46  ;;  %1294 = vmax.xlane.f32.xlu0 %v1293_v43 }
 0x171   : > { %v4279_v48 = vpop.f32.mrf.mxu0 }
 0x172   : > { %5391 = vst [vmem:[#allocation45_spill] sm:$0xff] %v4279_v48  ;;  %v1296_v50 = vmax.f32 %v4277_v46, %v4279_v48  ;;  %v4396_v48 = vld [vmem:[#allocation3 + $0x28] sm:$0xff] }
 0x173   : > { %v4283_v53 = vpop.f32.mrf.mxu0 }
 0x174   : > { %5392 = vst [vmem:[#allocation46_spill] sm:$0xff] %v4283_v53  ;;  %1297 = vmax.xlane.f32.xlu1 %v1296_v50 }
 0x175   : > { %v4285_v56 = vpop.f32.mrf.mxu0 }
 0x176   : > { %5393 = vst [vmem:[#allocation47_spill] sm:$0xff] %v4285_v56  ;;  %v1299_v59 = vmax.f32 %v4283_v53, %v4285_v56  ;;  %v4384_v56 = vld [vmem:[#allocation3 + $0x20] sm:$0xff]  ;;  %v3586_v53 = vld [vmem:[%s4335_s25 + $0x8] sm:$0xff]  }
 0x177   : > { %v4289_v62 = vpop.f32.mrf.mxu0 }
 0x178   : > { %5394 = vst [vmem:[#allocation48_spill] sm:$0xff] %v4289_v62  ;;  %1300 = vmax.xlane.f32.xlu0 %v1299_v59 }
 0x179   : > { %v4291_v1 = vpop.f32.mrf.mxu0 }
 0x17a   : > { %5395 = vst [vmem:[#allocation49_spill] sm:$0xff] %v4291_v1  ;;  %v1302_v4 = vmax.f32 %v4289_v62, %v4291_v1  ;;  %v4372_v1 = vld [vmem:[#allocation3 + $0x18] sm:$0xff]  ;;  %v3584_v62 = vld [vmem:[%s4335_s25 + $0x10] sm:$0xff]  }
 0x17b   : > { %v4295_v7 = vpop.f32.mrf.mxu0 }
 0x17c   : > { %5396 = vst [vmem:[#allocation50_spill] sm:$0xff] %v4295_v7  ;;  %1303 = vmax.xlane.f32.xlu1 %v1302_v4 }
 0x17d   : > { %v4297_v10 = vpop.f32.mrf.mxu0 }
 0x17e   : > { %5397 = vst [vmem:[#allocation51_spill] sm:$0xff] %v4297_v10  ;;  %v1305_v13 = vmax.f32 %v4295_v7, %v4297_v10  ;;  %v3580_v10 = vld [vmem:[%s4335_s25 + $0x20] sm:$0xff]   ;;  %v3582_v7 = vld [vmem:[%s4335_s25 + $0x18] sm:$0xff]  }
 0x17f   : > { %v4301_v16 = vpop.f32.mrf.mxu0 }
 0x180   : > { %5398 = vst [vmem:[#allocation52_spill] sm:$0xff] %v4301_v16  ;;  %1306 = vmax.xlane.f32.xlu0 %v1305_v13 }
 0x181   : > { %v4303_v19 = vpop.f32.mrf.mxu0 }
 0x182   : > { %5399 = vst [vmem:[#allocation53_spill] sm:$0xff] %v4303_v19  ;;  %v1308_v22 = vmax.f32 %v4301_v16, %v4303_v19 }
 0x183   : > { %v4307_v27 = vpop.f32.mrf.mxu0 }
 0x184   : > { %5400 = vst [vmem:[#allocation54_spill] sm:$0xff] %v4307_v27  ;;  %1309 = vmax.xlane.f32.xlu1 %v1308_v22 }
 0x185   : > { %v4309_v36 = vpop.f32.mrf.mxu0 }
 0x186   : > { %5401 = vst [vmem:[#allocation55_spill] sm:$0xff] %v4309_v36  ;;  %v1311_v43 = vmax.f32 %v4307_v27, %v4309_v36 }
 0x187   : > { %v4313_v50 = vpop.f32.mrf.mxu0 }
 0x188   : > { %5402 = vst [vmem:[#allocation56_spill] sm:$0xff] %v4313_v50  ;;  %1312 = vmax.xlane.f32.xlu0 %v1311_v43 }
 0x189   : > { %v4315_v59 = vpop.f32.mrf.mxu0 }
 0x18a   : > { %5403 = vst [vmem:[#allocation57_spill] sm:$0xff] %v4315_v59  ;;  %v1314_v4 = vmax.f32 %v4313_v50, %v4315_v59  ;;  %v4344_v59 = vld [vmem:[#allocation3 + $0x8] sm:$0xff] }
 0x18b   : > { %v4319_v13 = vpop.f32.mrf.mxu0  ;;  %v3578_v50 = vld [vmem:[%s4335_s25 + $0x28] sm:$0xff]  }
 0x18c   : > { %5404 = vst [vmem:[#allocation58_spill] sm:$0xff] %v4319_v13  ;;  %1315 = vmax.xlane.f32.xlu1 %v1314_v4  ;;  %v3573_v4 = vld [vmem:[%s4335_s25 + $0x78] sm:$0xff]  }
 0x18d   : > { %v4321_v19 = vpop.f32.mrf.mxu0  ;;  %3392 = vmatprep.subr.bf16.mxu1 %v3573_v4 }
 0x18e   : > { %5405 = vst [vmem:[#allocation59_spill] sm:$0xff] %v4321_v19  ;;  %v1317_v22 = vmax.f32 %v4319_v13, %v4321_v19  ;;  %v3575_v19 = vld [vmem:[%s4335_s25 + $0x70] sm:$0xff]   ;;  %v4340_v13 = vld [vmem:[#allocation3] sm:$0xff] }
 0x18f   : > { %v4325_v16 = vpop.f32.mrf.mxu0 }
 0x190   : > { %5406 = vst [vmem:[#allocation60_spill] sm:$0xff] %v4325_v16  ;;  %1318 = vmax.xlane.f32.xlu0 %v1317_v22  ;;  %v3574_v22 = vld [vmem:[%s4335_s25 + $0x38] sm:$0xff]  }
 0x191   : > { %v4327_v36 = vpop.f32.mrf.mxu0  ;;  %3393 = vmatpush3.bf16.msra.mxu1 %v3574_v22  ;;  %v3579_v22 = vld [vmem:[%s4335_s25 + $0x60] sm:$0xff]  }
 0x192   : > { %5407 = vst [vmem:[#allocation61_spill] sm:$0xff] %v4327_v36  ;;  %v1320_v43 = vmax.f32 %v4325_v16, %v4327_v36  ;;  %3394 = vmatprep.subr.bf16.mxu1 %v3575_v19  ;;  %v3577_v36 = vld [vmem:[%s4335_s25 + $0x68] sm:$0xff]  }
 0x194   : > { %1321 = vmax.xlane.f32.xlu1 %v1320_v43  ;;  %v3576_v43 = vld [vmem:[%s4335_s25 + $0x30] sm:$0xff]  }
 0x195   : > { %3395 = vmatpush3.bf16.msra.mxu1 %v3576_v43 }
 0x196   : > { %3396 = vmatprep.subr.bf16.mxu1 %v3577_v36  ;;  %v3583_v36 = vld [vmem:[%s4335_s25 + $0x50] sm:$0xff]  }
 0x199   : > { %3397 = vmatpush3.bf16.msra.mxu1 %v3578_v50 }
 0x19a   : > { %3398 = vmatprep.subr.bf16.mxu1 %v3579_v22  ;;  %v3585_v22 = vld [vmem:[%s4335_s25 + $0x48] sm:$0xff]  }
 0x19d   : > { %3399 = vmatpush3.bf16.msra.mxu1 %v3580_v10 }
 0x1a1   : > { %v1229_v16 = vpop.xlane.xlu0 %1228 }
 0x1a2   : > { %v4348_v27 = vmax.f32 %v4340_v13, %v1229_v16  ;;  %v4360_v16 = vld [vmem:[#allocation3 + $0x10] sm:$0xff] }
 0x1a4   : > { %2637 = vst.msk [vmem:[#allocation3] sm:$0xff] %vm551_vm2, %v4348_v27 }
 0x1a5   : > { %v1232_v19 = vpop.xlane.xlu0 %1231 }
 0x1a6   : > { %v4356_v43 = vmax.f32 %v4344_v59, %v1232_v19  ;;  %1453 = vperm.xlu0 %3539, %v4348_v27   ;;  %v3581_v19 = vld [vmem:[%s4335_s25 + $0x58] sm:$0xff]  }
 0x1a7   : > { %3400 = vmatprep.subr.bf16.mxu1 %v3581_v19 }
 0x1a8   : > { %2638 = vst.msk [vmem:[#allocation3 + $0x8] sm:$0xff] %vm551_vm2, %v4356_v43  ;;  %1458 = vperm.xlu1 %3540, %v4356_v43   ;;  %3401 = vmatpush3.bf16.msra.mxu1 %v3582_v7 }
 0x1a9   : > { %v1235_v50 = vpop.xlane.xlu1 %1234  ;;  %3402 = vmatprep.subr.bf16.mxu1 %v3583_v36 }
 0x1aa   : > { %v4369_v4 = vmax.f32 %v4360_v16, %v1235_v50 }
 0x1ac   : > { %2639 = vst.msk [vmem:[#allocation3 + $0x10] sm:$0xff] %vm551_vm2, %v4369_v4  ;;  %1463 = vperm.xlu1 %3540, %v4369_v4   ;;  %3403 = vmatpush3.bf16.msra.mxu1 %v3584_v62  ;;  %v3587_v62 = vld [vmem:[%s4335_s25 + $0x40] sm:$0xff]  }
 0x1ad   : > { %v1238_v10 = vpop.xlane.xlu1 %1237  ;;  %3404 = vmatprep.subr.bf16.mxu1 %v3585_v22 }
 0x1ae   : > { %v4381_v50 = vmax.f32 %v4372_v1, %v1238_v10 }
 0x1b0   : > { %2640 = vst.msk [vmem:[#allocation3 + $0x18] sm:$0xff] %vm551_vm2, %v4381_v50  ;;  %1468 = vperm.xlu1 %3540, %v4381_v50   ;;  %3405 = vmatpush3.bf16.msra.mxu1 %v3586_v53 }
 0x1b1   : > { %v1241_v7 = vpop.xlane.xlu0 %1240  ;;  %3406 = vmatprep.subr.bf16.mxu1 %v3587_v62 }
 0x1b2   : > { %v4393_v10 = vmax.f32 %v4384_v56, %v1241_v7  ;;  %v3588_v7 = vld [vmem:[%s4335_s25] sm:$0xff]  }
 0x1b4   : > { %2641 = vst.msk [vmem:[#allocation3 + $0x20] sm:$0xff] %vm551_vm2, %v4393_v10  ;;  %1473 = vperm.xlu1 %3540, %v4393_v10   ;;  %3407 = vmatpush3.bf16.msra.mxu1 %v3588_v7 }
 0x1b5   : > { %v1244_v19 = vpop.xlane.xlu1 %1243 }
 0x1b6   : > { %v4405_v46 = vmax.f32 %v4396_v48, %v1244_v19 }
 0x1b8   : > { %2642 = vst.msk [vmem:[#allocation3 + $0x28] sm:$0xff] %vm551_vm2, %v4405_v46  ;;  %1478 = vperm.xlu1 %3540, %v4405_v46  }
 0x1b9   : > { %v1247_v36 = vpop.xlane.xlu0 %1246 }
 0x1ba   : > { %v4416_v53 = vmax.f32 %v4408_v40, %v1247_v36 }
 0x1bc   : > { %2643 = vst.msk [vmem:[#allocation3 + $0x30] sm:$0xff] %vm551_vm2, %v4416_v53  ;;  %1483 = vperm.xlu1 %3540, %v4416_v53  }
 0x1bd   : > { %v1250_v62 = vpop.xlane.xlu1 %1249 }
 0x1be   : > { %v4426_v22 = vmax.f32 %v4418_v39, %v1250_v62 }
 0x1c0   : > { %2644 = vst.msk [vmem:[#allocation3 + $0x38] sm:$0xff] %vm551_vm2, %v4426_v22  ;;  %1488 = vperm.xlu1 %3540, %v4426_v22  }
 0x1c1   : > { %v1253_v7 = vpop.xlane.xlu0 %1252 }
 0x1c2   : > { %v4436_v19 = vmax.f32 %v4428_v33, %v1253_v7 }
 0x1c4   : > { %2645 = vst.msk [vmem:[#allocation3 + $0x40] sm:$0xff] %vm551_vm2, %v4436_v19  ;;  %1493 = vperm.xlu1 %3540, %v4436_v19  }
 0x1c5   : > { %v1256_v36 = vpop.xlane.xlu1 %1255 }
 0x1c6   : > { %v4446_v26 = vmax.f32 %v4438_v30, %v1256_v36 }
 0x1c8   : > { %2646 = vst.msk [vmem:[#allocation3 + $0x48] sm:$0xff] %vm551_vm2, %v4446_v26  ;;  %1498 = vperm.xlu0 %3539, %v4446_v26  }
 0x1c9   : > { %v1259_v62 = vpop.xlane.xlu0 %1258 }
 0x1ca   : > { %v4456_v21 = vmax.f32 %v4448_v23, %v1259_v62 }
 0x1cc   : > { %2647 = vst.msk [vmem:[#allocation3 + $0x50] sm:$0xff] %vm551_vm2, %v4456_v21  ;;  %1503 = vperm.xlu1 %3540, %v4456_v21  }
 0x1cd   : > { %v1262_v7 = vpop.xlane.xlu1 %1261 }
 0x1ce   : > { %v4466_v18 = vmax.f32 %v4458_v20, %v1262_v7 }
 0x1d0   : > { %2648 = vst.msk [vmem:[#allocation3 + $0x58] sm:$0xff] %vm551_vm2, %v4466_v18  ;;  %1508 = vperm.xlu0 %3539, %v4466_v18  }
 0x1d1   : > { %v1265_v36 = vpop.xlane.xlu0 %1264 }
 0x1d2   : > { %v4476_v15 = vmax.f32 %v4468_v17, %v1265_v36 }
 0x1d4   : > { %2649 = vst.msk [vmem:[#allocation3 + $0x60] sm:$0xff] %vm551_vm2, %v4476_v15  ;;  %1513 = vperm.xlu1 %3540, %v4476_v15  }
 0x1d5   : > { %v1268_v62 = vpop.xlane.xlu1 %1267 }
 0x1d6   : > { %v4486_v12 = vmax.f32 %v4478_v14, %v1268_v62 }
 0x1d8   : > { %2650 = vst.msk [vmem:[#allocation3 + $0x68] sm:$0xff] %vm551_vm2, %v4486_v12  ;;  %1518 = vperm.xlu0 %3539, %v4486_v12  }
 0x1d9   : > { %v1271_v7 = vpop.xlane.xlu0 %1270 }
 0x1da   : > { %v4496_v9 = vmax.f32 %v4488_v11, %v1271_v7 }
 0x1dc   : > { %2651 = vst.msk [vmem:[#allocation3 + $0x70] sm:$0xff] %vm551_vm2, %v4496_v9  ;;  %1523 = vperm.xlu1 %3540, %v4496_v9  }
 0x1dd   : > { %v1274_v36 = vpop.xlane.xlu1 %1273 }
 0x1de   : > { %v4506_v6 = vmax.f32 %v4498_v8, %v1274_v36 }
 0x1e0   : > { %2652 = vst.msk [vmem:[#allocation3 + $0x78] sm:$0xff] %vm551_vm2, %v4506_v6  ;;  %1528 = vperm.xlu0 %3539, %v4506_v6  }
 0x1e1   : > { %v1277_v62 = vpop.xlane.xlu0 %1276 }
 0x1e2   : > { %v4516_v3 = vmax.f32 %v4508_v5, %v1277_v62 }
 0x1e4   : > { %2653 = vst.msk [vmem:[#allocation3 + $0x80] sm:$0xff] %vm551_vm2, %v4516_v3  ;;  %1533 = vperm.xlu1 %3540, %v4516_v3  }
 0x1e5   : > { %v1280_v7 = vpop.xlane.xlu1 %1279 }
 0x1e6   : > { %v4526_v0 = vmax.f32 %v4518_v2, %v1280_v7 }
 0x1e8   : > { %2654 = vst.msk [vmem:[#allocation3 + $0x88] sm:$0xff] %vm551_vm2, %v4526_v0  ;;  %1538 = vperm.xlu0 %3539, %v4526_v0  }
 0x1e9   : > { %v1283_v36 = vpop.xlane.xlu0 %1282 }
 0x1ea   : > { %v4536_v61 = vmax.f32 %v4528_v63, %v1283_v36  ;;  %v4566_v36 = vld [vmem:[#allocation3 + $0xb0] sm:$0xff] }
 0x1ec   : > { %2655 = vst.msk [vmem:[#allocation3 + $0x90] sm:$0xff] %vm551_vm2, %v4536_v61  ;;  %1543 = vperm.xlu1 %3540, %v4536_v61  }
 0x1ed   : > { %v1286_v62 = vpop.xlane.xlu1 %1285 }
 0x1ee   : > { %v4546_v58 = vmax.f32 %v4538_v60, %v1286_v62 }
 0x1f0   : > { %2656 = vst.msk [vmem:[#allocation3 + $0x98] sm:$0xff] %vm551_vm2, %v4546_v58  ;;  %1548 = vperm.xlu0 %3539, %v4546_v58  }
 0x1f1   : > { %v1289_v7 = vpop.xlane.xlu0 %1288 }
 0x1f2   : > { %v4556_v55 = vmax.f32 %v4548_v57, %v1289_v7 }
 0x1f4   : > { %2657 = vst.msk [vmem:[#allocation3 + $0xa0] sm:$0xff] %vm551_vm2, %v4556_v55  ;;  %1553 = vperm.xlu1 %3540, %v4556_v55  }
 0x1f5   : > { %v1292_v62 = vpop.xlane.xlu1 %1291 }
 0x1f6   : > { %v4564_v52 = vmax.f32 %v4558_v54, %v1292_v62 }
 0x1f8   : > { %2658 = vst.msk [vmem:[#allocation3 + $0xa8] sm:$0xff] %vm551_vm2, %v4564_v52  ;;  %1558 = vperm.xlu0 %3539, %v4564_v52  }
 0x1f9   : > { %v1295_v7 = vpop.xlane.xlu0 %1294 }
 0x1fa   : > { %v4572_v51 = vmax.f32 %v4566_v36, %v1295_v7 }
 0x1fc   : > { %2659 = vst.msk [vmem:[#allocation3 + $0xb0] sm:$0xff] %vm551_vm2, %v4572_v51  ;;  %1563 = vperm.xlu1 %3540, %v4572_v51  }
 0x1fd   : > { %v1298_v62 = vpop.xlane.xlu1 %1297 }
 0x1fe   : > { %v4580_v47 = vmax.f32 %v4574_v49, %v1298_v62  ;;  %v5412_v49 = vsub.f32 %v4344_v59, %v4356_v43  ;;  %v5414_v43 = vsub.f32 %v4360_v16, %v4369_v4 }
 0x200   : > { %5409 = vst [vmem:[#allocation63_spill] sm:$0xff] %v4580_v47  ;;  %2660 = vst.msk [vmem:[#allocation3 + $0xb8] sm:$0xff] %vm551_vm2, %v4580_v47  ;;  %1568 = vperm.xlu0 %3539, %v4580_v47   ;;  %v1389_v41 = vmul.f32 1.442695, %v5412_v49  ;;  %v4601_v47 = vld [vmem:[#allocation3 + $0xd0] sm:$0xff]  ;;  %v4612_v49 = vld [vmem:[#allocation3 + $0xd8] sm:$0xff] }
 0x201   : > { %v1301_v7 = vpop.xlane.xlu0 %1300 }
 0x202   : > { %v4588_v44 = vmax.f32 %v4582_v45, %v1301_v7  ;;  %v5413_v45 = vsub.f32 %v4340_v13, %v4348_v27  ;;  %3589 = vpow2.f32 %v1389_v41  ;;  %v4623_v41 = vld [vmem:[#allocation3 + $0xe0] sm:$0xff] }
 0x204   : > { %5411 = vst [vmem:[#allocation65_spill] sm:$0xff] %v4588_v44  ;;  %2661 = vst.msk [vmem:[#allocation3 + $0xc0] sm:$0xff] %vm551_vm2, %v4588_v44  ;;  %1573 = vperm.xlu1 %3540, %v4588_v44   ;;  %v1387_v44 = vmul.f32 1.442695, %v5413_v45  ;;  %v5415_v45 = vsub.f32 %v4372_v1, %v4381_v50  ;;  %v5417_v1 = vsub.f32 %v4396_v48, %v4405_v46 }
 0x205   : > { %v1304_v62 = vpop.xlane.xlu1 %1303  ;;  %v5419_v46 = vsub.f32 %v4418_v39, %v4426_v22  ;;  %v5421_v39 = vsub.f32 %v4438_v30, %v4446_v26 }
 0x206   : > { %v4599_v38 = vmax.f32 %v4590_v42, %v1304_v62  ;;  %3591 = vpow2.f32 %v1387_v44  ;;  %v1391_v62 = vmul.f32 1.442695, %v5414_v43  ;;  %v1393_v13 = vmul.f32 1.442695, %v5415_v45 }
 0x207   : > { %v5416_v44 = vsub.f32 %v4384_v56, %v4393_v10  ;;  %v1397_v50 = vmul.f32 1.442695, %v5417_v1  ;;  %v5418_v56 = vsub.f32 %v4408_v40, %v4416_v53  ;;  %v1401_v40 = vmul.f32 1.442695, %v5419_v46  ;;  %v4670_v1 = vld [vmem:[#allocation3 + $0xf8] sm:$0xff] }
 0x208   : > { %2662 = vst.msk [vmem:[#allocation3 + $0xc8] sm:$0xff] %vm551_vm2, %v4599_v38  ;;  %1578 = vperm.xlu0 %3539, %v4599_v38   ;;  %3593 = vpow2.f32 %v1391_v62  ;;  %v5420_v53 = vsub.f32 %v4428_v33, %v4436_v19  ;;  %v1405_v33 = vmul.f32 1.442695, %v5421_v39  ;;  %v5422_v19 = vsub.f32 %v4448_v23, %v4456_v21 }
 0x209   : > { %v1307_v7 = vpop.xlane.xlu0 %1306  ;;  %v1395_v4 = vmul.f32 1.442695, %v5416_v44  ;;  %3595 = vpow2.f32 %v1393_v13  ;;  %v1399_v10 = vmul.f32 1.442695, %v5418_v56  ;;  %v5423_v21 = vsub.f32 %v4458_v20, %v4466_v18 }
 0x20a   : > { %v4610_v37 = vmax.f32 %v4601_v47, %v1307_v7  ;;  %v1403_v13 = vmul.f32 1.442695, %v5420_v53  ;;  %v5424_v46 = vsub.f32 %v4468_v17, %v4476_v15  ;;  %v5425_v39 = vsub.f32 %v4478_v14, %v4486_v12 }
 0x20b   : > { %3597 = vpow2.f32 %v1395_v4  ;;  %v1409_v23 = vmul.f32 1.442695, %v5423_v21  ;;  %v5426_v15 = vsub.f32 %v4488_v11, %v4496_v9  ;;  %v5427_v9 = vsub.f32 %v4498_v8, %v4506_v6 }
 0x20c   : > { %2663 = vst.msk [vmem:[#allocation3 + $0xd0] sm:$0xff] %vm551_vm2, %v4610_v37  ;;  %1583 = vperm.xlu1 %3540, %v4610_v37   ;;  %3599 = vpow2.f32 %v1397_v50  ;;  %v1407_v50 = vmul.f32 1.442695, %v5422_v19  ;;  %v5428_v21 = vsub.f32 %v4508_v5, %v4516_v3  ;;  %v5430_v3 = vsub.f32 %v4528_v63, %v4536_v61 }
 0x20d   : > { %v1310_v59 = vpop.xlane.xlu1 %1309  ;;  %3601 = vpow2.f32 %v1399_v10  ;;  %v1417_v11 = vmul.f32 1.442695, %v5427_v9  ;;  %v5431_v61 = vsub.f32 %v4538_v60, %v4546_v58  ;;  %v5435_v58 = vld [vmem:[#allocation9_spill] sm:$0xff]  ;;  %v5436_v9 = vld [vmem:[#allocation63_spill] sm:$0xff] }
 0x20e   : > { %v4621_v27 = vmax.f32 %v4612_v49, %v1310_v59  ;;  %v4637_v59 = vld [vmem:[#allocation3 + $0xe8] sm:$0xff]  ;;  %3603 = vpow2.f32 %v1401_v40  ;;  %v1411_v40 = vmul.f32 1.442695, %v5424_v46 }
 0x20f   : > { %v4651_v45 = vpop.eup %3589  ;;  %3605 = vpow2.f32 %v1403_v13 }
 0x210   : > { %2664 = vst.msk [vmem:[#allocation3 + $0xd8] sm:$0xff] %vm551_vm2, %v4621_v27  ;;  %1588 = vperm.xlu0 %3539, %v4621_v27   ;;  %3607 = vpow2.f32 %v1405_v33  ;;  %v1413_v33 = vmul.f32 1.442695, %v5425_v39 }
 0x211   : > { %v1313_v7 = vpop.xlane.xlu0 %1312  ;;  %3609 = vpow2.f32 %v1407_v50 }
 0x212   : > { %v4635_v16 = vmax.f32 %v4623_v41, %v1313_v7  ;;  %v4653_v7 = vld [vmem:[#allocation3 + $0xf0] sm:$0xff]  ;;  %3611 = vpow2.f32 %v1409_v23  ;;  %v1419_v23 = vmul.f32 1.442695, %v5428_v21 }
 0x213   : > { %v4668_v4 = vpop.eup %3591  ;;  %3613 = vpow2.f32 %v1411_v40 }
 0x214   : > { %2665 = vst.msk [vmem:[#allocation3 + $0xe0] sm:$0xff] %vm551_vm2, %v4635_v16  ;;  %1593 = vperm.xlu1 %3540, %v4635_v16   ;;  %3615 = vpow2.f32 %v1413_v33  ;;  %v1376_v33 = vsub.f32 %v4558_v54, %v4564_v52  ;;  %v5432_v52 = vld [vmem:[#allocation6_spill] sm:$0xff] }
 0x215   : > { %v1316_v43 = vpop.xlane.xlu1 %1315  ;;  %v4685_v56 = vpop.eup %3593 }
 0x216   : > { %v4649_v62 = vmax.f32 %v4637_v59, %v1316_v43  ;;  %v4696_v30 = vpop.eup %3595 }
 0x218   : > { %2666 = vst.msk [vmem:[#allocation3 + $0xe8] sm:$0xff] %vm551_vm2, %v4649_v62  ;;  %1598 = vperm.xlu0 %3539, %v4649_v62   ;;  %2131 = vperm.xlu1 %3540, %v4651_v45  }
 0x219   : > { %v1319_v48 = vpop.xlane.xlu0 %1318 }
 0x21a   : > { %v4666_v44 = vmax.f32 %v4653_v7, %v1319_v48  ;;  %v4701_v48 = vpop.eup %3597 }
 0x21b   : > { %v4715_v17 = vpop.eup %3599 }
 0x21c   : > { %2667 = vst.msk [vmem:[#allocation3 + $0xf0] sm:$0xff] %vm551_vm2, %v4666_v44  ;;  %2126 = vperm.xlu0 %3539, %v4668_v4   ;;  %1603 = vperm.xlu1 %3540, %v4666_v44   ;;  %v4717_v19 = vpop.eup %3601 }
 0x21d   : > { %v1322_v22 = vpop.xlane.xlu1 %1321  ;;  %v4724_v50 = vpop.eup %3603 }
 0x21e   : > { %v4683_v43 = vmax.f32 %v4670_v1, %v1322_v22 }
 0x220   : > { %2668 = vst.msk [vmem:[#allocation3 + $0xf8] sm:$0xff] %vm551_vm2, %v4683_v43  ;;  %2136 = vperm.xlu1 %3540, %v4685_v56   ;;  %1608 = vperm.xlu0 %3539, %v4683_v43  }
 0x221   : > { %v1454_v26 = vpop.permute.xlu0 %1453 }
 0x222   : > { %v1611_v53 = vsub.f32 %v3979_v24, %v1454_v26  ;;  %v1612_v18 = vsub.f32 %v3981_v25, %v1454_v26  ;;  %v1415_v24 = vmul.f32 1.442695, %v5426_v15  ;;  %v4729_v26 = vpop.eup %3605 }
 0x223   : > { %v1459_v13 = vpop.permute.xlu1 %1458  ;;  %v4743_v5 = vpop.eup %3607 }
 0x224   : > { %v1613_v20 = vsub.f32 %v4017_v28, %v1459_v13  ;;  %v1614_v22 = vsub.f32 %v4019_v29, %v1459_v13  ;;  %2146 = vperm.xlu1 %3540, %v4701_v48   ;;  %2141 = vperm.xlu0 %3539, %v4696_v30   ;;  %3617 = vpow2.f32 %v1415_v24 }
 0x226   : > { %v1675_v12 = vpack.c.bf16 %v1613_v20, %v1611_v53  ;;  %v1676_v14 = vpack.c.bf16 %v1614_v22, %v1612_v18  ;;  %v5429_v53 = vsub.f32 %v4518_v2, %v4526_v0  ;;  %v1375_v0 = vsub.f32 %v4548_v57, %v4556_v55 }
 0x227   : > { %v1464_v25 = vpop.permute.xlu1 %1463  ;;  %v1425_v55 = vmul.f32 1.442695, %v5431_v61  ;;  %v1377_v57 = vsub.f32 %v4566_v36, %v4572_v51 }
 0x228   : > { %v1708_v28 = vmul.bf16 1069105081, %v1675_v12  ;;  %v1711_v29 = vmul.bf16 1069105081, %v1676_v14  ;;  %2156 = vperm.xlu1 %3540, %v4717_v19   ;;  %2151 = vperm.xlu0 %3539, %v4715_v17   ;;  %v1615_v46 = vsub.f32 %v4023_v31, %v1464_v25  ;;  %v1421_v13 = vmul.f32 1.442695, %v5429_v53 }
 0x229   : > { %v1616_v6 = vsub.f32 %v4025_v32, %v1464_v25  ;;  %v1423_v31 = vmul.f32 1.442695, %v5430_v3  ;;  %v1427_v22 = vmul.f32 1.442695, %v1375_v0  ;;  %v1429_v12 = vmul.f32 1.442695, %v1376_v33 }
 0x22a   : > { %3619 = vpow.bf16 %v1708_v28  ;;  %v5433_v14 = vld [vmem:[#allocation7_spill] sm:$0xff]  ;;  %v5434_v28 = vld [vmem:[#allocation8_spill] sm:$0xff]  ;;  %v1431_v36 = vmul.f32 1.442695, %v1377_v57 }
 0x22b   : > { %3621 = vpow.bf16 %v1711_v29  ;;  %v1469_v40 = vpop.permute.xlu1 %1468 }
 0x22c   : > { %v1617_v8 = vsub.f32 %v4029_v34, %v1469_v40  ;;  %v1618_v39 = vsub.f32 %v4031_v35, %v1469_v40  ;;  %2166 = vperm.xlu1 %3540, %v4729_v26   ;;  %2161 = vperm.xlu0 %3539, %v4724_v50   ;;  %3623 = vpow2.f32 %v1417_v11  ;;  %v4747_v34 = vpop.eup %3609  ;;  %v5437_v11 = vld [vmem:[#allocation62_spill] sm:$0xff]  ;;  %v5439_v40 = vld [vmem:[#allocation64_spill] sm:$0xff] }
 0x22d   : > { %3625 = vpow2.f32 %v1419_v23  ;;  %v4758_v63 = vpop.eup %3611  ;;  %v1378_v21 = vsub.f32 %v5437_v11, %v5436_v9  ;;  %v1383_v11 = vsub.f32 %v4623_v41, %v4635_v16  ;;  %v1385_v41 = vsub.f32 %v4653_v7, %v4666_v44  ;;  %v5446_v7 = vld [vmem:[#allocation16_spill] sm:$0xff] }
 0x22e   : > { %v1677_v32 = vpack.c.bf16 %v1617_v8, %v1615_v46  ;;  %v1678_v2 = vpack.c.bf16 %v1618_v39, %v1616_v6  ;;  %3627 = vpow2.f32 %v1421_v13  ;;  %v4760_v15 = vpop.eup %3613  ;;  %v5438_v46 = vld [vmem:[#allocation65_spill] sm:$0xff]  ;;  %v1380_v8 = vsub.f32 %v4590_v42, %v4599_v38 }
 0x22f   : > { %v1474_v35 = vpop.permute.xlu1 %1473  ;;  %3629 = vpow2.f32 %v1423_v31  ;;  %v4768_v51 = vpop.eup %3615  ;;  %v1379_v53 = vsub.f32 %v5439_v40, %v5438_v46  ;;  %v1381_v31 = vsub.f32 %v4601_v47, %v4610_v37  ;;  %v5440_v47 = vld [vmem:[#allocation10_spill] sm:$0xff] }
 0x230   : > { %v1714_v18 = vmul.bf16 1069105081, %v1677_v32  ;;  %v1717_v20 = vmul.bf16 1069105081, %v1678_v2  ;;  %2176 = vperm.xlu1 %3540, %v4747_v34   ;;  %2171 = vperm.xlu0 %3539, %v4743_v5   ;;  %v1619_v54 = vsub.f32 %v5432_v52, %v1474_v35  ;;  %v1620_v25 = vsub.f32 %v5433_v14, %v1474_v35 }
 0x231   : > { %v4772_v23 = vpop.eup %3617  ;;  %v1433_v35 = vmul.f32 1.442695, %v1378_v21  ;;  %v1435_v38 = vmul.f32 1.442695, %v1379_v53  ;;  %v1437_v37 = vmul.f32 1.442695, %v1380_v8  ;;  %v1384_v53 = vsub.f32 %v4637_v59, %v4649_v62 }
 0x232   : > { %3631 = vpow.bf16 %v1714_v18 }
 0x233   : > { %3633 = vpow.bf16 %v1717_v20  ;;  %v1479_v24 = vpop.permute.xlu1 %1478 }
 0x234   : > { %v1621_v29 = vsub.f32 %v5434_v28, %v1479_v24  ;;  %v1622_v60 = vsub.f32 %v5435_v58, %v1479_v24  ;;  %2186 = vperm.xlu1 %3540, %v4760_v15   ;;  %2181 = vperm.xlu0 %3539, %v4758_v63   ;;  %3635 = vpow2.f32 %v1425_v55  ;;  %v1439_v24 = vmul.f32 1.442695, %v1381_v31 }
 0x235   : > { %3637 = vpow2.f32 %v1427_v22  ;;  %v5441_v22 = vld [vmem:[#allocation11_spill] sm:$0xff]  ;;  %v1443_v31 = vmul.f32 1.442695, %v1383_v11 }
 0x236   : > { %v1679_v13 = vpack.c.bf16 %v1621_v29, %v1619_v54  ;;  %v1680_v6 = vpack.c.bf16 %v1622_v60, %v1620_v25  ;;  %3639 = vpow2.f32 %v1429_v12  ;;  %v5442_v12 = vld [vmem:[#allocation12_spill] sm:$0xff]  ;;  %v5443_v25 = vld [vmem:[#allocation13_spill] sm:$0xff]  ;;  %v1382_v60 = vsub.f32 %v4612_v49, %v4621_v27 }
 0x237   : > { %v1484_v39 = vpop.permute.xlu1 %1483  ;;  %3641 = vpow2.f32 %v1431_v36 }
 0x238   : > { %v3620_v3 = vpop.eup %3619  ;;  %v1720_v0 = vmul.bf16 1069105081, %v1679_v13  ;;  %v1723_v32 = vmul.bf16 1069105081, %v1680_v6  ;;  %2196 = vperm.xlu1 %3540, %v4772_v23   ;;  %2191 = vperm.xlu0 %3539, %v4768_v51   ;;  %v1623_v57 = vsub.f32 %v5440_v47, %v1484_v39  ;;  %v1624_v52 = vsub.f32 %v5441_v22, %v1484_v39 }
 0x239   : > { %v3622_v2 = vpop.eup %3621  ;;  %v1869_v33 = vunpack.c.h.bf16 %v3620_v3  ;;  %v1867_v18 = vunpack.c.l.bf16 %v3620_v3  ;;  %v1441_v27 = vmul.f32 1.442695, %v1382_v60 }
 0x23a   : > { %v4782_v20 = vpop.eup %3623  ;;  %3643 = vpow.bf16 %v1720_v0  ;;  %2444 = vmatprep.mubr.bf16.mxu1 %v3622_v2  ;;  %v1870_v42 = vunpack.c.h.bf16 %v3622_v2  ;;  %v1868_v61 = vunpack.c.l.bf16 %v3622_v2 }
 0x23b   : > { %v4784_v55 = vpop.eup %3625  ;;  %3645 = vpow.bf16 %v1723_v32  ;;  %2445 = vmatmul.mubr.bf16.vlgmr.msra.gmra.mxu1 %v3620_v3  ;;  %v1489_v54 = vpop.permute.xlu1 %1488  ;;  %v5444_v32 = vld [vmem:[#allocation14_spill] sm:$0xff] }
 0x23c   : > { %v1625_v14 = vsub.f32 %v5442_v12, %v1489_v54  ;;  %v1626_v28 = vsub.f32 %v5443_v25, %v1489_v54  ;;  %2206 = vperm.xlu1 %3540, %v4784_v55   ;;  %2201 = vperm.xlu0 %3539, %v4782_v20   ;;  %v4792_v29 = vadd.f32 %v1870_v42, %v1869_v33  ;;  %v4794_v58 = vpop.eup %3627  ;;  %3647 = vpow2.f32 %v1433_v35  ;;  %v5445_v35 = vld [vmem:[#allocation15_spill] sm:$0xff]  ;;  %v5447_v42 = vld [vmem:[#allocation17_spill] sm:$0xff] }
 0x23d   : > { %v4798_v36 = vadd.f32 %v1868_v61, %v1867_v18  ;;  %v4800_v9 = vpop.eup %3629  ;;  %3649 = vpow2.f32 %v1435_v38  ;;  %v1445_v38 = vmul.f32 1.442695, %v1384_v53  ;;  %v5448_v53 = vld [vmem:[#allocation18_spill] sm:$0xff] }
 0x23e   : > { %v1681_v21 = vpack.c.bf16 %v1625_v14, %v1623_v57  ;;  %v1682_v46 = vpack.c.bf16 %v1626_v28, %v1624_v52  ;;  %3651 = vpow2.f32 %v1437_v37  ;;  %v1447_v57 = vmul.f32 1.442695, %v1385_v41  ;;  %v5450_v41 = vld [vmem:[#allocation20_spill] sm:$0xff] }
 0x23f   : > { %3653 = vpow2.f32 %v1439_v24  ;;  %v1494_v8 = vpop.permute.xlu1 %1493 }
 0x240   : > { %v3632_v40 = vpop.eup %3631  ;;  %v1726_v13 = vmul.bf16 1069105081, %v1681_v21  ;;  %v1729_v6 = vmul.bf16 1069105081, %v1682_v46  ;;  %2216 = vperm.xlu1 %3540, %v4800_v9   ;;  %2211 = vperm.xlu0 %3539, %v4794_v58   ;;  %v1627_v2 = vsub.f32 %v5444_v32, %v1494_v8  ;;  %v1628_v33 = vsub.f32 %v5445_v35, %v1494_v8 }
 0x241   : > { %v3634_v49 = vpop.eup %3633  ;;  %v1871_v16 = vunpack.c.l.bf16 %v3632_v40  ;;  %v1873_v39 = vunpack.c.h.bf16 %v3632_v40 }
 0x242   : > { %v4810_v3 = vpop.eup %3635  ;;  %3655 = vpow.bf16 %v1726_v13  ;;  %2452 = vmatprep.mubr.bf16.mxu1 %v3634_v49  ;;  %v1872_v59 = vunpack.c.l.bf16 %v3634_v49  ;;  %v1874_v62 = vunpack.c.h.bf16 %v3634_v49  ;;  %v5449_v49 = vld [vmem:[#allocation19_spill] sm:$0xff] }
 0x243   : > { %v4812_v0 = vpop.eup %3637  ;;  %3657 = vpow.bf16 %v1729_v6  ;;  %2453 = vmatmul.mubr.bf16.gmra.mxu1 %v3632_v40  ;;  %v1499_v18 = vpop.permute.xlu0 %1498 }
 0x244   : > { %v1629_v44 = vsub.f32 %v5446_v7, %v1499_v18  ;;  %v1630_v61 = vsub.f32 %v5447_v42, %v1499_v18  ;;  %2226 = vperm.xlu1 %3540, %v4812_v0   ;;  %2221 = vperm.xlu0 %3539, %v4810_v3   ;;  %v4820_v37 = vadd.f32 %v1872_v59, %v1871_v16  ;;  %v4822_v47 = vpop.eup %3639  ;;  %3659 = vpow2.f32 %v1441_v27 }
 0x245   : > { %v4824_v22 = vadd.f32 %v1874_v62, %v1873_v39  ;;  %v4826_v52 = vpop.eup %3641  ;;  %3661 = vpow2.f32 %v1443_v31  ;;  %v5451_v39 = vld [vmem:[#allocation21_spill] sm:$0xff] }
 0x246   : > { %v1683_v54 = vpack.c.bf16 %v1629_v44, %v1627_v2  ;;  %v1684_v24 = vpack.c.bf16 %v1630_v61, %v1628_v33  ;;  %3663 = vpow2.f32 %v1445_v38  ;;  %v5454_v61 = vld [vmem:[#allocation22_spill] sm:$0xff] }
 0x247   : > { %v1504_v28 = vpop.permute.xlu1 %1503  ;;  %3665 = vpow2.f32 %v1447_v57 }
 0x248   : > { %v4828_v12 = vpop.eup %3643  ;;  %v1732_v14 = vmul.bf16 1069105081, %v1683_v54  ;;  %v1735_v25 = vmul.bf16 1069105081, %v1684_v24  ;;  %2236 = vperm.xlu1 %3540, %v4826_v52   ;;  %2231 = vperm.xlu0 %3539, %v4822_v47   ;;  %v1631_v13 = vsub.f32 %v5448_v53, %v1504_v28  ;;  %v1632_v27 = vsub.f32 %v5449_v49, %v1504_v28  ;;  %v5455_v24 = vld [vmem:[#allocation23_spill] sm:$0xff] }
 0x249   : > { %v4832_v60 = vpop.eup %3645  ;;  %v1877_v11 = vunpack.c.h.bf16 %v4828_v12 }
 0x24a   : > { %v4835_v21 = vpop.eup %3647  ;;  %3667 = vpow.bf16 %v1732_v14  ;;  %2460 = vmatprep.mubr.bf16.mxu1 %v4832_v60  ;;  %v1878_v46 = vunpack.c.h.bf16 %v4832_v60 }
 0x24b   : > { %v4839_v40 = vpop.eup %3649  ;;  %3669 = vpow.bf16 %v1735_v25  ;;  %2461 = vmatmul.mubr.bf16.gmra.mxu1 %v4828_v12  ;;  %v1509_v6 = vpop.permute.xlu0 %1508  ;;  %v5456_v25 = vld [vmem:[#allocation24_spill] sm:$0xff] }
 0x24c   : > { %v4843_v8 = vpop.eup %3651  ;;  %v1633_v16 = vsub.f32 %v5450_v41, %v1509_v6  ;;  %v1634_v31 = vsub.f32 %v5451_v39, %v1509_v6  ;;  %2246 = vperm.xlu1 %3540, %v4839_v40   ;;  %2241 = vperm.xlu0 %3539, %v4835_v21   ;;  %v4852_v62 = vadd.f32 %v1878_v46, %v1877_v11  ;;  %v5457_v11 = vld [vmem:[#allocation25_spill] sm:$0xff] }
 0x24d   : > { %v4850_v59 = vpop.eup %3653 }
 0x24e   : > { %v1685_v32 = vpack.c.bf16 %v1633_v16, %v1631_v13  ;;  %v1686_v2 = vpack.c.bf16 %v1634_v31, %v1632_v27 }
 0x24f   : > { %v1514_v38 = vpop.permute.xlu1 %1513 }
 0x250   : > { %v4854_v35 = vpop.eup %3655  ;;  %v1738_v33 = vmul.bf16 1069105081, %v1685_v32  ;;  %v1741_v18 = vmul.bf16 1069105081, %v1686_v2  ;;  %2256 = vperm.xlu1 %3540, %v4850_v59   ;;  %2251 = vperm.xlu0 %3539, %v4843_v8   ;;  %v1635_v57 = vsub.f32 %v5454_v61, %v1514_v38  ;;  %v1636_v14 = vsub.f32 %v5455_v24, %v1514_v38  ;;  %v5460_v2 = vld [vmem:[#allocation26_spill] sm:$0xff]  ;;  %v5462_v61 = vld [vmem:[#allocation28_spill] sm:$0xff] }
 0x251   : > { %v4858_v7 = vpop.eup %3657 }
 0x252   : > { %v4860_v44 = vpop.eup %3659  ;;  %3671 = vpow.bf16 %v1738_v33  ;;  %2468 = vmatprep.mubr.bf16.mxu1 %v4858_v7 }
 0x253   : > { %5452 = vst [vmem:[#allocation6_spill] sm:$0xff] %v4860_v44  ;;  %v4863_v42 = vpop.eup %3661  ;;  %3673 = vpow.bf16 %v1741_v18  ;;  %2469 = vmatmul.mubr.bf16.gmra.mxu1 %v4854_v35  ;;  %v1519_v54 = vpop.permute.xlu0 %1518  ;;  %v5461_v18 = vld [vmem:[#allocation27_spill] sm:$0xff] }
 0x254   : > { %5453 = vst [vmem:[#allocation7_spill] sm:$0xff] %v4863_v42  ;;  %v1637_v28 = vsub.f32 %v5456_v25, %v1519_v54  ;;  %v1638_v46 = vsub.f32 %v5457_v11, %v1519_v54  ;;  %2266 = vperm.xlu1 %3540, %v4863_v42   ;;  %2261 = vperm.xlu0 %3539, %v4860_v44   ;;  %v4872_v53 = vpop.eup %3663  ;;  %v5463_v54 = vld [vmem:[#allocation29_spill] sm:$0xff]  ;;  %v1875_v42 = vunpack.c.l.bf16 %v4828_v12 }
 0x255   : > { %5458 = vst [vmem:[#allocation8_spill] sm:$0xff] %v4872_v53  ;;  %v4874_v13 = vpop.eup %3665 }
 0x256   : > { %5459 = vst [vmem:[#allocation9_spill] sm:$0xff] %v4874_v13  ;;  %v1687_v6 = vpack.c.bf16 %v1637_v28, %v1635_v57  ;;  %v1688_v49 = vpack.c.bf16 %v1638_v46, %v1636_v14 }
 0x257   : > { %v1524_v31 = vpop.permute.xlu1 %1523 }
 0x258   : > { %v4876_v27 = vpop.eup %3667  ;;  %v1744_v41 = vmul.bf16 1069105081, %v1687_v6  ;;  %v1747_v16 = vmul.bf16 1069105081, %v1688_v49  ;;  %2276 = vperm.xlu1 %3540, %v4874_v13   ;;  %2271 = vperm.xlu0 %3539, %v4872_v53   ;;  %v1639_v33 = vsub.f32 %v5460_v2, %v1524_v31  ;;  %v1640_v38 = vsub.f32 %v5461_v18, %v1524_v31  ;;  %v5465_v2 = vld [vmem:[#allocation31_spill] sm:$0xff] }
 0x259   : > { %v4880_v39 = vpop.eup %3669 }
 0x25a   : > { %3675 = vpow.bf16 %v1744_v41  ;;  %2476 = vmatprep.mubr.bf16.mxu1 %v4880_v39 }
 0x25b   : > { %3677 = vpow.bf16 %v1747_v16  ;;  %2477 = vmatmul.mubr.bf16.gmra.mxu1 %v4876_v27  ;;  %v1529_v32 = vpop.permute.xlu0 %1528  ;;  %v5464_v16 = vld [vmem:[#allocation30_spill] sm:$0xff] }
 0x25c   : > { %v1641_v57 = vsub.f32 %v5462_v61, %v1529_v32  ;;  %v1642_v24 = vsub.f32 %v5463_v54, %v1529_v32 }
 0x25e   : > { %v1689_v14 = vpack.c.bf16 %v1641_v57, %v1639_v33  ;;  %v1690_v25 = vpack.c.bf16 %v1642_v24, %v1640_v38  ;;  %v5466_v33 = vld [vmem:[#allocation32_spill] sm:$0xff]  ;;  %v5467_v38 = vld [vmem:[#allocation33_spill] sm:$0xff] }
 0x25f   : > { %v1534_v49 = vpop.permute.xlu1 %1533 }
 0x260   : > { %v4888_v28 = vpop.eup %3671  ;;  %v1750_v11 = vmul.bf16 1069105081, %v1689_v14  ;;  %v1753_v46 = vmul.bf16 1069105081, %v1690_v25  ;;  %v1643_v31 = vsub.f32 %v5464_v16, %v1534_v49  ;;  %v1644_v32 = vsub.f32 %v5465_v2, %v1534_v49  ;;  %v5468_v16 = vld [vmem:[#allocation34_spill] sm:$0xff] }
 0x261   : > { %v4890_v6 = vpop.eup %3673 }
 0x262   : > { %3679 = vpow.bf16 %v1750_v11  ;;  %2484 = vmatprep.mubr.bf16.mxu1 %v4890_v6 }
 0x263   : > { %3681 = vpow.bf16 %v1753_v46  ;;  %2485 = vmatmul.mubr.bf16.gmra.mxu1 %v4888_v28  ;;  %v1539_v41 = vpop.permute.xlu0 %1538 }
 0x264   : > { %v1645_v18 = vsub.f32 %v5466_v33, %v1539_v41  ;;  %v1646_v61 = vsub.f32 %v5467_v38, %v1539_v41  ;;  %v5469_v33 = vld [vmem:[#allocation35_spill] sm:$0xff] }
 0x266   : > { %v1691_v57 = vpack.c.bf16 %v1645_v18, %v1643_v31  ;;  %v1692_v54 = vpack.c.bf16 %v1646_v61, %v1644_v32  ;;  %v5470_v31 = vld [vmem:[#allocation36_spill] sm:$0xff]  ;;  %v5471_v18 = vld [vmem:[#allocation37_spill] sm:$0xff] }
 0x267   : > { %v1544_v46 = vpop.permute.xlu1 %1543 }
 0x268   : > { %v4898_v24 = vpop.eup %3675  ;;  %v1756_v14 = vmul.bf16 1069105081, %v1691_v57  ;;  %v1759_v25 = vmul.bf16 1069105081, %v1692_v54  ;;  %v1647_v2 = vsub.f32 %v5468_v16, %v1544_v46  ;;  %v1648_v41 = vsub.f32 %v5469_v33, %v1544_v46  ;;  %v5472_v16 = vld [vmem:[#allocation38_spill] sm:$0xff] }
 0x269   : > { %v4900_v11 = vpop.eup %3677 }
 0x26a   : > { %3683 = vpow.bf16 %v1756_v14  ;;  %2492 = vmatprep.mubr.bf16.mxu1 %v4900_v11 }
 0x26b   : > { %3685 = vpow.bf16 %v1759_v25  ;;  %2493 = vmatmul.mubr.bf16.gmra.mxu1 %v4898_v24  ;;  %v1549_v49 = vpop.permute.xlu0 %1548 }
 0x26c   : > { %v1649_v32 = vsub.f32 %v5470_v31, %v1549_v49  ;;  %v1650_v38 = vsub.f32 %v5471_v18, %v1549_v49  ;;  %v5473_v31 = vld [vmem:[#allocation39_spill] sm:$0xff] }
 0x26e   : > { %v1693_v61 = vpack.c.bf16 %v1649_v32, %v1647_v2  ;;  %v1694_v57 = vpack.c.bf16 %v1650_v38, %v1648_v41  ;;  %v5474_v2 = vld [vmem:[#allocation40_spill] sm:$0xff]  ;;  %v5475_v32 = vld [vmem:[#allocation41_spill] sm:$0xff] }
 0x26f   : > { %v1554_v25 = vpop.permute.xlu1 %1553 }
 0x270   : > { %v4908_v54 = vpop.eup %3679  ;;  %v1762_v10 = vmul.bf16 1069105081, %v1693_v61  ;;  %v1765_v14 = vmul.bf16 1069105081, %v1694_v57  ;;  %v1651_v33 = vsub.f32 %v5472_v16, %v1554_v25  ;;  %v1652_v49 = vsub.f32 %v5473_v31, %v1554_v25 }
 0x271   : > { %v4910_v13 = vpop.eup %3681  ;;  %v1876_v16 = vunpack.c.l.bf16 %v4832_v60  ;;  %v1879_v60 = vunpack.c.l.bf16 %v4854_v35 }
 0x272   : > { %3687 = vpow.bf16 %v1762_v10  ;;  %2500 = vmatprep.mubr.bf16.mxu1 %v4910_v13 }
 0x273   : > { %3689 = vpow.bf16 %v1765_v14  ;;  %2501 = vmatmul.mubr.bf16.gmra.mxu1 %v4908_v54  ;;  %v1559_v46 = vpop.permute.xlu0 %1558  ;;  %v1943_v12 = vadd.f32 %v1876_v16, %v1875_v42  ;;  %v1883_v42 = vunpack.c.l.bf16 %v4876_v27  ;;  %v1884_v16 = vunpack.c.l.bf16 %v4880_v39 }
 0x274   : > { %v1653_v41 = vsub.f32 %v5474_v2, %v1559_v46  ;;  %v1654_v18 = vsub.f32 %v5475_v32, %v1559_v46 }
 0x276   : > { %v1695_v38 = vpack.c.bf16 %v1653_v41, %v1651_v33  ;;  %v1696_v61 = vpack.c.bf16 %v1654_v18, %v1652_v49  ;;  %v5477_v33 = vld [vmem:[#allocation43_spill] sm:$0xff]  ;;  %v5478_v49 = vld [vmem:[#allocation44_spill] sm:$0xff]  ;;  %v5479_v41 = vld [vmem:[#allocation45_spill] sm:$0xff] }
 0x277   : > { %1935 = vadd.xlane.f32.xlu0 %v4792_v29  ;;  %v1564_v44 = vpop.permute.xlu1 %1563  ;;  %v5476_v29 = vld [vmem:[#allocation42_spill] sm:$0xff] }
 0x278   : > { %v4919_v57 = vpop.eup %3683  ;;  %v1768_v10 = vmul.bf16 1069105081, %v1695_v38  ;;  %v1771_v53 = vmul.bf16 1069105081, %v1696_v61  ;;  %v1655_v46 = vsub.f32 %v5476_v29, %v1564_v44  ;;  %v1656_v31 = vsub.f32 %v5477_v33, %v1564_v44 }
 0x279   : > { %v4921_v14 = vpop.eup %3685  ;;  %v1881_v44 = vunpack.c.h.bf16 %v4854_v35 }
 0x27a   : > { %3691 = vpow.bf16 %v1768_v10  ;;  %2508 = vmatprep.mubr.bf16.mxu1 %v4921_v14 }
 0x27b   : > { %3693 = vpow.bf16 %v1771_v53  ;;  %2509 = vmatmul.mubr.bf16.gmra.mxu1 %v4919_v57  ;;  %v1569_v25 = vpop.permute.xlu0 %1568  ;;  %1938 = vadd.xlane.f32.xlu0 %v4820_v37  ;;  %v1880_v53 = vunpack.c.l.bf16 %v4858_v7 }
 0x27c   : > { %v1657_v2 = vsub.f32 %v5478_v49, %v1569_v25  ;;  %v1658_v32 = vsub.f32 %v5479_v41, %v1569_v25  ;;  %1932 = vadd.xlane.f32.xlu1 %v4798_v36 }
 0x27d   : > { %v1949_v36 = vadd.f32 %v1880_v53, %v1879_v60  ;;  %v1955_v60 = vadd.f32 %v1884_v16, %v1883_v42  ;;  %v1887_v53 = vunpack.c.l.bf16 %v4888_v28 }
 0x27e   : > { %v1697_v18 = vpack.c.bf16 %v1657_v2, %v1655_v46  ;;  %v1698_v38 = vpack.c.bf16 %v1658_v32, %v1656_v31  ;;  %v1882_v46 = vunpack.c.h.bf16 %v4858_v7  ;;  %v5481_v31 = vld [vmem:[#allocation47_spill] sm:$0xff]  ;;  %v5482_v2 = vld [vmem:[#allocation48_spill] sm:$0xff]  ;;  %v5483_v32 = vld [vmem:[#allocation49_spill] sm:$0xff] }
 0x27f   : > { %1944 = vadd.xlane.f32.xlu0 %v1943_v12  ;;  %v1574_v25 = vpop.permute.xlu1 %1573 }
 0x280   : > { %v4935_v61 = vpop.eup %3687  ;;  %v1774_v37 = vmul.bf16 1069105081, %v1697_v18  ;;  %v1777_v10 = vmul.bf16 1069105081, %v1698_v38  ;;  %1941 = vadd.xlane.f32.xlu1 %v4824_v22  ;;  %v5480_v22 = vld [vmem:[#allocation46_spill] sm:$0xff]  ;;  %v1660_v49 = vsub.f32 %v5481_v31, %v1574_v25  ;;  %v1952_v7 = vadd.f32 %v1882_v46, %v1881_v44 }
 0x281   : > { %v4939_v29 = vpop.eup %3689  ;;  %v1659_v35 = vsub.f32 %v5480_v22, %v1574_v25  ;;  %v1888_v18 = vunpack.c.l.bf16 %v4890_v6  ;;  %v1891_v46 = vunpack.c.l.bf16 %v4898_v24 }
 0x282   : > { %3695 = vpow.bf16 %v1774_v37  ;;  %2516 = vmatprep.mubr.bf16.mxu1 %v4939_v29 }
 0x283   : > { %3697 = vpow.bf16 %v1777_v10  ;;  %2517 = vmatmul.mubr.bf16.gmra.mxu1 %v4935_v61  ;;  %v1579_v33 = vpop.permute.xlu0 %1578  ;;  %1950 = vadd.xlane.f32.xlu0 %v1949_v36  ;;  %v1885_v10 = vunpack.c.h.bf16 %v4876_v27  ;;  %v1886_v36 = vunpack.c.h.bf16 %v4880_v39  ;;  %v1961_v16 = vadd.f32 %v1888_v18, %v1887_v53 }
 0x284   : > { %v1661_v41 = vsub.f32 %v5482_v2, %v1579_v33  ;;  %v1662_v12 = vsub.f32 %v5483_v32, %v1579_v33  ;;  %1947 = vadd.xlane.f32.xlu1 %v4852_v62  ;;  %v1889_v62 = vunpack.c.h.bf16 %v4888_v28  ;;  %v1892_v33 = vunpack.c.l.bf16 %v4900_v11  ;;  %v5484_v28 = vld [vmem:[#allocation50_spill] sm:$0xff]  ;;  %v5485_v2 = vld [vmem:[#allocation51_spill] sm:$0xff]  ;;  %v5486_v32 = vld [vmem:[#allocation52_spill] sm:$0xff] }
 0x285   : > { %v1890_v27 = vunpack.c.h.bf16 %v4890_v6  ;;  %v1958_v39 = vadd.f32 %v1886_v36, %v1885_v10  ;;  %v1895_v18 = vunpack.c.l.bf16 %v4908_v54  ;;  %v1893_v36 = vunpack.c.h.bf16 %v4898_v24 }
 0x286   : > { %v1699_v38 = vpack.c.bf16 %v1661_v41, %v1659_v35  ;;  %v1700_v37 = vpack.c.bf16 %v1662_v12, %v1660_v49  ;;  %v1967_v53 = vadd.f32 %v1892_v33, %v1891_v46  ;;  %v1897_v46 = vunpack.c.h.bf16 %v4908_v54  ;;  %v5488_v54 = vld [vmem:[#allocation54_spill] sm:$0xff] }
 0x287   : > { %1956 = vadd.xlane.f32.xlu0 %v1955_v60  ;;  %v1584_v44 = vpop.permute.xlu1 %1583  ;;  %v5487_v60 = vld [vmem:[#allocation53_spill] sm:$0xff]  ;;  %v1964_v6 = vadd.f32 %v1890_v27, %v1889_v62  ;;  %v1899_v27 = vunpack.c.l.bf16 %v4919_v57  ;;  %v1898_v24 = vunpack.c.h.bf16 %v4910_v13 }
 0x288   : > { %v4955_v25 = vpop.eup %3691  ;;  %v1780_v22 = vmul.bf16 1069105081, %v1699_v38  ;;  %v1783_v31 = vmul.bf16 1069105081, %v1700_v37  ;;  %1953 = vadd.xlane.f32.xlu1 %v1952_v7  ;;  %v1663_v49 = vsub.f32 %v5484_v28, %v1584_v44  ;;  %v1664_v41 = vsub.f32 %v5485_v2, %v1584_v44 }
 0x289   : > { %v4958_v42 = vpop.eup %3693  ;;  %v1896_v38 = vunpack.c.l.bf16 %v4910_v13 }
 0x28a   : > { %3699 = vpow.bf16 %v1780_v22  ;;  %2524 = vmatprep.mubr.bf16.mxu1 %v4958_v42  ;;  %v1894_v22 = vunpack.c.h.bf16 %v4900_v11 }
 0x28b   : > { %3701 = vpow.bf16 %v1783_v31  ;;  %2525 = vmatmul.mubr.bf16.gmra.mxu1 %v4955_v25  ;;  %v1589_v35 = vpop.permute.xlu0 %1588  ;;  %1962 = vadd.xlane.f32.xlu0 %v1961_v16  ;;  %v1973_v33 = vadd.f32 %v1896_v38, %v1895_v18  ;;  %v1903_v18 = vunpack.c.l.bf16 %v4935_v61  ;;  %v1904_v38 = vunpack.c.l.bf16 %v4939_v29 }
 0x28c   : > { %v1665_v12 = vsub.f32 %v5486_v32, %v1589_v35  ;;  %v1666_v7 = vsub.f32 %v5487_v60, %v1589_v35  ;;  %1959 = vadd.xlane.f32.xlu1 %v1958_v39  ;;  %v1900_v39 = vunpack.c.l.bf16 %v4921_v14  ;;  %v1970_v11 = vadd.f32 %v1894_v22, %v1893_v36 }
 0x28d   : > { %v1901_v36 = vunpack.c.h.bf16 %v4919_v57  ;;  %v1902_v22 = vunpack.c.h.bf16 %v4921_v14  ;;  %v1906_v57 = vunpack.c.h.bf16 %v4939_v29 }
 0x28e   : > { %v1701_v37 = vpack.c.bf16 %v1665_v12, %v1663_v49  ;;  %v1702_v10 = vpack.c.bf16 %v1666_v7, %v1664_v41  ;;  %v5489_v41 = vld [vmem:[#allocation55_spill] sm:$0xff]  ;;  %v5490_v12 = vld [vmem:[#allocation56_spill] sm:$0xff]  ;;  %v5491_v7 = vld [vmem:[#allocation57_spill] sm:$0xff]  ;;  %v1979_v13 = vadd.f32 %v1900_v39, %v1899_v27 }
 0x28f   : > { %1968 = vadd.xlane.f32.xlu0 %v1967_v53  ;;  %v1594_v31 = vpop.permute.xlu1 %1593  ;;  %v1982_v14 = vadd.f32 %v1902_v22, %v1901_v36  ;;  %v1910_v36 = vunpack.c.h.bf16 %v4958_v42 }
 0x290   : > { %v4973_v44 = vpop.eup %3695  ;;  %v1786_v16 = vmul.bf16 1069105081, %v1701_v37  ;;  %v1789_v28 = vmul.bf16 1069105081, %v1702_v10  ;;  %1965 = vadd.xlane.f32.xlu1 %v1964_v6  ;;  %v1667_v2 = vsub.f32 %v5488_v54, %v1594_v31  ;;  %v1668_v32 = vsub.f32 %v5489_v41, %v1594_v31 }
 0x291   : > { %v4976_v62 = vpop.eup %3697  ;;  %v1976_v6 = vadd.f32 %v1898_v24, %v1897_v46  ;;  %v1905_v46 = vunpack.c.h.bf16 %v4935_v61  ;;  %v1985_v24 = vadd.f32 %v1904_v38, %v1903_v18  ;;  %v5493_v61 = vld [vmem:[#allocation59_spill] sm:$0xff]  ;;  %v1911_v29 = vunpack.c.l.bf16 %v4973_v44 }
 0x292   : > { %3703 = vpow.bf16 %v1786_v16  ;;  %2532 = vmatprep.mubr.bf16.mxu1 %v4976_v62  ;;  %v1912_v18 = vunpack.c.l.bf16 %v4976_v62 }
 0x293   : > { %3705 = vpow.bf16 %v1789_v28  ;;  %2533 = vmatmul.mubr.bf16.gmra.mxu1 %v4973_v44  ;;  %v1599_v35 = vpop.permute.xlu0 %1598  ;;  %1974 = vadd.xlane.f32.xlu0 %v1973_v33  ;;  %v4983_v49 = vpop.permute.xlu1 %2131 }
 0x294   : > { %v1669_v60 = vsub.f32 %v5490_v12, %v1599_v35  ;;  %v1670_v53 = vsub.f32 %v5491_v7, %v1599_v35  ;;  %1971 = vadd.xlane.f32.xlu1 %v1970_v11  ;;  %v1907_v11 = vunpack.c.l.bf16 %v4955_v25  ;;  %v1908_v35 = vunpack.c.l.bf16 %v4958_v42  ;;  %v5494_v12 = vld [vmem:[#allocation60_spill] sm:$0xff]  ;;  %v5495_v7 = vld [vmem:[#allocation61_spill] sm:$0xff] }
 0x296   : > { %v1703_v37 = vpack.c.bf16 %v1669_v60, %v1667_v2  ;;  %v1704_v10 = vpack.c.bf16 %v1670_v53, %v1668_v32  ;;  %v5492_v2 = vld [vmem:[#allocation58_spill] sm:$0xff] }
 0x297   : > { %v4993_v16 = vpop.permute.xlu0 %2126  ;;  %1980 = vadd.xlane.f32.xlu0 %v1979_v13  ;;  %v1604_v39 = vpop.permute.xlu1 %1603  ;;  %v1991_v13 = vadd.f32 %v1908_v35, %v1907_v11 }
 0x298   : > { %v4995_v31 = vpop.eup %3699  ;;  %v1792_v28 = vmul.bf16 1069105081, %v1703_v37  ;;  %v1795_v33 = vmul.bf16 1069105081, %v1704_v10  ;;  %1977 = vadd.xlane.f32.xlu1 %v1976_v6  ;;  %v1671_v41 = vsub.f32 %v5492_v2, %v1604_v39  ;;  %v1672_v32 = vsub.f32 %v5493_v61, %v1604_v39 }
 0x299   : > { %v3702_v27 = vpop.eup %3701  ;;  %v1988_v6 = vadd.f32 %v1906_v57, %v1905_v46  ;;  %v1909_v10 = vunpack.c.h.bf16 %v4955_v25  ;;  %v1915_v11 = vunpack.c.l.bf16 %v4995_v31  ;;  %v1913_v57 = vunpack.c.h.bf16 %v4973_v44 }
 0x29a   : > { %3707 = vpow.bf16 %v1792_v28  ;;  %2540 = vmatprep.mubr.bf16.mxu1 %v3702_v27  ;;  %v1916_v46 = vunpack.c.l.bf16 %v3702_v27  ;;  %v1918_v61 = vunpack.c.h.bf16 %v3702_v27 }
 0x29b   : > { %3709 = vpow.bf16 %v1795_v33  ;;  %2541 = vmatmul.mubr.bf16.gmra.mxu1 %v4995_v31  ;;  %v1609_v54 = vpop.permute.xlu0 %1608  ;;  %1986 = vadd.xlane.f32.xlu0 %v1985_v24  ;;  %v1997_v24 = vadd.f32 %v1912_v18, %v1911_v29  ;;  %v1994_v35 = vadd.f32 %v1910_v36, %v1909_v10 }
 0x29c   : > { %v1673_v60 = vsub.f32 %v5494_v12, %v1609_v54  ;;  %v1674_v53 = vsub.f32 %v5495_v7, %v1609_v54  ;;  %1983 = vadd.xlane.f32.xlu1 %v1982_v14  ;;  %v1914_v14 = vunpack.c.h.bf16 %v4976_v62  ;;  %v2003_v25 = vadd.f32 %v1916_v46, %v1915_v11 }
 0x29e   : > { %v1705_v38 = vpack.c.bf16 %v1673_v60, %v1671_v41  ;;  %v1706_v37 = vpack.c.bf16 %v1674_v53, %v1672_v32  ;;  %v2000_v2 = vadd.f32 %v1914_v14, %v1913_v57  ;;  %v1917_v41 = vunpack.c.h.bf16 %v4995_v31 }
 0x29f   : > { %1992 = vadd.xlane.f32.xlu0 %v1991_v13  ;;  %v5016_v18 = vpop.permute.xlu0 %2141  ;;  %v5496_v14 = vsub.f32 %v4670_v1, %v4683_v43 }
 0x2a0   : > { %v3704_v22 = vpop.eup %3703  ;;  %v1798_v28 = vmul.bf16 1069105081, %v1705_v38  ;;  %v1801_v33 = vmul.bf16 1069105081, %v1706_v37  ;;  %1989 = vadd.xlane.f32.xlu1 %v1988_v6  ;;  %v2006_v44 = vadd.f32 %v1918_v61, %v1917_v41  ;;  %v5014_v6 = vpop.permute.xlu1 %2136 }
 0x2a1   : > { %v3706_v39 = vpop.eup %3705  ;;  %v1919_v42 = vunpack.c.l.bf16 %v3704_v22  ;;  %v1921_v53 = vunpack.c.h.bf16 %v3704_v22 }
 0x2a2   : > { %3711 = vpow.bf16 %v1798_v28  ;;  %2548 = vmatprep.mubr.bf16.mxu1 %v3706_v39  ;;  %v1920_v54 = vunpack.c.l.bf16 %v3706_v39  ;;  %v1922_v13 = vunpack.c.h.bf16 %v3706_v39 }
 0x2a3   : > { %3713 = vpow.bf16 %v1801_v33  ;;  %2549 = vmatmul.mubr.bf16.gmra.mxu1 %v3704_v22  ;;  %1998 = vadd.xlane.f32.xlu0 %v1997_v24  ;;  %v5020_v11 = vpop.permute.xlu0 %2151 }
 0x2a4   : > { %1995 = vadd.xlane.f32.xlu1 %v1994_v35  ;;  %v2009_v60 = vadd.f32 %v1920_v54, %v1919_v42  ;;  %v2012_v31 = vadd.f32 %v1922_v13, %v1921_v53  ;;  %v5018_v24 = vpop.permute.xlu1 %2146 }
 0x2a7   : > { %2004 = vadd.xlane.f32.xlu0 %v2003_v25  ;;  %v1449_v25 = vmul.f32 1.442695, %v5496_v14  ;;  %v5027_v42 = vpop.permute.xlu0 %2161 }
 0x2a8   : > { %v3708_v32 = vpop.eup %3707  ;;  %2001 = vadd.xlane.f32.xlu1 %v2000_v2  ;;  %v5022_v57 = vpop.permute.xlu1 %2156 }
 0x2a9   : > { %v3710_v12 = vpop.eup %3709  ;;  %v1923_v7 = vunpack.c.l.bf16 %v3708_v32  ;;  %v1925_v27 = vunpack.c.h.bf16 %v3708_v32  ;;  %3715 = vpow2.f32 %v1449_v25 }
 0x2aa   : > { %2556 = vmatprep.mubr.bf16.mxu1 %v3710_v12  ;;  %v1924_v62 = vunpack.c.l.bf16 %v3710_v12  ;;  %v1926_v38 = vunpack.c.h.bf16 %v3710_v12 }
 0x2ab   : > { %2557 = vmatmul.mubr.bf16.gmra.mxu1 %v3708_v32  ;;  %2010 = vadd.xlane.f32.xlu0 %v2009_v60  ;;  %v5031_v2 = vpop.permute.xlu0 %2171 }
 0x2ac   : > { %2007 = vadd.xlane.f32.xlu1 %v2006_v44  ;;  %v2015_v29 = vadd.f32 %v1924_v62, %v1923_v7  ;;  %v2018_v28 = vadd.f32 %v1926_v38, %v1925_v27  ;;  %v5029_v54 = vpop.permute.xlu1 %2166 }
 0x2af   : > { %2016 = vadd.xlane.f32.xlu0 %v2015_v29  ;;  %v5035_v61 = vpop.permute.xlu0 %2181 }
 0x2b0   : > { %v3712_v37 = vpop.eup %3711  ;;  %2013 = vadd.xlane.f32.xlu1 %v2012_v31  ;;  %v5033_v41 = vpop.permute.xlu1 %2176 }
 0x2b1   : > { %v3714_v10 = vpop.eup %3713  ;;  %v1927_v36 = vunpack.c.l.bf16 %v3712_v37  ;;  %v1929_v33 = vunpack.c.h.bf16 %v3712_v37 }
 0x2b2   : > { %2564 = vmatprep.mubr.bf16.mxu1 %v3714_v10  ;;  %v1928_v22 = vunpack.c.l.bf16 %v3714_v10  ;;  %v1930_v39 = vunpack.c.h.bf16 %v3714_v10 }
 0x2b3   : > { %2565 = vmatmul.mubr.bf16.gmra.mxu1 %v3712_v37  ;;  %v5041_v60 = vpop.permute.xlu0 %2191 }
 0x2b4   : > { %2019 = vadd.xlane.f32.xlu1 %v2018_v28  ;;  %v2021_v46 = vadd.f32 %v1928_v22, %v1927_v36  ;;  %v2024_v35 = vadd.f32 %v1930_v39, %v1929_v33  ;;  %v5039_v12 = vpop.permute.xlu1 %2186  ;;  %v2092_v28 = vld [vmem:[#allocation5] sm:$0xff] }
 0x2b5   : > { %v2284_v14 = vmul.f32 %v4993_v16, %v2092_v28 }
 0x2b6   : > { %2022 = vadd.xlane.f32.xlu0 %v2021_v46  ;;  %v5037_v32 = vpop.eup %3715  ;;  %v1804_v46 = vld [vmem:[#allocation4 + $0x8] sm:$0xff] }
 0x2b7   : > { %v5046_v43 = vpop.permute.xlu0 %2201 }
 0x2b8   : > { %2025 = vadd.xlane.f32.xlu1 %v2024_v35  ;;  %v5044_v1 = vpop.permute.xlu1 %2196 }
 0x2bb   : > { %v5050_v44 = vpop.permute.xlu0 %2211 }
 0x2bc   : > { %v5048_v7 = vpop.permute.xlu1 %2206  ;;  %5497 = vst [vmem:[#allocation63_spill] sm:$0xff] %v5050_v44  ;;  %v2094_v44 = vld [vmem:[#allocation5 + $0x10] sm:$0xff] }
 0x2bf   : > { %v5054_v53 = vpop.permute.xlu0 %2221 }
 0x2c0   : > { %v5052_v62 = vpop.permute.xlu1 %2216  ;;  %5499 = vst [vmem:[#allocation65_spill] sm:$0xff] %v5054_v53 }
 0x2c1   : > { %5498 = vst [vmem:[#allocation62_spill] sm:$0xff] %v5052_v62 }
 0x2c3   : > { %v5058_v29 = vpop.permute.xlu0 %2231 }
 0x2c4   : > { %v5056_v13 = vpop.permute.xlu1 %2226  ;;  %5501 = vst [vmem:[#allocation10_spill] sm:$0xff] %v5058_v29 }
 0x2c5   : > { %5500 = vst [vmem:[#allocation64_spill] sm:$0xff] %v5056_v13 }
 0x2c7   : > { %v5062_v27 = vpop.permute.xlu0 %2241 }
 0x2c8   : > { %v5060_v31 = vpop.permute.xlu1 %2236  ;;  %5503 = vst [vmem:[#allocation12_spill] sm:$0xff] %v5062_v27  ;;  %v2093_v27 = vld [vmem:[#allocation5 + $0x8] sm:$0xff] }
 0x2c9   : > { %5502 = vst [vmem:[#allocation11_spill] sm:$0xff] %v5060_v31  ;;  %v2285_v62 = vmul.f32 %v4983_v49, %v2093_v27  ;;  %v2286_v49 = vmul.f32 %v5014_v6, %v2094_v44  ;;  %v1808_v44 = vld [vmem:[#allocation4 + $0x28] sm:$0xff] }
 0x2cb   : > { %v5066_v37 = vpop.permute.xlu0 %2251 }
 0x2cc   : > { %2281 = vperm.xlu0 %3539, %v5037_v32   ;;  %v5064_v38 = vpop.permute.xlu1 %2246  ;;  %5505 = vst [vmem:[#allocation14_spill] sm:$0xff] %v5066_v37 }
 0x2cd   : > { %5504 = vst [vmem:[#allocation13_spill] sm:$0xff] %v5064_v38  ;;  %v1836_v38 = vmul.f32 %v4651_v45, %v1804_v46 }
 0x2cf   : > { %v5070_v36 = vpop.permute.xlu0 %2261 }
 0x2d0   : > { %v5068_v10 = vpop.permute.xlu1 %2256  ;;  %5507 = vst [vmem:[#allocation16_spill] sm:$0xff] %v5070_v36 }
 0x2d1   : > { %5506 = vst [vmem:[#allocation15_spill] sm:$0xff] %v5068_v10  ;;  %v1805_v10 = vld [vmem:[#allocation4 + $0x10] sm:$0xff] }
 0x2d2   : > { %v1837_v28 = vmul.f32 %v4685_v56, %v1805_v10 }
 0x2d3   : > { %v5074_v39 = vpop.permute.xlu0 %2271 }
 0x2d4   : > { %v5072_v22 = vpop.permute.xlu1 %2266  ;;  %5509 = vst [vmem:[#allocation18_spill] sm:$0xff] %v5074_v39 }
 0x2d5   : > { %5508 = vst [vmem:[#allocation17_spill] sm:$0xff] %v5072_v22  ;;  %v1803_v22 = vld [vmem:[#allocation4] sm:$0xff] }
 0x2d6   : > { %v1835_v46 = vmul.f32 %v4668_v4, %v1803_v22 }
 0x2d8   : > { %v5078_v13 = vpop.permute.xlu1 %2276 }
 0x2fb   : > { %v3408_v33 = vpop.f32.mrf.mxu1 }
 0x2fd   : > { %v3409_v35 = vpop.f32.mrf.mxu1 }
 0x2fe   : > { %v3410_v25 = vadd.f32 %v3409_v35, %v3408_v33  ;;  %v1807_v35 = vld [vmem:[#allocation4 + $0x20] sm:$0xff] }
 0x2ff   : > { %v3411_v31 = vpop.f32.mrf.mxu1  ;;  %v1839_v56 = vmul.f32 %v4701_v48, %v1807_v35 }
 0x300   : > { %v2573_v37 = vadd.f32 %v3410_v25, %v2284_v14  ;;  %v1936_v29 = vpop.xlane.xlu0 %1935 }
 0x301   : > { %v3412_v36 = vpop.f32.mrf.mxu1  ;;  %v2028_v53 = vadd.f32 %v1936_v29, %v1836_v38  ;;  %v1806_v38 = vld [vmem:[#allocation4 + $0x18] sm:$0xff] }
 0x302   : > { %2605 = vst.msk [vmem:[#allocation5] sm:$0xff] %vm616_vm0, %v2573_v37  ;;  %v3413_v39 = vadd.f32 %v3412_v36, %v3411_v31  ;;  %v2095_v37 = vld [vmem:[#allocation5 + $0x18] sm:$0xff]  ;;  %v1838_v10 = vmul.f32 %v4696_v30, %v1806_v38  ;;  %v1809_v36 = vld [vmem:[#allocation4 + $0x30] sm:$0xff] }
 0x303   : > { %2061 = vst.msk [vmem:[#allocation4 + $0x8] sm:$0xff] %vm551_vm2, %v2028_v53  ;;  %v3414_v16 = vpop.f32.mrf.mxu1  ;;  %v1841_v35 = vmul.f32 %v4717_v19, %v1809_v36 }
 0x304   : > { %v2574_v45 = vadd.f32 %v3413_v39, %v2285_v62  ;;  %v1939_v33 = vpop.xlane.xlu0 %1938 }
 0x305   : > { %v3415_v14 = vpop.f32.mrf.mxu1  ;;  %v2029_v25 = vadd.f32 %v1939_v33, %v1837_v28  ;;  %v1933_v29 = vpop.xlane.xlu1 %1932 }
 0x306   : > { %2606 = vst.msk [vmem:[#allocation5 + $0x8] sm:$0xff] %vm616_vm0, %v2574_v45  ;;  %v3416_v31 = vadd.f32 %v3415_v14, %v3414_v16  ;;  %v2027_v27 = vadd.f32 %v1933_v29, %v1835_v46  ;;  %v2287_v16 = vmul.f32 %v5016_v18, %v2095_v37  ;;  %v2096_v46 = vld [vmem:[#allocation5 + $0x20] sm:$0xff] }
 0x307   : > { %2062 = vst.msk [vmem:[#allocation4 + $0x10] sm:$0xff] %vm551_vm2, %v2029_v25  ;;  %v3417_v53 = vpop.f32.mrf.mxu1  ;;  %v1840_v25 = vmul.f32 %v4715_v17, %v1808_v44  ;;  %v1811_v29 = vld [vmem:[#allocation4 + $0x40] sm:$0xff] }
 0x308   : > { %v2575_v62 = vadd.f32 %v3416_v31, %v2286_v49  ;;  %2060 = vst.msk [vmem:[#allocation4] sm:$0xff] %vm551_vm2, %v2027_v27  ;;  %v1945_v4 = vpop.xlane.xlu0 %1944  ;;  %v1810_v31 = vld [vmem:[#allocation4 + $0x38] sm:$0xff]  ;;  %v2288_v27 = vmul.f32 %v5018_v24, %v2096_v46  ;;  %v1813_v24 = vld [vmem:[#allocation4 + $0x50] sm:$0xff] }
 0x309   : > { %v3418_v22 = vpop.f32.mrf.mxu1  ;;  %v2031_v39 = vadd.f32 %v1945_v4, %v1839_v56  ;;  %v1942_v6 = vpop.xlane.xlu1 %1941  ;;  %v2097_v56 = vld [vmem:[#allocation5 + $0x28] sm:$0xff]  ;;  %v1843_v4 = vmul.f32 %v4729_v26, %v1811_v29  ;;  %v2098_v26 = vld [vmem:[#allocation5 + $0x30] sm:$0xff] }
 0x30a   : > { %v2705_v28 = vld [vmem:[#allocation4 + $0x8] sm:$0xff]  ;;  %2607 = vst.msk [vmem:[#allocation5 + $0x10] sm:$0xff] %vm616_vm0, %v2575_v62  ;;  %v3419_v45 = vadd.f32 %v3418_v22, %v3417_v53  ;;  %v2030_v33 = vadd.f32 %v1942_v6, %v1838_v10  ;;  %v1842_v22 = vmul.f32 %v4724_v50, %v1810_v31  ;;  %v2290_v31 = vmul.f32 %v5022_v57, %v2098_v26 }
 0x30b   : > { %3717 = vrcp.f32 %v2705_v28  ;;  %2064 = vst.msk [vmem:[#allocation4 + $0x20] sm:$0xff] %vm551_vm2, %v2031_v39  ;;  %v3420_v48 = vpop.f32.mrf.mxu1  ;;  %v2289_v28 = vmul.f32 %v5020_v11, %v2097_v56 }
 0x30c   : > { %v2576_v30 = vadd.f32 %v3419_v45, %v2287_v16  ;;  %2063 = vst.msk [vmem:[#allocation4 + $0x18] sm:$0xff] %vm551_vm2, %v2030_v33  ;;  %v1951_v14 = vpop.xlane.xlu0 %1950  ;;  %v1812_v16 = vld [vmem:[#allocation4 + $0x48] sm:$0xff] }
 0x30d   : > { %v3421_v18 = vpop.f32.mrf.mxu1  ;;  %v2033_v38 = vadd.f32 %v1951_v14, %v1841_v35  ;;  %v1948_v49 = vpop.xlane.xlu1 %1947  ;;  %v1845_v35 = vmul.f32 %v4747_v34, %v1813_v24  ;;  %v1844_v11 = vmul.f32 %v4743_v5, %v1812_v16  ;;  %v2099_v34 = vld [vmem:[#allocation5 + $0x38] sm:$0xff]  ;;  %v2100_v16 = vld [vmem:[#allocation5 + $0x40] sm:$0xff] }
 0x30e   : > { %2608 = vst.msk [vmem:[#allocation5 + $0x18] sm:$0xff] %vm616_vm0, %v2576_v30  ;;  %v3422_v37 = vadd.f32 %v3421_v18, %v3420_v48  ;;  %v2032_v53 = vadd.f32 %v1948_v49, %v1840_v25  ;;  %v2706_v10 = vld [vmem:[#allocation4 + $0x10] sm:$0xff]  ;;  %v1815_v25 = vld [vmem:[#allocation4 + $0x60] sm:$0xff]  ;;  %v1814_v49 = vld [vmem:[#allocation4 + $0x58] sm:$0xff] }
 0x30f   : > { %v2704_v62 = vld [vmem:[#allocation4] sm:$0xff]  ;;  %2066 = vst.msk [vmem:[#allocation4 + $0x30] sm:$0xff] %vm551_vm2, %v2033_v38  ;;  %v3423_v19 = vpop.f32.mrf.mxu1  ;;  %v1846_v57 = vmul.f32 %v4758_v63, %v1814_v49 }
 0x310   : > { %3719 = vrcp.f32 %v2704_v62  ;;  %v2577_v17 = vadd.f32 %v3422_v37, %v2288_v27  ;;  %2065 = vst.msk [vmem:[#allocation4 + $0x28] sm:$0xff] %vm551_vm2, %v2032_v53  ;;  %v1957_v36 = vpop.xlane.xlu0 %1956  ;;  %v1847_v62 = vmul.f32 %v4760_v15, %v1815_v25  ;;  %v2292_v25 = vmul.f32 %v5029_v54, %v2100_v16 }
 0x311   : > { %v3424_v39 = vpop.f32.mrf.mxu1  ;;  %v2035_v6 = vadd.f32 %v1957_v36, %v1843_v4  ;;  %v1954_v44 = vpop.xlane.xlu1 %1953  ;;  %3721 = vrcp.f32 %v2706_v10 }
 0x312   : > { %2609 = vst.msk [vmem:[#allocation5 + $0x20] sm:$0xff] %vm616_vm0, %v2577_v17  ;;  %v3425_v45 = vadd.f32 %v3424_v39, %v3423_v19  ;;  %v2034_v33 = vadd.f32 %v1954_v44, %v1842_v22  ;;  %v2708_v50 = vld [vmem:[#allocation4 + $0x20] sm:$0xff]  ;;  %v1817_v17 = vld [vmem:[#allocation4 + $0x70] sm:$0xff]  ;;  %v1816_v39 = vld [vmem:[#allocation4 + $0x68] sm:$0xff] }
 0x313   : > { %v2707_v46 = vld [vmem:[#allocation4 + $0x18] sm:$0xff]  ;;  %2068 = vst.msk [vmem:[#allocation4 + $0x40] sm:$0xff] %vm551_vm2, %v2035_v6  ;;  %v3426_v48 = vpop.f32.mrf.mxu1  ;;  %v2291_v6 = vmul.f32 %v5027_v42, %v2099_v34  ;;  %v1849_v63 = vmul.f32 %v4772_v23, %v1817_v17  ;;  %v1848_v42 = vmul.f32 %v4768_v51, %v1816_v39  ;;  %v2102_v17 = vld [vmem:[#allocation5 + $0x50] sm:$0xff] }
 0x314   : > { %3723 = vrcp.f32 %v2707_v46  ;;  %v2578_v30 = vadd.f32 %v3425_v45, %v2289_v28  ;;  %2067 = vst.msk [vmem:[#allocation4 + $0x38] sm:$0xff] %vm551_vm2, %v2034_v33  ;;  %v1963_v14 = vpop.xlane.xlu0 %1962 }
 0x315   : > { %v3427_v29 = vpop.f32.mrf.mxu1  ;;  %v2037_v18 = vadd.f32 %v1963_v14, %v1845_v35  ;;  %v1960_v38 = vpop.xlane.xlu1 %1959  ;;  %3725 = vrcp.f32 %v2708_v50 }
 0x316   : > { %2610 = vst.msk [vmem:[#allocation5 + $0x28] sm:$0xff] %vm616_vm0, %v2578_v30  ;;  %v3428_v27 = vadd.f32 %v3427_v29, %v3426_v48  ;;  %v2036_v37 = vadd.f32 %v1960_v38, %v1844_v11  ;;  %v2710_v19 = vld [vmem:[#allocation4 + $0x30] sm:$0xff]  ;;  %v1819_v48 = vld [vmem:[#allocation4 + $0x80] sm:$0xff]  ;;  %v1818_v11 = vld [vmem:[#allocation4 + $0x78] sm:$0xff] }
 0x317   : > { %v2709_v53 = vld [vmem:[#allocation4 + $0x28] sm:$0xff]  ;;  %2070 = vst.msk [vmem:[#allocation4 + $0x50] sm:$0xff] %vm551_vm2, %v2037_v18  ;;  %v3429_v56 = vpop.f32.mrf.mxu1  ;;  %v1851_v51 = vmul.f32 %v4784_v55, %v1819_v48  ;;  %v1850_v34 = vmul.f32 %v4782_v20, %v1818_v11 }
 0x318   : > { %v3718_v5 = vpop.eup %3717  ;;  %3727 = vrcp.f32 %v2709_v53  ;;  %v2579_v4 = vadd.f32 %v3428_v27, %v2290_v31  ;;  %2069 = vst.msk [vmem:[#allocation4 + $0x48] sm:$0xff] %vm551_vm2, %v2036_v37  ;;  %v1969_v10 = vpop.xlane.xlu0 %1968  ;;  %v2101_v18 = vld [vmem:[#allocation5 + $0x48] sm:$0xff]  ;;  %v1821_v53 = vld [vmem:[#allocation4 + $0x90] sm:$0xff] }
 0x319   : > { %v3430_v36 = vpop.f32.mrf.mxu1  ;;  %v2039_v22 = vadd.f32 %v1969_v10, %v1847_v62  ;;  %2775 = vperm.xlu0 %3539, %v3718_v5   ;;  %v1966_v24 = vpop.xlane.xlu1 %1965  ;;  %3729 = vrcp.f32 %v2710_v19  ;;  %v2293_v10 = vmul.f32 %v5031_v2, %v2101_v18 }
 0x31a   : > { %2611 = vst.msk [vmem:[#allocation5 + $0x30] sm:$0xff] %vm616_vm0, %v2579_v4  ;;  %v3431_v15 = vadd.f32 %v3430_v36, %v3429_v56  ;;  %v2038_v44 = vadd.f32 %v1966_v24, %v1846_v57  ;;  %v2712_v33 = vld [vmem:[#allocation4 + $0x40] sm:$0xff]  ;;  %v1820_v4 = vld [vmem:[#allocation4 + $0x88] sm:$0xff] }
 0x31b   : > { %v2711_v28 = vld [vmem:[#allocation4 + $0x38] sm:$0xff]  ;;  %2072 = vst.msk [vmem:[#allocation4 + $0x60] sm:$0xff] %vm551_vm2, %v2039_v22  ;;  %v3432_v45 = vpop.f32.mrf.mxu1  ;;  %v1853_v22 = vmul.f32 %v4800_v9, %v1821_v53 }
 0x31c   : > { %3731 = vrcp.f32 %v2711_v28  ;;  %v2580_v26 = vadd.f32 %v3431_v15, %v2291_v6  ;;  %2071 = vst.msk [vmem:[#allocation4 + $0x58] sm:$0xff] %vm551_vm2, %v2038_v44  ;;  %v1975_v46 = vpop.xlane.xlu0 %1974  ;;  %v1852_v15 = vmul.f32 %v4794_v58, %v1820_v4  ;;  %v1823_v44 = vld [vmem:[#allocation4 + $0xa0] sm:$0xff] }
 0x31d   : > { %v3720_v35 = vpop.eup %3719  ;;  %v3433_v50 = vpop.f32.mrf.mxu1  ;;  %v2041_v30 = vadd.f32 %v1975_v46, %v1849_v63  ;;  %3733 = vrcp.f32 %v2712_v33  ;;  %v1822_v33 = vld [vmem:[#allocation4 + $0x98] sm:$0xff] }
 0x31e   : > { %v1972_v14 = vpop.xlane.xlu1 %1971  ;;  %2612 = vst.msk [vmem:[#allocation5 + $0x38] sm:$0xff] %vm616_vm0, %v2580_v26  ;;  %v3434_v29 = vadd.f32 %v3433_v50, %v3432_v45  ;;  %2770 = vperm.xlu1 %3540, %v3720_v35   ;;  %v3722_v31 = vpop.eup %3721  ;;  %v2714_v27 = vld [vmem:[#allocation4 + $0x50] sm:$0xff]  ;;  %v2294_v26 = vmul.f32 %v5033_v41, %v2102_v17  ;;  %v1855_v35 = vmul.f32 %v4812_v0, %v1823_v44 }
 0x31f   : > { %v2040_v23 = vadd.f32 %v1972_v14, %v1848_v42  ;;  %v2713_v38 = vld [vmem:[#allocation4 + $0x48] sm:$0xff]  ;;  %2074 = vst.msk [vmem:[#allocation4 + $0x70] sm:$0xff] %vm551_vm2, %v2041_v30  ;;  %v3435_v49 = vpop.f32.mrf.mxu1  ;;  %v2103_v42 = vld [vmem:[#allocation5 + $0x58] sm:$0xff]  ;;  %v1854_v11 = vmul.f32 %v4810_v3, %v1822_v33  ;;  %v1829_v44 = vld [vmem:[#allocation4 + $0xd0] sm:$0xff] }
 0x320   : > { %3735 = vrcp.f32 %v2713_v38  ;;  %v2581_v37 = vadd.f32 %v3434_v29, %v2292_v25  ;;  %v1981_v54 = vpop.xlane.xlu0 %1980  ;;  %v1825_v25 = vld [vmem:[#allocation4 + $0xb0] sm:$0xff]  ;;  %v1828_v33 = vld [vmem:[#allocation4 + $0xc8] sm:$0xff] }
 0x321   : > { %2073 = vst.msk [vmem:[#allocation4 + $0x68] sm:$0xff] %vm551_vm2, %v2040_v23  ;;  %v3724_v56 = vpop.eup %3723  ;;  %v3436_v62 = vpop.f32.mrf.mxu1  ;;  %v2043_v5 = vadd.f32 %v1981_v54, %v1851_v51  ;;  %3737 = vrcp.f32 %v2714_v27  ;;  %v2295_v51 = vmul.f32 %v5035_v61, %v2103_v42  ;;  %v2104_v27 = vld [vmem:[#allocation5 + $0x60] sm:$0xff]  ;;  %v1857_v54 = vmul.f32 %v4826_v52, %v1825_v25 }
 0x322   : > { %v1978_v19 = vpop.xlane.xlu1 %1977  ;;  %2613 = vst.msk [vmem:[#allocation5 + $0x40] sm:$0xff] %vm616_vm0, %v2581_v37  ;;  %v3437_v55 = vadd.f32 %v3436_v62, %v3435_v49  ;;  %2780 = vperm.xlu1 %3540, %v3722_v31   ;;  %2785 = vperm.xlu0 %3539, %v3724_v56   ;;  %v3726_v24 = vpop.eup %3725  ;;  %v2716_v39 = vld [vmem:[#allocation4 + $0x60] sm:$0xff]  ;;  %v1824_v49 = vld [vmem:[#allocation4 + $0xa8] sm:$0xff]  ;;  %v2296_v17 = vmul.f32 %v5039_v12, %v2104_v27 }
 0x323   : > { %v2042_v57 = vadd.f32 %v1978_v19, %v1850_v34  ;;  %v2715_v36 = vld [vmem:[#allocation4 + $0x58] sm:$0xff]  ;;  %2076 = vst.msk [vmem:[#allocation4 + $0x80] sm:$0xff] %vm551_vm2, %v2043_v5  ;;  %v3438_v20 = vpop.f32.mrf.mxu1  ;;  %v1856_v62 = vmul.f32 %v4822_v47, %v1824_v49  ;;  %v1827_v5 = vld [vmem:[#allocation4 + $0xc0] sm:$0xff] }
 0x324   : > { %3739 = vrcp.f32 %v2715_v36  ;;  %v2582_v6 = vadd.f32 %v3437_v55, %v2293_v10  ;;  %v1987_v2 = vpop.xlane.xlu0 %1986  ;;  %v2107_v49 = vld [vmem:[#allocation5 + $0x78] sm:$0xff] }
 0x325   : > { %2075 = vst.msk [vmem:[#allocation4 + $0x78] sm:$0xff] %vm551_vm2, %v2042_v57  ;;  %v3728_v16 = vpop.eup %3727  ;;  %v3439_v28 = vpop.f32.mrf.mxu1  ;;  %v2045_v45 = vadd.f32 %v1987_v2, %v1853_v22  ;;  %3741 = vrcp.f32 %v2716_v39  ;;  %v1826_v57 = vld [vmem:[#allocation4 + $0xb8] sm:$0xff] }
 0x326   : > { %v1984_v63 = vpop.xlane.xlu1 %1983  ;;  %2614 = vst.msk [vmem:[#allocation5 + $0x48] sm:$0xff] %vm616_vm0, %v2582_v6  ;;  %v3440_v9 = vadd.f32 %v3439_v28, %v3438_v20  ;;  %2790 = vperm.xlu1 %3540, %v3726_v24   ;;  %2795 = vperm.xlu0 %3539, %v3728_v16   ;;  %v3730_v50 = vpop.eup %3729  ;;  %v2718_v30 = vld [vmem:[#allocation4 + $0x70] sm:$0xff]  ;;  %v2105_v20 = vld [vmem:[#allocation5 + $0x68] sm:$0xff]  ;;  %v1859_v24 = vmul.f32 %v4839_v40, %v1827_v5 }
 0x327   : > { %v2044_v46 = vadd.f32 %v1984_v63, %v1852_v15  ;;  %2078 = vst.msk [vmem:[#allocation4 + $0x90] sm:$0xff] %vm551_vm2, %v2045_v45  ;;  %v3441_v58 = vpop.f32.mrf.mxu1  ;;  %v1858_v15 = vmul.f32 %v4835_v21, %v1826_v57  ;;  %v1832_v5 = vld [vmem:[#allocation4 + $0xe8] sm:$0xff]  ;;  %v2108_v57 = vld [vmem:[#allocation5 + $0x80] sm:$0xff] }
 0x328   : > { %v2717_v48 = vld [vmem:[#allocation4 + $0x68] sm:$0xff]  ;;  %v2583_v14 = vadd.f32 %v3440_v9, %v2294_v26  ;;  %v1993_v41 = vpop.xlane.xlu0 %1992  ;;  %v2297_v26 = vmul.f32 %v5041_v60, %v2105_v20 }
 0x329   : > { %3743 = vrcp.f32 %v2717_v48  ;;  %2077 = vst.msk [vmem:[#allocation4 + $0x88] sm:$0xff] %vm551_vm2, %v2044_v46  ;;  %v3732_v29 = vpop.eup %3731  ;;  %v3442_v23 = vpop.f32.mrf.mxu1  ;;  %v2047_v18 = vadd.f32 %v1993_v41, %v1855_v35  ;;  %v2106_v46 = vld [vmem:[#allocation5 + $0x70] sm:$0xff]  ;;  %v1861_v48 = vmul.f32 %v4850_v59, %v1829_v44  ;;  %v2300_v44 = vmul.f32 %v5048_v7, %v2108_v57 }
 0x32a   : > { %v1990_v38 = vpop.xlane.xlu1 %1989  ;;  %2615 = vst.msk [vmem:[#allocation5 + $0x50] sm:$0xff] %vm616_vm0, %v2583_v14  ;;  %v3443_v0 = vadd.f32 %v3442_v23, %v3441_v58  ;;  %2800 = vperm.xlu1 %3540, %v3730_v50   ;;  %2805 = vperm.xlu0 %3539, %v3732_v29   ;;  %3745 = vrcp.f32 %v2718_v30  ;;  %v3734_v34 = vpop.eup %3733  ;;  %v2720_v53 = vld [vmem:[#allocation4 + $0x80] sm:$0xff]  ;;  %v1860_v30 = vmul.f32 %v4843_v8, %v1828_v33  ;;  %v1830_v23 = vld [vmem:[#allocation4 + $0xd8] sm:$0xff] }
 0x32b   : > { %v2046_v31 = vadd.f32 %v1990_v38, %v1854_v11  ;;  %2080 = vst.msk [vmem:[#allocation4 + $0xa0] sm:$0xff] %vm551_vm2, %v2047_v18  ;;  %v3444_v3 = vpop.f32.mrf.mxu1  ;;  %v1831_v14 = vld [vmem:[#allocation4 + $0xe0] sm:$0xff]  ;;  %v2298_v18 = vmul.f32 %v5044_v1, %v2106_v46 }
 0x32c   : > { %v2719_v37 = vld [vmem:[#allocation4 + $0x78] sm:$0xff]  ;;  %v2584_v56 = vadd.f32 %v3443_v0, %v2295_v51  ;;  %v1999_v61 = vpop.xlane.xlu0 %1998  ;;  %v5510_v0 = vld [vmem:[#allocation7_spill] sm:$0xff] }
 0x32d   : > { %3747 = vrcp.f32 %v2719_v37  ;;  %2079 = vst.msk [vmem:[#allocation4 + $0x98] sm:$0xff] %vm551_vm2, %v2046_v31  ;;  %v3736_v19 = vpop.eup %3735  ;;  %v3445_v4 = vpop.f32.mrf.mxu1  ;;  %v2049_v10 = vadd.f32 %v1999_v61, %v1857_v54  ;;  %v1863_v31 = vmul.f32 %v5510_v0, %v1831_v14  ;;  %v5511_v54 = vld [vmem:[#allocation6_spill] sm:$0xff]  ;;  %v2110_v14 = vld [vmem:[#allocation5 + $0x90] sm:$0xff] }
 0x32e   : > { %v1996_v55 = vpop.xlane.xlu1 %1995  ;;  %2616 = vst.msk [vmem:[#allocation5 + $0x58] sm:$0xff] %vm616_vm0, %v2584_v56  ;;  %v3446_v52 = vadd.f32 %v3445_v4, %v3444_v3  ;;  %2810 = vperm.xlu1 %3540, %v3734_v34   ;;  %2815 = vperm.xlu0 %3539, %v3736_v19   ;;  %3749 = vrcp.f32 %v2720_v53  ;;  %v3738_v39 = vpop.eup %3737  ;;  %v2722_v6 = vld [vmem:[#allocation4 + $0x90] sm:$0xff]  ;;  %v1862_v34 = vmul.f32 %v5511_v54, %v1830_v23  ;;  %v5516_v54 = vld [vmem:[#allocation65_spill] sm:$0xff] }
 0x32f   : > { %v2048_v36 = vadd.f32 %v1996_v55, %v1856_v62  ;;  %2082 = vst.msk [vmem:[#allocation4 + $0xb0] sm:$0xff] %vm551_vm2, %v2049_v10  ;;  %v3447_v47 = vpop.f32.mrf.mxu1  ;;  %v2299_v19 = vmul.f32 %v5046_v43, %v2107_v49  ;;  %v1833_v55 = vld [vmem:[#allocation4 + $0xf0] sm:$0xff] }
 0x330   : > { %v2721_v22 = vld [vmem:[#allocation4 + $0x88] sm:$0xff]  ;;  %v2585_v2 = vadd.f32 %v3446_v52, %v2296_v17  ;;  %v2005_v12 = vpop.xlane.xlu0 %2004  ;;  %v5512_v43 = vld [vmem:[#allocation8_spill] sm:$0xff] }
 0x331   : > { %3751 = vrcp.f32 %v2721_v22  ;;  %2081 = vst.msk [vmem:[#allocation4 + $0xa8] sm:$0xff] %vm551_vm2, %v2048_v36  ;;  %v3740_v16 = vpop.eup %3739  ;;  %v3448_v28 = vpop.f32.mrf.mxu1  ;;  %v2051_v45 = vadd.f32 %v2005_v12, %v1859_v24 }
 0x332   : > { %v2002_v63 = vpop.xlane.xlu1 %2001  ;;  %2617 = vst.msk [vmem:[#allocation5 + $0x60] sm:$0xff] %vm616_vm0, %v2585_v2  ;;  %v3449_v40 = vadd.f32 %v3448_v28, %v3447_v47  ;;  %2820 = vperm.xlu1 %3540, %v3738_v39   ;;  %2825 = vperm.xlu0 %3539, %v3740_v16   ;;  %3753 = vrcp.f32 %v2722_v6  ;;  %v3742_v58 = vpop.eup %3741  ;;  %v2724_v35 = vld [vmem:[#allocation4 + $0xa0] sm:$0xff]  ;;  %v1864_v47 = vmul.f32 %v5512_v43, %v1832_v5  ;;  %v5513_v2 = vld [vmem:[#allocation9_spill] sm:$0xff] }
 0x333   : > { %v2050_v9 = vadd.f32 %v2002_v63, %v1858_v15  ;;  %2084 = vst.msk [vmem:[#allocation4 + $0xc0] sm:$0xff] %vm551_vm2, %v2051_v45  ;;  %v3450_v21 = vpop.f32.mrf.mxu1  ;;  %v1865_v12 = vmul.f32 %v5513_v2, %v1833_v55  ;;  %v1834_v15 = vld [vmem:[#allocation4 + $0xf8] sm:$0xff]  ;;  %v2109_v45 = vld [vmem:[#allocation5 + $0x88] sm:$0xff]  ;;  %v5517_v55 = vld [vmem:[#allocation64_spill] sm:$0xff] }
 0x334   : > { %v2723_v42 = vld [vmem:[#allocation4 + $0x98] sm:$0xff]  ;;  %v2586_v50 = vadd.f32 %v3449_v40, %v2297_v26  ;;  %v2011_v60 = vpop.xlane.xlu0 %2010  ;;  %v1866_v7 = vmul.f32 %v5037_v32, %v1834_v15  ;;  %v2114_v2 = vld [vmem:[#allocation5 + $0xb0] sm:$0xff] }
 0x335   : > { %3755 = vrcp.f32 %v2723_v42  ;;  %2083 = vst.msk [vmem:[#allocation4 + $0xb8] sm:$0xff] %vm551_vm2, %v2050_v9  ;;  %v3451_v11 = vpop.f32.mrf.mxu1  ;;  %v2053_v25 = vadd.f32 %v2011_v60, %v1861_v48 }
 0x336   : > { %v3744_v41 = vpop.eup %3743  ;;  %v2008_v29 = vpop.xlane.xlu1 %2007  ;;  %2618 = vst.msk [vmem:[#allocation5 + $0x68] sm:$0xff] %vm616_vm0, %v2586_v50  ;;  %v3452_v59 = vadd.f32 %v3451_v11, %v3450_v21  ;;  %2830 = vperm.xlu1 %3540, %v3742_v58   ;;  %3757 = vrcp.f32 %v2724_v35  ;;  %v2726_v37 = vld [vmem:[#allocation4 + $0xb0] sm:$0xff]  ;;  %v5514_v35 = vld [vmem:[#allocation63_spill] sm:$0xff] }
 0x337   : > { %v2052_v38 = vadd.f32 %v2008_v29, %v1860_v30  ;;  %2835 = vperm.xlu0 %3539, %v3744_v41   ;;  %2086 = vst.msk [vmem:[#allocation4 + $0xd0] sm:$0xff] %vm551_vm2, %v2053_v25  ;;  %v3453_v8 = vpop.f32.mrf.mxu1  ;;  %v3746_v27 = vpop.eup %3745  ;;  %v2301_v50 = vmul.f32 %v5514_v35, %v2109_v45  ;;  %v5519_v45 = vld [vmem:[#allocation11_spill] sm:$0xff]  ;;  %v2116_v35 = vld [vmem:[#allocation5 + $0xc0] sm:$0xff] }
 0x338   : > { %v2725_v51 = vld [vmem:[#allocation4 + $0xa8] sm:$0xff]  ;;  %v2587_v3 = vadd.f32 %v3452_v59, %v2298_v18  ;;  %v2017_v1 = vpop.xlane.xlu0 %2016  ;;  %v5515_v59 = vld [vmem:[#allocation62_spill] sm:$0xff] }
 0x339   : > { %3759 = vrcp.f32 %v2725_v51  ;;  %2085 = vst.msk [vmem:[#allocation4 + $0xc8] sm:$0xff] %vm551_vm2, %v2052_v38  ;;  %v3454_v56 = vpop.f32.mrf.mxu1  ;;  %v2055_v61 = vadd.f32 %v2017_v1, %v1863_v31  ;;  %v2302_v38 = vmul.f32 %v5515_v59, %v2110_v14  ;;  %v2111_v51 = vld [vmem:[#allocation5 + $0x98] sm:$0xff] }
 0x33a   : > { %v3748_v53 = vpop.eup %3747  ;;  %v2014_v62 = vpop.xlane.xlu1 %2013  ;;  %2619 = vst.msk [vmem:[#allocation5 + $0x70] sm:$0xff] %vm616_vm0, %v2587_v3  ;;  %v3455_v4 = vadd.f32 %v3454_v56, %v3453_v8  ;;  %2840 = vperm.xlu1 %3540, %v3746_v27   ;;  %3761 = vrcp.f32 %v2726_v37  ;;  %v2728_v20 = vld [vmem:[#allocation4 + $0xc0] sm:$0xff]  ;;  %v5521_v14 = vld [vmem:[#allocation13_spill] sm:$0xff] }
 0x33b   : > { %v2054_v10 = vadd.f32 %v2014_v62, %v1862_v34  ;;  %2845 = vperm.xlu0 %3539, %v3748_v53   ;;  %2088 = vst.msk [vmem:[#allocation4 + $0xe0] sm:$0xff] %vm551_vm2, %v2055_v61  ;;  %v3456_v52 = vpop.f32.mrf.mxu1  ;;  %v3750_v36 = vpop.eup %3749  ;;  %v2303_v34 = vmul.f32 %v5516_v54, %v2111_v51  ;;  %v2112_v56 = vld [vmem:[#allocation5 + $0xa0] sm:$0xff] }
 0x33c   : > { %v2727_v17 = vld [vmem:[#allocation4 + $0xb8] sm:$0xff]  ;;  %v2588_v22 = vadd.f32 %v3455_v4, %v2299_v19  ;;  %v2304_v57 = vmul.f32 %v5517_v55, %v2112_v56 }
 0x33d   : > { %3763 = vrcp.f32 %v2727_v17  ;;  %2087 = vst.msk [vmem:[#allocation4 + $0xd8] sm:$0xff] %vm551_vm2, %v2054_v10  ;;  %v3457_v39 = vpop.f32.mrf.mxu1 }
 0x33e   : > { %v3752_v24 = vpop.eup %3751  ;;  %v2020_v6 = vpop.xlane.xlu1 %2019  ;;  %2620 = vst.msk [vmem:[#allocation5 + $0x78] sm:$0xff] %vm616_vm0, %v2588_v22  ;;  %v3458_v16 = vadd.f32 %v3457_v39, %v3456_v52  ;;  %2850 = vperm.xlu1 %3540, %v3750_v36   ;;  %3765 = vrcp.f32 %v2728_v20  ;;  %v2730_v9 = vld [vmem:[#allocation4 + $0xd0] sm:$0xff]  ;;  %v2113_v52 = vld [vmem:[#allocation5 + $0xa8] sm:$0xff] }
 0x33f   : > { %v2056_v28 = vadd.f32 %v2020_v6, %v1864_v47  ;;  %2855 = vperm.xlu0 %3539, %v3752_v24   ;;  %v3459_v33 = vpop.f32.mrf.mxu1  ;;  %v2023_v26 = vpop.xlane.xlu0 %2022  ;;  %v5518_v24 = vld [vmem:[#allocation10_spill] sm:$0xff] }
 0x340   : > { %v2729_v63 = vld [vmem:[#allocation4 + $0xc8] sm:$0xff]  ;;  %v3754_v40 = vpop.eup %3753  ;;  %v2589_v46 = vadd.f32 %v3458_v16, %v2300_v44  ;;  %v2057_v42 = vadd.f32 %v2023_v26, %v1865_v12  ;;  %v2305_v39 = vmul.f32 %v5518_v24, %v2113_v52  ;;  %v2115_v26 = vld [vmem:[#allocation5 + $0xb8] sm:$0xff]  ;;  %v2122_v24 = vld [vmem:[#allocation5 + $0xf0] sm:$0xff] }
 0x341   : > { %3767 = vrcp.f32 %v2729_v63  ;;  %2089 = vst.msk [vmem:[#allocation4 + $0xe8] sm:$0xff] %vm551_vm2, %v2056_v28  ;;  %v3460_v48 = vpop.f32.mrf.mxu1  ;;  %v2306_v63 = vmul.f32 %v5519_v45, %v2114_v2 }
 0x342   : > { %v3756_v21 = vpop.eup %3755  ;;  %v2026_v58 = vpop.xlane.xlu1 %2025  ;;  %2621 = vst.msk [vmem:[#allocation5 + $0x80] sm:$0xff] %vm616_vm0, %v2589_v46  ;;  %v3461_v60 = vadd.f32 %v3460_v48, %v3459_v33  ;;  %2860 = vperm.xlu1 %3540, %v3754_v40   ;;  %3769 = vrcp.f32 %v2730_v9  ;;  %v2732_v29 = vld [vmem:[#allocation4 + $0xe0] sm:$0xff] }
 0x343   : > { %2090 = vst.msk [vmem:[#allocation4 + $0xf0] sm:$0xff] %vm551_vm2, %v2057_v42  ;;  %v2058_v30 = vadd.f32 %v2026_v58, %v1866_v7  ;;  %2865 = vperm.xlu0 %3539, %v3756_v21   ;;  %v3462_v11 = vpop.f32.mrf.mxu1  ;;  %v3758_v25 = vpop.eup %3757  ;;  %v5520_v21 = vld [vmem:[#allocation12_spill] sm:$0xff] }
 0x344   : > { %v2731_v41 = vld [vmem:[#allocation4 + $0xd8] sm:$0xff]  ;;  %v2590_v32 = vadd.f32 %v3461_v60, %v2301_v50  ;;  %v2307_v48 = vmul.f32 %v5520_v21, %v2115_v26 }
 0x345   : > { %3771 = vrcp.f32 %v2731_v41  ;;  %2091 = vst.msk [vmem:[#allocation4 + $0xf8] sm:$0xff] %vm551_vm2, %v2058_v30  ;;  %v3463_v18 = vpop.f32.mrf.mxu1  ;;  %v2308_v41 = vmul.f32 %v5521_v14, %v2116_v35  ;;  %v2674_v35 = vld [vmem:[#allocation5 + $0x10] sm:$0xff]  ;;  %v2677_v14 = vld [vmem:[#allocation5 + $0x28] sm:$0xff] }
 0x346   : > { %v3760_v23 = vpop.eup %3759  ;;  %2622 = vst.msk [vmem:[#allocation5 + $0x88] sm:$0xff] %vm616_vm0, %v2590_v32  ;;  %v3464_v49 = vadd.f32 %v3463_v18, %v3462_v11  ;;  %2870 = vperm.xlu1 %3540, %v3758_v25   ;;  %3773 = vrcp.f32 %v2732_v29  ;;  %v2117_v25 = vld [vmem:[#allocation5 + $0xc8] sm:$0xff]  ;;  %v5522_v18 = vld [vmem:[#allocation14_spill] sm:$0xff] }
 0x347   : > { %2875 = vperm.xlu0 %3539, %v3760_v23   ;;  %v3465_v0 = vpop.f32.mrf.mxu1  ;;  %v3762_v31 = vpop.eup %3761  ;;  %v2309_v59 = vmul.f32 %v5522_v18, %v2117_v25 }
 0x348   : > { %v2733_v8 = vld [vmem:[#allocation4 + $0xe8] sm:$0xff]  ;;  %v2591_v27 = vadd.f32 %v3464_v49, %v2302_v38  ;;  %v2118_v49 = vld [vmem:[#allocation5 + $0xd0] sm:$0xff] }
 0x349   : > { %3775 = vrcp.f32 %v2733_v8  ;;  %v3466_v1 = vpop.f32.mrf.mxu1 }
 0x34a   : > { %v3764_v37 = vpop.eup %3763  ;;  %v2734_v3 = vld [vmem:[#allocation4 + $0xf0] sm:$0xff]  ;;  %2623 = vst.msk [vmem:[#allocation5 + $0x90] sm:$0xff] %vm616_vm0, %v2591_v27  ;;  %v3467_v53 = vadd.f32 %v3466_v1, %v3465_v0  ;;  %2880 = vperm.xlu1 %3540, %v3762_v31   ;;  %v5523_v31 = vld [vmem:[#allocation15_spill] sm:$0xff] }
 0x34b   : > { %2885 = vperm.xlu0 %3539, %v3764_v37   ;;  %3777 = vrcp.f32 %v2734_v3  ;;  %v3468_v62 = vpop.f32.mrf.mxu1  ;;  %v3766_v5 = vpop.eup %3765  ;;  %v2310_v27 = vmul.f32 %v5523_v31, %v2118_v49  ;;  %v2119_v3 = vld [vmem:[#allocation5 + $0xd8] sm:$0xff]  ;;  %v2680_v31 = vld [vmem:[#allocation5 + $0x40] sm:$0xff] }
 0x34c   : > { %v2735_v61 = vld [vmem:[#allocation4 + $0xf8] sm:$0xff]  ;;  %v2592_v19 = vadd.f32 %v3467_v53, %v2303_v34  ;;  %v5524_v53 = vld [vmem:[#allocation16_spill] sm:$0xff] }
 0x34d   : > { %3779 = vrcp.f32 %v2735_v61  ;;  %v3469_v10 = vpop.f32.mrf.mxu1  ;;  %v2311_v56 = vmul.f32 %v5524_v53, %v2119_v3 }
 0x34e   : > { %v3768_v4 = vpop.eup %3767  ;;  %2624 = vst.msk [vmem:[#allocation5 + $0x98] sm:$0xff] %vm616_vm0, %v2592_v19  ;;  %v3470_v17 = vadd.f32 %v3469_v10, %v3468_v62  ;;  %2890 = vperm.xlu1 %3540, %v3766_v5   ;;  %v2120_v62 = vld [vmem:[#allocation5 + $0xe0] sm:$0xff]  ;;  %v5525_v10 = vld [vmem:[#allocation17_spill] sm:$0xff] }
 0x34f   : > { %2895 = vperm.xlu0 %3539, %v3768_v4   ;;  %v3471_v36 = vpop.f32.mrf.mxu1  ;;  %v3770_v20 = vpop.eup %3769  ;;  %v2312_v55 = vmul.f32 %v5525_v10, %v2120_v62  ;;  %v2685_v62 = vld [vmem:[#allocation5 + $0x68] sm:$0xff] }
 0x350   : > { %v2593_v22 = vadd.f32 %v3470_v17, %v2304_v57  ;;  %v2121_v17 = vld [vmem:[#allocation5 + $0xe8] sm:$0xff] }
 0x351   : > { %v3472_v47 = vpop.f32.mrf.mxu1 }
 0x352   : > { %v3772_v43 = vpop.eup %3771  ;;  %2625 = vst.msk [vmem:[#allocation5 + $0xa0] sm:$0xff] %vm616_vm0, %v2593_v22  ;;  %v3473_v6 = vadd.f32 %v3472_v47, %v3471_v36  ;;  %2900 = vperm.xlu1 %3540, %v3770_v20   ;;  %v5526_v22 = vld [vmem:[#allocation18_spill] sm:$0xff] }
 0x353   : > { %2905 = vperm.xlu0 %3539, %v3772_v43   ;;  %v3474_v12 = vpop.f32.mrf.mxu1  ;;  %v3774_v15 = vpop.eup %3773  ;;  %v2313_v43 = vmul.f32 %v5526_v22, %v2121_v17 }
 0x354   : > { %v2594_v44 = vadd.f32 %v3473_v6, %v2305_v39 }
 0x355   : > { %v3475_v28 = vpop.f32.mrf.mxu1 }
 0x356   : > { %v3776_v16 = vpop.eup %3775  ;;  %2626 = vst.msk [vmem:[#allocation5 + $0xa8] sm:$0xff] %vm616_vm0, %v2594_v44  ;;  %v3476_v33 = vadd.f32 %v3475_v28, %v3474_v12  ;;  %2910 = vperm.xlu1 %3540, %v3774_v15   ;;  %v2314_v12 = vmul.f32 %v5078_v13, %v2122_v24  ;;  %v2123_v44 = vld [vmem:[#allocation5 + $0xf8] sm:$0xff]  ;;  %v2673_v13 = vld [vmem:[#allocation5 + $0x8] sm:$0xff]  ;;  %v2688_v24 = vld [vmem:[#allocation5 + $0x80] sm:$0xff] }
 0x357   : > { %2915 = vperm.xlu0 %3539, %v3776_v16   ;;  %v3477_v40 = vpop.f32.mrf.mxu1  ;;  %v2282_v16 = vpop.permute.xlu0 %2281 }
 0x358   : > { %v3778_v9 = vpop.eup %3777  ;;  %v2595_v46 = vadd.f32 %v3476_v33, %v2306_v63  ;;  %v2315_v33 = vmul.f32 %v2282_v16, %v2123_v44  ;;  %v2690_v44 = vld [vmem:[#allocation5 + $0x90] sm:$0xff] }
 0x359   : > { %v3478_v7 = vpop.f32.mrf.mxu1 }
 0x35a   : > { %v3780_v42 = vpop.eup %3779  ;;  %2627 = vst.msk [vmem:[#allocation5 + $0xb0] sm:$0xff] %vm616_vm0, %v2595_v46  ;;  %v3479_v58 = vadd.f32 %v3478_v7, %v3477_v40  ;;  %2920 = vperm.xlu1 %3540, %v3778_v9  }
 0x35b   : > { %2925 = vperm.xlu0 %3539, %v3780_v42   ;;  %v3480_v50 = vpop.f32.mrf.mxu1  ;;  %v2672_v42 = vld [vmem:[#allocation5] sm:$0xff] }
 0x35c   : > { %v2596_v60 = vadd.f32 %v3479_v58, %v2307_v48  ;;  %v2675_v48 = vld [vmem:[#allocation5 + $0x18] sm:$0xff] }
 0x35d   : > { %v3481_v30 = vpop.f32.mrf.mxu1 }
 0x35e   : > { %2628 = vst.msk [vmem:[#allocation5 + $0xb8] sm:$0xff] %vm616_vm0, %v2596_v60  ;;  %v3482_v11 = vadd.f32 %v3481_v30, %v3480_v50 }
 0x35f   : > { %v3483_v29 = vpop.f32.mrf.mxu1 }
 0x360   : > { %v2597_v32 = vadd.f32 %v3482_v11, %v2308_v41  ;;  %v2676_v11 = vld [vmem:[#allocation5 + $0x20] sm:$0xff] }
 0x361   : > { %v3484_v23 = vpop.f32.mrf.mxu1 }
 0x362   : > { %2629 = vst.msk [vmem:[#allocation5 + $0xc0] sm:$0xff] %vm616_vm0, %v2597_v32  ;;  %v3485_v38 = vadd.f32 %v3484_v23, %v3483_v29  ;;  %v2679_v23 = vld [vmem:[#allocation5 + $0x38] sm:$0xff] }
 0x363   : > { %v3486_v51 = vpop.f32.mrf.mxu1 }
 0x364   : > { %v2598_v8 = vadd.f32 %v3485_v38, %v2309_v59  ;;  %v2678_v59 = vld [vmem:[#allocation5 + $0x30] sm:$0xff] }
 0x365   : > { %v3487_v0 = vpop.f32.mrf.mxu1 }
 0x366   : > { %2630 = vst.msk [vmem:[#allocation5 + $0xc8] sm:$0xff] %vm616_vm0, %v2598_v8  ;;  %v3488_v37 = vadd.f32 %v3487_v0, %v3486_v51  ;;  %v2681_v8 = vld [vmem:[#allocation5 + $0x48] sm:$0xff] }
 0x367   : > { %v3489_v1 = vpop.f32.mrf.mxu1 }
 0x368   : > { %v2599_v54 = vadd.f32 %v3488_v37, %v2310_v27 }
 0x369   : > { %v3490_v34 = vpop.f32.mrf.mxu1 }
 0x36a   : > { %2631 = vst.msk [vmem:[#allocation5 + $0xd0] sm:$0xff] %vm616_vm0, %v2599_v54  ;;  %v3491_v61 = vadd.f32 %v3490_v34, %v3489_v1  ;;  %v2683_v1 = vld [vmem:[#allocation5 + $0x58] sm:$0xff]  ;;  %v2682_v34 = vld [vmem:[#allocation5 + $0x50] sm:$0xff] }
 0x36b   : > { %v3492_v5 = vpop.f32.mrf.mxu1 }
 0x36c   : > { %v2600_v19 = vadd.f32 %v3491_v61, %v2311_v56 }
 0x36d   : > { %v3493_v4 = vpop.f32.mrf.mxu1 }
 0x36e   : > { %2632 = vst.msk [vmem:[#allocation5 + $0xd8] sm:$0xff] %vm616_vm0, %v2600_v19  ;;  %v3494_v57 = vadd.f32 %v3493_v4, %v3492_v5  ;;  %v2684_v19 = vld [vmem:[#allocation5 + $0x60] sm:$0xff] }
 0x36f   : > { %v3495_v52 = vpop.f32.mrf.mxu1 }
 0x370   : > { %v2601_v36 = vadd.f32 %v3494_v57, %v2312_v55  ;;  %v2687_v57 = vld [vmem:[#allocation5 + $0x78] sm:$0xff] }
 0x371   : > { %v3496_v20 = vpop.f32.mrf.mxu1 }
 0x372   : > { %2633 = vst.msk [vmem:[#allocation5 + $0xe0] sm:$0xff] %vm616_vm0, %v2601_v36  ;;  %v3497_v47 = vadd.f32 %v3496_v20, %v3495_v52  ;;  %v2686_v52 = vld [vmem:[#allocation5 + $0x70] sm:$0xff] }
 0x373   : > { %v3498_v39 = vpop.f32.mrf.mxu1 }
 0x374   : > { %v2602_v6 = vadd.f32 %v3497_v47, %v2313_v43  ;;  %v2689_v43 = vld [vmem:[#allocation5 + $0x88] sm:$0xff] }
 0x375   : > { %v3499_v2 = vpop.f32.mrf.mxu1 }
 0x376   : > { %2634 = vst.msk [vmem:[#allocation5 + $0xe8] sm:$0xff] %vm616_vm0, %v2602_v6  ;;  %v3500_v15 = vadd.f32 %v3499_v2, %v3498_v39 }
 0x377   : > { %v3501_v28 = vpop.f32.mrf.mxu1 }
 0x378   : > { %v2603_v45 = vadd.f32 %v3500_v15, %v2314_v12  ;;  %v2691_v12 = vld [vmem:[#allocation5 + $0x98] sm:$0xff] }
 0x379   : > { %v3502_v63 = vpop.f32.mrf.mxu1 }
 0x37a   : > { %2635 = vst.msk [vmem:[#allocation5 + $0xf0] sm:$0xff] %vm616_vm0, %v2603_v45  ;;  %v3503_v26 = vadd.f32 %v3502_v63, %v3501_v28  ;;  %v2693_v63 = vld [vmem:[#allocation5 + $0xa8] sm:$0xff] }
 0x37c   : > { %v2604_v40 = vadd.f32 %v3503_v26, %v2315_v33  ;;  %v2692_v26 = vld [vmem:[#allocation5 + $0xa0] sm:$0xff] }
 0x37e   : > { %2636 = vst.msk [vmem:[#allocation5 + $0xf8] sm:$0xff] %vm616_vm0, %v2604_v40 }
 0x394   : > { %v2776_v9 = vpop.permute.xlu0 %2775 }
 0x395   : > { %v2929_v46 = vmul.f32 %v2776_v9, %v2673_v13 }
 0x397   : > { %2961 = vst.msk [vmem:[%s5209_s29 + $0x8] sm:$0xff] %vm616_vm0, %v2929_v46  ;;  %v2695_v46 = vld [vmem:[#allocation5 + $0xb8] sm:$0xff] }
 0x399   : > { %v2771_v7 = vpop.permute.xlu1 %2770 }
 0x39a   : > { %v2928_v21 = vmul.f32 %v2771_v7, %v2672_v42  ;;  %v2694_v7 = vld [vmem:[#allocation5 + $0xb0] sm:$0xff] }
 0x39c   : > { %2960 = vst.msk [vmem:[%s5209_s29] sm:$0xff] %vm616_vm0, %v2928_v21 }
 0x39d   : > { %v2786_v58 = vpop.permute.xlu0 %2785  ;;  %v2781_v50 = vpop.permute.xlu1 %2780 }
 0x39e   : > { %v2931_v60 = vmul.f32 %v2786_v58, %v2675_v48  ;;  %v2930_v30 = vmul.f32 %v2781_v50, %v2674_v35  ;;  %v2697_v35 = vld [vmem:[#allocation5 + $0xc8] sm:$0xff] }
 0x3a0   : > { %2963 = vst.msk [vmem:[%s5209_s29 + $0x18] sm:$0xff] %vm616_vm0, %v2931_v60  ;;  %2962 = vst.msk [vmem:[%s5209_s29 + $0x10] sm:$0xff] %vm616_vm0, %v2930_v30  ;;  %v2696_v60 = vld [vmem:[#allocation5 + $0xc0] sm:$0xff] }
 0x3a1   : > { %v2796_v41 = vpop.permute.xlu0 %2795  ;;  %v2791_v25 = vpop.permute.xlu1 %2790 }
 0x3a2   : > { %v2933_v29 = vmul.f32 %v2796_v41, %v2677_v14  ;;  %v2932_v32 = vmul.f32 %v2791_v25, %v2676_v11  ;;  %v2699_v11 = vld [vmem:[#allocation5 + $0xd8] sm:$0xff] }
 0x3a4   : > { %2965 = vst.msk [vmem:[%s5209_s29 + $0x28] sm:$0xff] %vm616_vm0, %v2933_v29  ;;  %2964 = vst.msk [vmem:[%s5209_s29 + $0x20] sm:$0xff] %vm616_vm0, %v2932_v32  ;;  %v2698_v29 = vld [vmem:[#allocation5 + $0xd0] sm:$0xff] }
 0x3a5   : > { %v2806_v18 = vpop.permute.xlu0 %2805  ;;  %v2801_v38 = vpop.permute.xlu1 %2800 }
 0x3a6   : > { %v2935_v49 = vmul.f32 %v2806_v18, %v2679_v23  ;;  %v2934_v51 = vmul.f32 %v2801_v38, %v2678_v59  ;;  %v2701_v59 = vld [vmem:[#allocation5 + $0xe8] sm:$0xff] }
 0x3a8   : > { %2967 = vst.msk [vmem:[%s5209_s29 + $0x38] sm:$0xff] %vm616_vm0, %v2935_v49  ;;  %2966 = vst.msk [vmem:[%s5209_s29 + $0x30] sm:$0xff] %vm616_vm0, %v2934_v51  ;;  %v2700_v49 = vld [vmem:[#allocation5 + $0xe0] sm:$0xff] }
 0x3a9   : > { %v2816_v0 = vpop.permute.xlu0 %2815  ;;  %v2811_v27 = vpop.permute.xlu1 %2810 }
 0x3aa   : > { %v2937_v37 = vmul.f32 %v2816_v0, %v2681_v8  ;;  %v2936_v3 = vmul.f32 %v2811_v27, %v2680_v31  ;;  %v2703_v31 = vld [vmem:[#allocation5 + $0xf8] sm:$0xff] }
 0x3ac   : > { %2969 = vst.msk [vmem:[%s5209_s29 + $0x48] sm:$0xff] %vm616_vm0, %v2937_v37  ;;  %2968 = vst.msk [vmem:[%s5209_s29 + $0x40] sm:$0xff] %vm616_vm0, %v2936_v3  ;;  %v2702_v37 = vld [vmem:[#allocation5 + $0xf0] sm:$0xff] }
 0x3ad   : > { %v2826_v54 = vpop.permute.xlu0 %2825  ;;  %v2821_v53 = vpop.permute.xlu1 %2820 }
 0x3ae   : > { %v2939_v56 = vmul.f32 %v2826_v54, %v2683_v1  ;;  %v2938_v61 = vmul.f32 %v2821_v53, %v2682_v34 }
 0x3b0   : > { %2971 = vst.msk [vmem:[%s5209_s29 + $0x58] sm:$0xff] %vm616_vm0, %v2939_v56  ;;  %2970 = vst.msk [vmem:[%s5209_s29 + $0x50] sm:$0xff] %vm616_vm0, %v2938_v61 }
 0x3b1   : > { %v2831_v4 = vpop.permute.xlu1 %2830 }
 0x3b2   : > { %v2836_v5 = vpop.permute.xlu0 %2835  ;;  %v2940_v55 = vmul.f32 %v2831_v4, %v2684_v19 }
 0x3b3   : > { %v2941_v10 = vmul.f32 %v2836_v5, %v2685_v62 }
 0x3b4   : > { %2972 = vst.msk [vmem:[%s5209_s29 + $0x60] sm:$0xff] %vm616_vm0, %v2940_v55 }
 0x3b5   : > { %2973 = vst.msk [vmem:[%s5209_s29 + $0x68] sm:$0xff] %vm616_vm0, %v2941_v10  ;;  %v2841_v36 = vpop.permute.xlu1 %2840 }
 0x3b6   : > { %v2846_v17 = vpop.permute.xlu0 %2845  ;;  %v2942_v22 = vmul.f32 %v2841_v36, %v2686_v52 }
 0x3b7   : > { %v2943_v20 = vmul.f32 %v2846_v17, %v2687_v57 }
 0x3b8   : > { %2974 = vst.msk [vmem:[%s5209_s29 + $0x70] sm:$0xff] %vm616_vm0, %v2942_v22 }
 0x3b9   : > { %2975 = vst.msk [vmem:[%s5209_s29 + $0x78] sm:$0xff] %vm616_vm0, %v2943_v20  ;;  %v2851_v39 = vpop.permute.xlu1 %2850 }
 0x3ba   : > { %v2856_v47 = vpop.permute.xlu0 %2855  ;;  %v2944_v2 = vmul.f32 %v2851_v39, %v2688_v24 }
 0x3bb   : > { %v2945_v6 = vmul.f32 %v2856_v47, %v2689_v43 }
 0x3bc   : > { %2976 = vst.msk [vmem:[%s5209_s29 + $0x80] sm:$0xff] %vm616_vm0, %v2944_v2 }
 0x3bd   : > { %2977 = vst.msk [vmem:[%s5209_s29 + $0x88] sm:$0xff] %vm616_vm0, %v2945_v6  ;;  %v2861_v16 = vpop.permute.xlu1 %2860 }
 0x3be   : > { %v2866_v15 = vpop.permute.xlu0 %2865  ;;  %v2946_v45 = vmul.f32 %v2861_v16, %v2690_v44 }
 0x3bf   : > { %v2947_v28 = vmul.f32 %v2866_v15, %v2691_v12 }
 0x3c0   : > { %2978 = vst.msk [vmem:[%s5209_s29 + $0x90] sm:$0xff] %vm616_vm0, %v2946_v45 }
 0x3c1   : > { %2979 = vst.msk [vmem:[%s5209_s29 + $0x98] sm:$0xff] %vm616_vm0, %v2947_v28  ;;  %v2871_v40 = vpop.permute.xlu1 %2870 }
 0x3c2   : > { %v2876_v33 = vpop.permute.xlu0 %2875  ;;  %v2948_v9 = vmul.f32 %v2871_v40, %v2692_v26 }
 0x3c3   : > { %v2949_v13 = vmul.f32 %v2876_v33, %v2693_v63 }
 0x3c4   : > { %2980 = vst.msk [vmem:[%s5209_s29 + $0xa0] sm:$0xff] %vm616_vm0, %v2948_v9 }
 0x3c5   : > { %2981 = vst.msk [vmem:[%s5209_s29 + $0xa8] sm:$0xff] %vm616_vm0, %v2949_v13  ;;  %v2881_v21 = vpop.permute.xlu1 %2880 }
 0x3c6   : > { %v2886_v42 = vpop.permute.xlu0 %2885  ;;  %v2950_v58 = vmul.f32 %v2881_v21, %v2694_v7 }
 0x3c7   : > { %v2951_v48 = vmul.f32 %v2886_v42, %v2695_v46 }
 0x3c8   : > { %2982 = vst.msk [vmem:[%s5209_s29 + $0xb0] sm:$0xff] %vm616_vm0, %v2950_v58 }
 0x3c9   : > { %2983 = vst.msk [vmem:[%s5209_s29 + $0xb8] sm:$0xff] %vm616_vm0, %v2951_v48  ;;  %v2891_v30 = vpop.permute.xlu1 %2890 }
 0x3ca   : > { %v2896_v50 = vpop.permute.xlu0 %2895  ;;  %v2952_v41 = vmul.f32 %v2891_v30, %v2696_v60 }
 0x3cb   : > { %v2953_v14 = vmul.f32 %v2896_v50, %v2697_v35 }
 0x3cc   : > { %2984 = vst.msk [vmem:[%s5209_s29 + $0xc0] sm:$0xff] %vm616_vm0, %v2952_v41 }
 0x3cd   : > { %2985 = vst.msk [vmem:[%s5209_s29 + $0xc8] sm:$0xff] %vm616_vm0, %v2953_v14  ;;  %v2901_v32 = vpop.permute.xlu1 %2900 }
 0x3ce   : > { %v2906_v25 = vpop.permute.xlu0 %2905  ;;  %v2954_v18 = vmul.f32 %v2901_v32, %v2698_v29 }
 0x3cf   : > { %v2955_v23 = vmul.f32 %v2906_v25, %v2699_v11 }
 0x3d0   : > { %2986 = vst.msk [vmem:[%s5209_s29 + $0xd0] sm:$0xff] %vm616_vm0, %v2954_v18 }
 0x3d1   : > { %2987 = vst.msk [vmem:[%s5209_s29 + $0xd8] sm:$0xff] %vm616_vm0, %v2955_v23  ;;  %v2911_v51 = vpop.permute.xlu1 %2910 }
 0x3d2   : > { %v2916_v38 = vpop.permute.xlu0 %2915  ;;  %v2956_v0 = vmul.f32 %v2911_v51, %v2700_v49 }
 0x3d3   : > { %v2957_v8 = vmul.f32 %v2916_v38, %v2701_v59 }
 0x3d4   : > { %2988 = vst.msk [vmem:[%s5209_s29 + $0xe0] sm:$0xff] %vm616_vm0, %v2956_v0 }
 0x3d5   : > { %2989 = vst.msk [vmem:[%s5209_s29 + $0xe8] sm:$0xff] %vm616_vm0, %v2957_v8  ;;  %v2921_v3 = vpop.permute.xlu1 %2920 }
 0x3d6   : > { %v2926_v27 = vpop.permute.xlu0 %2925  ;;  %v2958_v54 = vmul.f32 %v2921_v3, %v2702_v37 }
 0x3d7   : > { %v2959_v1 = vmul.f32 %v2926_v27, %v2703_v31 }
 0x3d8   : > { %2990 = vst.msk [vmem:[%s5209_s29 + $0xf0] sm:$0xff] %vm616_vm0, %v2958_v54 }
 0x3d9   : > { %2991 = vst.msk [vmem:[%s5209_s29 + $0xf8] sm:$0xff] %vm616_vm0, %v2959_v1 }
 0x3da PF: > { %s13_s14 = sadd.s32 1, %s3803_s14   ;;  %s5527_s12 = smov %s3799_s13 }
 0x3db   : > { %p10_p5 = scmp.ge.s32.totalorder %s13_s14, 10   ;;  %s5528_s13 = smov %s5530_s15 }
 0x3dd   :  { %12 = sbr.rel (!%p10_p5) target bundleno = 2 (0x2), region = 76 }

</bundles_post_ra>
